<compile_context>
chip_gen: v7x
topology: tpu7x:2x2x1
jax: 0.10.0
libtpu: 0.0.40
codegen_flags: <defaults>
</compile_context>

<pallas_src>
from functools import partial
import math

import jax
import jax.numpy as jnp
from jax import lax
from jax.experimental import pallas as pl
from jax.experimental.pallas import tpu as pltpu


def _pe3d_kernel(xh_ref, bigw_ref, bconv_ref, wcls_ref, bcls_ref, pred_ref,
                 acc_ref, *, td, H, W, F, D, inv_npix):
    """One (batch, depth-tile) step of Conv3d(3,pad=1) + ReLU + global-avg-pool + Linear.

    xh_ref  : (td+2, H+2, (W+2)*Cin) bf16 halo'd slab (depth window of the padded volume)
    bigw_ref: (9, (W+2)*Cin, W*F)   bf16 block-banded conv weight, one band per (kd, kh)
    acc_ref : (8, W*F) f32 pooled-sum accumulator; 8->1 reduce deferred to the finalize
    pred_ref: (1, 128*ceil(NC/128)) f32 per-batch lane-dense classifier output
    """
    j = pl.program_id(1)
    rows = td * H
    WF = W * F

    @pl.when(j == 0)
    def _init():
        acc_ref[...] = jnp.zeros_like(acc_ref)

    # ---- Conv3d: 9 banded MXU matmuls ((kd, kh) unrolled; kw lives inside the banded W) ----
    conv = None
    for kd in range(3):
        for kh in range(3):
            x2 = xh_ref[kd:kd + td, kh:kh + H, :].reshape(rows, -1)   # (rows, (W+2)*Cin) bf16
            part = jnp.dot(x2, bigw_ref[kd * 3 + kh],
                           preferred_element_type=jnp.float32)        # (rows, W*F) f32
            conv = part if conv is None else conv + part

    conv = jnp.maximum(conv + bconv_ref[...], 0.0)                    # bias + ReLU (f32 VPU)

    # Ragged-depth tail: padded depth rows must not contribute ReLU(bias) to the pool.
    valid_rows = jnp.minimum(D - j * td, td) * H
    row_id = lax.broadcasted_iota(jnp.int32, (rows, 1), 0)
    conv = jnp.where(row_id < valid_rows, conv, 0.0)

    # Pooled-sum accumulation: VALU-only vreg-group sum into the (8, W*F) accumulator.
    if rows % 8 == 0:
        acc_ref[...] += jnp.sum(conv.reshape(rows // 8, 8, WF), axis=0)
    else:  # fallback for odd row counts: full cross-sublane reduce into row 0
        acc_ref[0:1, :] += jnp.sum(conv, axis=0, keepdims=True)

    @pl.when(j == pl.num_programs(1) - 1)
    def _finalize():
        # Single 8->1 cross-sublane reduce, mean scale, then the lane-dense classifier.
        feat = jnp.sum(acc_ref[...], axis=0, keepdims=True) * inv_npix       # (1, W*F)
        pred = jnp.dot(feat, wcls_ref[...],
                       preferred_element_type=jnp.float32) + bcls_ref[...]   # (1, NCp)
        pred_ref[...] = pred.astype(pred_ref.dtype)


def _vmem_capacity_bytes():
    try:
        cap = getattr(pltpu.get_tpu_info(), "vmem_capacity_bytes", None)
        if cap:
            return int(cap)
    except Exception:
        pass
    return 128 * 1024 * 1024          # v5e/v6e physical VMEM fallback


def _pick_depth_tile(D, H, W, Cin, F, vmem_cap):
    """Depth rows per grid step, sized from a VMEM byte budget (generation-aware)."""
    budget = vmem_cap // 4            # headroom: double buffers, weights, f32 temps
    per_depth_row = ((H + 2) * (W + 2) * Cin * 2 * 2   # bf16 slab, double-buffered
                     + H * W * F * 4)                  # f32 conv intermediate rows
    td = max(1, min(D, budget // max(per_depth_row, 1)))
    step = max(1, 8 // math.gcd(H, 8))                 # keep td*H a multiple of 8
    if td >= step:
        td = (td // step) * step
    return td


def pe_model3d_forward(x_ncdhw, wconv, bconv, wcls, bcls):
    """x_ncdhw: (B, Cin, D, H, W) float32.  Returns pred: (B, num_classes) float32."""
    B, Cin, D, H, W = x_ncdhw.shape
    F = wconv.shape[-1]                      # feature_dim
    NC = wcls.shape[-1]                      # num_classes
    LANE = 128
    NCp = ((NC + LANE - 1) // LANE) * LANE   # lane-dense classifier output
    WF = W * F
    Wp2C = (W + 2) * Cin

    vmem_cap = _vmem_capacity_bytes()
    td = _pick_depth_tile(D, H, W, Cin, F, vmem_cap)
    n_dtiles = -(-D // td)
    Dp = n_dtiles * td                       # depth padded up to a tile multiple

    # ---- Raw input only: channels-last, bf16, spatial pad=1; NO im2col / K-pad in HBM ----
    x = jnp.transpose(x_ncdhw, (0, 2, 3, 4, 1)).astype(jnp.bfloat16)      # (B, D, H, W, Cin)
    xp = jnp.pad(x, ((0, 0), (1, Dp - D + 1), (1, 1), (1, 1), (0, 0)))
    xp = xp.reshape(B, Dp + 2, H + 2, Wp2C)
    # Halo'd depth windows ((td+2)/td duplication only) keep the streaming input on a plain
    # auto-pipelined BlockSpec.
    widx = jnp.arange(n_dtiles)[:, None] * td + jnp.arange(td + 2)[None, :]
    xh = xp[:, widx]                                    # (B, n_dtiles, td+2, H+2, (W+2)*Cin)

    # ---- Block-banded conv weight: folds the kw window and the W axis into MXU lanes ----
    wr = wconv.astype(jnp.float32).reshape(3, 3, 3, Cin, F)
    eyeW = jnp.eye(W, dtype=jnp.float32)
    bigw = jnp.zeros((9, Wp2C, WF), jnp.float32)
    for kw in range(3):
        band = jnp.einsum("wv,gcf->gwcvf", eyeW,
                          wr[:, :, kw].reshape(9, Cin, F)).reshape(9, W * Cin, WF)
        bigw = bigw + jnp.pad(band, ((0, 0), (kw * Cin, (2 - kw) * Cin), (0, 0)))
    bigw = bigw.astype(jnp.bfloat16)

    bconv_t = jnp.tile(bconv.astype(jnp.float32), W).reshape(1, WF)       # bias per (w,f) lane
    wcls_big = jnp.pad(jnp.tile(wcls.astype(jnp.float32), (W, 1)),
                       ((0, 0), (0, NCp - NC)))                           # (W*F, NCp)
    bcls_p = jnp.pad(bcls.astype(jnp.float32).reshape(1, NC),
                     ((0, 0), (0, NCp - NC)))                             # (1, NCp)

    grid_spec = pltpu.PrefetchScalarGridSpec(
        num_scalar_prefetch=0,
        grid=(B, n_dtiles),                  # batch parallel, depth-tile reduction last
        in_specs=[
            pl.BlockSpec((None, None, td + 2, H + 2, Wp2C),
                         lambda b, j: (b, j, 0, 0, 0)),                   # halo'd slab (bf16)
            pl.BlockSpec((9, Wp2C, WF), lambda b, j: (0, 0, 0)),          # banded conv W (bf16)
            pl.BlockSpec((1, WF), lambda b, j: (0, 0)),                   # conv bias (f32)
            pl.BlockSpec((WF, NCp), lambda b, j: (0, 0)),                 # classifier W (f32)
            pl.BlockSpec((1, NCp), lambda b, j: (0, 0)),                  # classifier b (f32)
        ],
        # Per-batch, lane-dense (1, 128*k) output block -> unmasked full-lane stores.
        out_specs=pl.BlockSpec((1, NCp), lambda b, j: (0, b)),
        scratch_shapes=[pltpu.VMEM((8, WF), jnp.float32)],                # pooled-sum accum
    )

    out = pl.pallas_call(
        partial(_pe3d_kernel, td=td, H=H, W=W, F=F, D=D, inv_npix=1.0 / (D * H * W)),
        out_shape=jax.ShapeDtypeStruct((1, B * NCp), jnp.float32),
        grid_spec=grid_spec,
        compiler_params=pltpu.CompilerParams(
            dimension_semantics=("parallel", "arbitrary"),
            vmem_limit_bytes=int(vmem_cap * 3 // 4)),
    )(xh, bigw, bconv_t, wcls_big, bcls_p)

    return out.reshape(B, NCp)[:, :NC]


def _reference_forward(x_ncdhw, wconv, bconv, wcls, bcls):
    """Pure-JAX reference (lax 3D conv) at matched bf16 matmul precision."""
    x = jnp.transpose(x_ncdhw, (0, 2, 3, 4, 1)).astype(jnp.bfloat16)      # NDHWC
    w = wconv.astype(jnp.bfloat16)
    conv = lax.conv_general_dilated(
        x, w, window_strides=(1, 1, 1), padding="SAME",
        dimension_numbers=("NDHWC", "DHWIO", "NDHWC"),
        preferred_element_type=jnp.float32)
    conv = jnp.maximum(conv + bconv.astype(jnp.float32), 0.0)
    feat = jnp.mean(conv, axis=(1, 2, 3))                                 # (B, F)
    return feat @ wcls.astype(jnp.float32) + bcls.astype(jnp.float32)[None, :]


if __name__ == "__main__":
    # Small shapes consistent with a 3D PE model: batch=2, channels=4,
    # num_slices(D)=8, H=W=16, feature_dim=32, num_classes=1.
    B, Cin, D, H, W = 2, 4, 8, 16, 16
    feature_dim, num_classes = 32, 1

    key = jax.random.PRNGKey(0)
    kx, kwt, kb, kcw, kcb = jax.random.split(key, 5)

    x = jax.random.normal(kx, (B, Cin, D, H, W), dtype=jnp.float32)
    wconv = jax.random.normal(kwt, (3, 3, 3, Cin, feature_dim), jnp.float32) * 0.05
    bconv = jax.random.normal(kb, (feature_dim,), jnp.float32) * 0.01
    wcls = jax.random.normal(kcw, (feature_dim, num_classes), jnp.float32) * 0.1
    bcls = jax.random.normal(kcb, (num_classes,), jnp.float32) * 0.01

    pred = jax.jit(pe_model3d_forward)(x, wconv, bconv, wcls, bcls)
    pred = jax.block_until_ready(pred)

    ref = _reference_forward(x, wconv, bconv, wcls, bcls)
    assert pred.shape == (B, num_classes)
    assert jnp.allclose(pred, ref, rtol=2e-3, atol=2e-3), (pred, ref)

    print("KERNEL_OK")
</pallas_src>

<mosaic_0001>
module attributes {stable_mosaic.version = 11 : i64} {
  func.func @_pe3d_kernel(%arg0: i32, %arg1: i32, %arg2: memref<1x1x10x18x72xbf16, #tpu.memory_space<vmem>>, %arg3: memref<9x72x512xbf16, #tpu.memory_space<vmem>>, %arg4: memref<1x512xf32, #tpu.memory_space<vmem>>, %arg5: memref<512x128xf32, #tpu.memory_space<vmem>>, %arg6: memref<1x128xf32, #tpu.memory_space<vmem>>, %arg7: memref<1x128xf32, #tpu.memory_space<vmem>>, %arg8: memref<8x512xf32, #tpu.memory_space<vmem>>) attributes {dimension_semantics = [#tpu.dimension_semantics<parallel>, #tpu.dimension_semantics<arbitrary>], iteration_bounds = array<i64: 2, 1>, scalar_prefetch = 0 : i64, scratch_operands = 1 : i64, tpu.core_type = #tpu.core_type<tc>, window_params = [{transform_indices = @transform_0, window_bounds = array<i64: 1, 1, 10, 18, 72>}, {pipeline_mode = #tpu.pipeline_mode<synchronous>, transform_indices = @transform_1, window_bounds = array<i64: 9, 72, 512>}, {pipeline_mode = #tpu.pipeline_mode<synchronous>, transform_indices = @transform_2, window_bounds = array<i64: 1, 512>}, {pipeline_mode = #tpu.pipeline_mode<synchronous>, transform_indices = @transform_3, window_bounds = array<i64: 512, 128>}, {pipeline_mode = #tpu.pipeline_mode<synchronous>, transform_indices = @transform_4, window_bounds = array<i64: 1, 128>}, {transform_indices = @transform_5, window_bounds = array<i64: 1, 128>}]} {
    %c0_i32 = arith.constant 0 : i32
    %0 = arith.cmpi eq, %arg1, %c0_i32 : i32
    %1 = arith.extui %0 : i1 to i32
    %c0_i32_0 = arith.constant 0 : i32
    %2 = arith.cmpi ne, %1, %c0_i32_0 : i32
    scf.if %2 {
      %cst_85 = arith.constant 0.000000e+00 : f32
      %89 = vector.broadcast %cst_85 : f32 to vector<8x512xf32>
      %c0_86 = arith.constant 0 : index
      %c0_87 = arith.constant 0 : index
      %90 = vector.load %arg8[%c0_86, %c0_87] : memref<8x512xf32, #tpu.memory_space<vmem>>, vector<8x512xf32>
      tpu.vector_store %arg8[%c0_86, %c0_87], %89 {strides = array<i32>} : memref<8x512xf32, #tpu.memory_space<vmem>>, vector<8x512xf32>,
    } else {
    }
    %c0 = arith.constant 0 : index
    %c0_1 = arith.constant 0 : index
    %c0_2 = arith.constant 0 : index
    %c0_3 = arith.constant 0 : index
    %c0_4 = arith.constant 0 : index
    %3 = vector.load %arg2[%c0, %c0_1, %c0_2, %c0_3, %c0_4] : memref<1x1x10x18x72xbf16, #tpu.memory_space<vmem>>, vector<1x1x8x16x72xbf16>
    %4 = vector.shape_cast %3 : vector<1x1x8x16x72xbf16> to vector<8x16x72xbf16>
    %5 = vector.shape_cast %4 : vector<8x16x72xbf16> to vector<128x72xbf16>
    %c0_5 = arith.constant 0 : index
    %c0_6 = arith.constant 0 : index
    %c0_7 = arith.constant 0 : index
    %6 = vector.load %arg3[%c0_5, %c0_6, %c0_7] : memref<9x72x512xbf16, #tpu.memory_space<vmem>>, vector<1x72x512xbf16>
    %7 = vector.shape_cast %6 : vector<1x72x512xbf16> to vector<72x512xbf16>
    %cst = arith.constant dense<0.000000e+00> : vector<128x512xf32>
    %8 = tpu.matmul %5, %7, %cst {dimension_numbers = #tpu.dot_dimension_numbers<[1], [0], [0], [1], [0, 0, 1, 1], [], []>} : vector<128x72xbf16>, vector<72x512xbf16>, vector<128x512xf32> -> vector<128x512xf32>
    %c0_8 = arith.constant 0 : index
    %c0_9 = arith.constant 0 : index
    %c0_10 = arith.constant 0 : index
    %c1 = arith.constant 1 : index
    %c0_11 = arith.constant 0 : index
    %9 = vector.load %arg2[%c0_8, %c0_9, %c0_10, %c1, %c0_11] : memref<1x1x10x18x72xbf16, #tpu.memory_space<vmem>>, vector<1x1x8x16x72xbf16>
    %10 = vector.shape_cast %9 : vector<1x1x8x16x72xbf16> to vector<8x16x72xbf16>
    %11 = vector.shape_cast %10 : vector<8x16x72xbf16> to vector<128x72xbf16>
    %c1_12 = arith.constant 1 : index
    %c0_13 = arith.constant 0 : index
    %c0_14 = arith.constant 0 : index
    %12 = vector.load %arg3[%c1_12, %c0_13, %c0_14] : memref<9x72x512xbf16, #tpu.memory_space<vmem>>, vector<1x72x512xbf16>
    %13 = vector.shape_cast %12 : vector<1x72x512xbf16> to vector<72x512xbf16>
    %cst_15 = arith.constant dense<0.000000e+00> : vector<128x512xf32>
    %14 = tpu.matmul %11, %13, %cst_15 {dimension_numbers = #tpu.dot_dimension_numbers<[1], [0], [0], [1], [0, 0, 1, 1], [], []>} : vector<128x72xbf16>, vector<72x512xbf16>, vector<128x512xf32> -> vector<128x512xf32>
    %15 = arith.addf %8, %14 : vector<128x512xf32>
    %c0_16 = arith.constant 0 : index
    %c0_17 = arith.constant 0 : index
    %c0_18 = arith.constant 0 : index
    %c2 = arith.constant 2 : index
    %c0_19 = arith.constant 0 : index
    %16 = vector.load %arg2[%c0_16, %c0_17, %c0_18, %c2, %c0_19] : memref<1x1x10x18x72xbf16, #tpu.memory_space<vmem>>, vector<1x1x8x16x72xbf16>
    %17 = vector.shape_cast %16 : vector<1x1x8x16x72xbf16> to vector<8x16x72xbf16>
    %18 = vector.shape_cast %17 : vector<8x16x72xbf16> to vector<128x72xbf16>
    %c2_20 = arith.constant 2 : index
    %c0_21 = arith.constant 0 : index
    %c0_22 = arith.constant 0 : index
    %19 = vector.load %arg3[%c2_20, %c0_21, %c0_22] : memref<9x72x512xbf16, #tpu.memory_space<vmem>>, vector<1x72x512xbf16>
    %20 = vector.shape_cast %19 : vector<1x72x512xbf16> to vector<72x512xbf16>
    %cst_23 = arith.constant dense<0.000000e+00> : vector<128x512xf32>
    %21 = tpu.matmul %18, %20, %cst_23 {dimension_numbers = #tpu.dot_dimension_numbers<[1], [0], [0], [1], [0, 0, 1, 1], [], []>} : vector<128x72xbf16>, vector<72x512xbf16>, vector<128x512xf32> -> vector<128x512xf32>
    %22 = arith.addf %15, %21 : vector<128x512xf32>
    %c0_24 = arith.constant 0 : index
    %c0_25 = arith.constant 0 : index
    %c1_26 = arith.constant 1 : index
    %c0_27 = arith.constant 0 : index
    %c0_28 = arith.constant 0 : index
    %23 = vector.load %arg2[%c0_24, %c0_25, %c1_26, %c0_27, %c0_28] : memref<1x1x10x18x72xbf16, #tpu.memory_space<vmem>>, vector<1x1x8x16x72xbf16>
    %24 = vector.shape_cast %23 : vector<1x1x8x16x72xbf16> to vector<8x16x72xbf16>
    %25 = vector.shape_cast %24 : vector<8x16x72xbf16> to vector<128x72xbf16>
    %c3 = arith.constant 3 : index
    %c0_29 = arith.constant 0 : index
    %c0_30 = arith.constant 0 : index
    %26 = vector.load %arg3[%c3, %c0_29, %c0_30] : memref<9x72x512xbf16, #tpu.memory_space<vmem>>, vector<1x72x512xbf16>
    %27 = vector.shape_cast %26 : vector<1x72x512xbf16> to vector<72x512xbf16>
    %cst_31 = arith.constant dense<0.000000e+00> : vector<128x512xf32>
    %28 = tpu.matmul %25, %27, %cst_31 {dimension_numbers = #tpu.dot_dimension_numbers<[1], [0], [0], [1], [0, 0, 1, 1], [], []>} : vector<128x72xbf16>, vector<72x512xbf16>, vector<128x512xf32> -> vector<128x512xf32>
    %29 = arith.addf %22, %28 : vector<128x512xf32>
    %c0_32 = arith.constant 0 : index
    %c0_33 = arith.constant 0 : index
    %c1_34 = arith.constant 1 : index
    %c1_35 = arith.constant 1 : index
    %c0_36 = arith.constant 0 : index
    %30 = vector.load %arg2[%c0_32, %c0_33, %c1_34, %c1_35, %c0_36] : memref<1x1x10x18x72xbf16, #tpu.memory_space<vmem>>, vector<1x1x8x16x72xbf16>
    %31 = vector.shape_cast %30 : vector<1x1x8x16x72xbf16> to vector<8x16x72xbf16>
    %32 = vector.shape_cast %31 : vector<8x16x72xbf16> to vector<128x72xbf16>
    %c4 = arith.constant 4 : index
    %c0_37 = arith.constant 0 : index
    %c0_38 = arith.constant 0 : index
    %33 = vector.load %arg3[%c4, %c0_37, %c0_38] : memref<9x72x512xbf16, #tpu.memory_space<vmem>>, vector<1x72x512xbf16>
    %34 = vector.shape_cast %33 : vector<1x72x512xbf16> to vector<72x512xbf16>
    %cst_39 = arith.constant dense<0.000000e+00> : vector<128x512xf32>
    %35 = tpu.matmul %32, %34, %cst_39 {dimension_numbers = #tpu.dot_dimension_numbers<[1], [0], [0], [1], [0, 0, 1, 1], [], []>} : vector<128x72xbf16>, vector<72x512xbf16>, vector<128x512xf32> -> vector<128x512xf32>
    %36 = arith.addf %29, %35 : vector<128x512xf32>
    %c0_40 = arith.constant 0 : index
    %c0_41 = arith.constant 0 : index
    %c1_42 = arith.constant 1 : index
    %c2_43 = arith.constant 2 : index
    %c0_44 = arith.constant 0 : index
    %37 = vector.load %arg2[%c0_40, %c0_41, %c1_42, %c2_43, %c0_44] : memref<1x1x10x18x72xbf16, #tpu.memory_space<vmem>>, vector<1x1x8x16x72xbf16>
    %38 = vector.shape_cast %37 : vector<1x1x8x16x72xbf16> to vector<8x16x72xbf16>
    %39 = vector.shape_cast %38 : vector<8x16x72xbf16> to vector<128x72xbf16>
    %c5 = arith.constant 5 : index
    %c0_45 = arith.constant 0 : index
    %c0_46 = arith.constant 0 : index
    %40 = vector.load %arg3[%c5, %c0_45, %c0_46] : memref<9x72x512xbf16, #tpu.memory_space<vmem>>, vector<1x72x512xbf16>
    %41 = vector.shape_cast %40 : vector<1x72x512xbf16> to vector<72x512xbf16>
    %cst_47 = arith.constant dense<0.000000e+00> : vector<128x512xf32>
    %42 = tpu.matmul %39, %41, %cst_47 {dimension_numbers = #tpu.dot_dimension_numbers<[1], [0], [0], [1], [0, 0, 1, 1], [], []>} : vector<128x72xbf16>, vector<72x512xbf16>, vector<128x512xf32> -> vector<128x512xf32>
    %43 = arith.addf %36, %42 : vector<128x512xf32>
    %c0_48 = arith.constant 0 : index
    %c0_49 = arith.constant 0 : index
    %c2_50 = arith.constant 2 : index
    %c0_51 = arith.constant 0 : index
    %c0_52 = arith.constant 0 : index
    %44 = vector.load %arg2[%c0_48, %c0_49, %c2_50, %c0_51, %c0_52] : memref<1x1x10x18x72xbf16, #tpu.memory_space<vmem>>, vector<1x1x8x16x72xbf16>
    %45 = vector.shape_cast %44 : vector<1x1x8x16x72xbf16> to vector<8x16x72xbf16>
    %46 = vector.shape_cast %45 : vector<8x16x72xbf16> to vector<128x72xbf16>
    %c6 = arith.constant 6 : index
    %c0_53 = arith.constant 0 : index
    %c0_54 = arith.constant 0 : index
    %47 = vector.load %arg3[%c6, %c0_53, %c0_54] : memref<9x72x512xbf16, #tpu.memory_space<vmem>>, vector<1x72x512xbf16>
    %48 = vector.shape_cast %47 : vector<1x72x512xbf16> to vector<72x512xbf16>
    %cst_55 = arith.constant dense<0.000000e+00> : vector<128x512xf32>
    %49 = tpu.matmul %46, %48, %cst_55 {dimension_numbers = #tpu.dot_dimension_numbers<[1], [0], [0], [1], [0, 0, 1, 1], [], []>} : vector<128x72xbf16>, vector<72x512xbf16>, vector<128x512xf32> -> vector<128x512xf32>
    %50 = arith.addf %43, %49 : vector<128x512xf32>
    %c0_56 = arith.constant 0 : index
    %c0_57 = arith.constant 0 : index
    %c2_58 = arith.constant 2 : index
    %c1_59 = arith.constant 1 : index
    %c0_60 = arith.constant 0 : index
    %51 = vector.load %arg2[%c0_56, %c0_57, %c2_58, %c1_59, %c0_60] : memref<1x1x10x18x72xbf16, #tpu.memory_space<vmem>>, vector<1x1x8x16x72xbf16>
    %52 = vector.shape_cast %51 : vector<1x1x8x16x72xbf16> to vector<8x16x72xbf16>
    %53 = vector.shape_cast %52 : vector<8x16x72xbf16> to vector<128x72xbf16>
    %c7 = arith.constant 7 : index
    %c0_61 = arith.constant 0 : index
    %c0_62 = arith.constant 0 : index
    %54 = vector.load %arg3[%c7, %c0_61, %c0_62] : memref<9x72x512xbf16, #tpu.memory_space<vmem>>, vector<1x72x512xbf16>
    %55 = vector.shape_cast %54 : vector<1x72x512xbf16> to vector<72x512xbf16>
    %cst_63 = arith.constant dense<0.000000e+00> : vector<128x512xf32>
    %56 = tpu.matmul %53, %55, %cst_63 {dimension_numbers = #tpu.dot_dimension_numbers<[1], [0], [0], [1], [0, 0, 1, 1], [], []>} : vector<128x72xbf16>, vector<72x512xbf16>, vector<128x512xf32> -> vector<128x512xf32>
    %57 = arith.addf %50, %56 : vector<128x512xf32>
    %c0_64 = arith.constant 0 : index
    %c0_65 = arith.constant 0 : index
    %c2_66 = arith.constant 2 : index
    %c2_67 = arith.constant 2 : index
    %c0_68 = arith.constant 0 : index
    %58 = vector.load %arg2[%c0_64, %c0_65, %c2_66, %c2_67, %c0_68] : memref<1x1x10x18x72xbf16, #tpu.memory_space<vmem>>, vector<1x1x8x16x72xbf16>
    %59 = vector.shape_cast %58 : vector<1x1x8x16x72xbf16> to vector<8x16x72xbf16>
    %60 = vector.shape_cast %59 : vector<8x16x72xbf16> to vector<128x72xbf16>
    %c8 = arith.constant 8 : index
    %c0_69 = arith.constant 0 : index
    %c0_70 = arith.constant 0 : index
    %61 = vector.load %arg3[%c8, %c0_69, %c0_70] : memref<9x72x512xbf16, #tpu.memory_space<vmem>>, vector<1x72x512xbf16>
    %62 = vector.shape_cast %61 : vector<1x72x512xbf16> to vector<72x512xbf16>
    %cst_71 = arith.constant dense<0.000000e+00> : vector<128x512xf32>
    %63 = tpu.matmul %60, %62, %cst_71 {dimension_numbers = #tpu.dot_dimension_numbers<[1], [0], [0], [1], [0, 0, 1, 1], [], []>} : vector<128x72xbf16>, vector<72x512xbf16>, vector<128x512xf32> -> vector<128x512xf32>
    %64 = arith.addf %57, %63 : vector<128x512xf32>
    %c0_72 = arith.constant 0 : index
    %c0_73 = arith.constant 0 : index
    %65 = vector.load %arg4[%c0_72, %c0_73] : memref<1x512xf32, #tpu.memory_space<vmem>>, vector<1x512xf32>
    %66 = vector.broadcast %65 : vector<1x512xf32> to vector<128x512xf32>
    %67 = arith.addf %64, %66 : vector<128x512xf32>
    %cst_74 = arith.constant 0.000000e+00 : f32
    %68 = vector.broadcast %cst_74 : f32 to vector<128x512xf32>
    %69 = arith.maximumf %67, %68 : vector<128x512xf32>
    %c8_i32 = arith.constant 8 : i32
    %70 = arith.muli %arg1, %c8_i32 : i32
    %c8_i32_75 = arith.constant 8 : i32
    %71 = arith.subi %c8_i32_75, %70 : i32
    %c8_i32_76 = arith.constant 8 : i32
    %72 = arith.minsi %71, %c8_i32_76 : i32
    %c16_i32 = arith.constant 16 : i32
    %73 = arith.muli %72, %c16_i32 : i32
    %74 = tpu.iota {dimensions = array<i32: 0>} : vector<128x1xi32>
    %75 = vector.broadcast %73 : i32 to vector<128x1xi32>
    %76 = arith.cmpi slt, %74, %75 : vector<128x1xi32>
    %cst_77 = arith.constant 0.000000e+00 : f32
    %77 = vector.shape_cast %76 : vector<128x1xi1> to vector<128x1xi1>
    %78 = vector.broadcast %77 : vector<128x1xi1> to vector<128x512xi1>
    %79 = vector.broadcast %cst_77 : f32 to vector<128x512xf32>
    %80 = arith.select %78, %69, %79 : vector<128x512xi1>, vector<128x512xf32>
    %c0_78 = arith.constant 0 : index
    %c0_79 = arith.constant 0 : index
    %81 = vector.load %arg8[%c0_78, %c0_79] : memref<8x512xf32, #tpu.memory_space<vmem>>, vector<8x512xf32>
    %82 = vector.shape_cast %80 : vector<128x512xf32> to vector<16x8x512xf32>
    %cst_80 = arith.constant dense<0.000000e+00> : vector<8x512xf32>
    %83 = vector.multi_reduction <add>, %82, %cst_80 [0] : vector<16x8x512xf32> to vector<8x512xf32>
    %84 = arith.addf %81, %83 : vector<8x512xf32>
    %c0_81 = arith.constant 0 : index
    %c0_82 = arith.constant 0 : index
    %85 = vector.load %arg8[%c0_81, %c0_82] : memref<8x512xf32, #tpu.memory_space<vmem>>, vector<8x512xf32>
    tpu.vector_store %arg8[%c0_81, %c0_82], %84 {strides = array<i32>} : memref<8x512xf32, #tpu.memory_space<vmem>>, vector<8x512xf32>,
    %c0_i32_83 = arith.constant 0 : i32
    %86 = arith.cmpi eq, %arg1, %c0_i32_83 : i32
    %87 = arith.extui %86 : i1 to i32
    %c0_i32_84 = arith.constant 0 : i32
    %88 = arith.cmpi ne, %87, %c0_i32_84 : i32
    scf.if %88 {
      %c0_85 = arith.constant 0 : index
      %c0_86 = arith.constant 0 : index
      %89 = vector.load %arg8[%c0_85, %c0_86] : memref<8x512xf32, #tpu.memory_space<vmem>>, vector<8x512xf32>
      %cst_87 = arith.constant dense<0.000000e+00> : vector<512xf32>
      %90 = vector.multi_reduction <add>, %89, %cst_87 [0] : vector<8x512xf32> to vector<512xf32>
      %91 = vector.shape_cast %90 : vector<512xf32> to vector<1x512xf32>
      %cst_88 = arith.constant 4.8828125E-4 : f32
      %92 = vector.broadcast %cst_88 : f32 to vector<1x512xf32>
      %93 = arith.mulf %91, %92 : vector<1x512xf32>
      %c0_89 = arith.constant 0 : index
      %c0_90 = arith.constant 0 : index
      %94 = vector.load %arg5[%c0_89, %c0_90] : memref<512x128xf32, #tpu.memory_space<vmem>>, vector<512x128xf32>
      %cst_91 = arith.constant dense<0.000000e+00> : vector<1x128xf32>
      %95 = tpu.matmul %93, %94, %cst_91 {dimension_numbers = #tpu.dot_dimension_numbers<[1], [0], [0], [1], [0, 0, 1, 1], [], []>} : vector<1x512xf32>, vector<512x128xf32>, vector<1x128xf32> -> vector<1x128xf32>
      %c0_92 = arith.constant 0 : index
      %c0_93 = arith.constant 0 : index
      %96 = vector.load %arg6[%c0_92, %c0_93] : memref<1x128xf32, #tpu.memory_space<vmem>>, vector<1x128xf32>
      %97 = arith.addf %95, %96 : vector<1x128xf32>
      %c0_94 = arith.constant 0 : index
      %c0_95 = arith.constant 0 : index
      %98 = vector.load %arg7[%c0_94, %c0_95] : memref<1x128xf32, #tpu.memory_space<vmem>>, vector<1x128xf32>
      tpu.vector_store %arg7[%c0_94, %c0_95], %97 {strides = array<i32>} : memref<1x128xf32, #tpu.memory_space<vmem>>, vector<1x128xf32>,
    } else {
    }
    return
  }
  func.func @transform_0(%arg0: i32, %arg1: i32) -> (i32, i32, i32, i32, i32) {
    %c0_i32 = arith.constant 0 : i32
    %c0_i32_0 = arith.constant 0 : i32
    %c0_i32_1 = arith.constant 0 : i32
    %c0_i32_2 = arith.constant 0 : i32
    return %arg0, %arg1, %c0_i32, %c0_i32_0, %c0_i32_1 : i32, i32, i32, i32, i32
  }
  func.func @transform_1(%arg0: i32, %arg1: i32) -> (i32, i32, i32) {
    %c0_i32 = arith.constant 0 : i32
    %c0_i32_0 = arith.constant 0 : i32
    %c0_i32_1 = arith.constant 0 : i32
    %c0_i32_2 = arith.constant 0 : i32
    return %c0_i32, %c0_i32_0, %c0_i32_1 : i32, i32, i32
  }
  func.func @transform_2(%arg0: i32, %arg1: i32) -> (i32, i32) {
    %c0_i32 = arith.constant 0 : i32
    %c0_i32_0 = arith.constant 0 : i32
    %c0_i32_1 = arith.constant 0 : i32
    return %c0_i32, %c0_i32_0 : i32, i32
  }
  func.func @transform_3(%arg0: i32, %arg1: i32) -> (i32, i32) {
    %c0_i32 = arith.constant 0 : i32
    %c0_i32_0 = arith.constant 0 : i32
    %c0_i32_1 = arith.constant 0 : i32
    return %c0_i32, %c0_i32_0 : i32, i32
  }
  func.func @transform_4(%arg0: i32, %arg1: i32) -> (i32, i32) {
    %c0_i32 = arith.constant 0 : i32
    %c0_i32_0 = arith.constant 0 : i32
    %c0_i32_1 = arith.constant 0 : i32
    return %c0_i32, %c0_i32_0 : i32, i32
  }
  func.func @transform_5(%arg0: i32, %arg1: i32) -> (i32, i32) {
    %c0_i32 = arith.constant 0 : i32
    %c0_i32_0 = arith.constant 0 : i32
    return %c0_i32, %arg0 : i32, i32
  }
}

</mosaic_0001>

<bundles_post_ra>
// kernel: tile.14
= control target key start
LH: loop header
LB: loop body
LE: loop exit
PB: predicated region body
PF: predicated region fallthrough
CT: control target
= control target key end

     0   :  { %s90_s8 = smov 96   ;;  %vm4_vm0 = vcmask 261120   ;;  %s128_s0 = inlined_call_operand.vmem [shape: f32[16,32], index: 0, kind: input, shape index: {}]   ;;  %s129_s1 = inlined_call_operand.hbm [shape: f32[1,512], index: 1, kind: output, shape index: {}]  }
   0x1   :  { %v59_v0 = vld [vmem:[%s128_s0 + $0x3] ss:$4 sm:$0xf]   ;;  %v60_v1 = vld [vmem:[%s128_s0 + $0x2] ss:$4 sm:$0xf]  }
   0x2   :  { %8 = vrot.lane.b32.xlu0 %v59_v0, %s90_s8  ;;  %v61_v2 = vld [vmem:[%s128_s0 + $0x1] ss:$4 sm:$0xf]   ;;  %v3_v3 = vld [vmem:[%s128_s0] ss:$4 sm:$0xf]  }
   0x3   :  { %s91_s0 = smov 32   ;;  %5 = vst.msk [vmem:[#allocation2] ss:$8 sm:$0xf] %vm4_vm0, %v3_v3  }
   0x4   :  { %20 = vrot.lane.b32.xlu1 %v61_v2, %s91_s0 }
   0x5   :  { %2 = vsyncpa [#allocation1], 0  ;;  %s92_s15 = smov 64   ;;  %vm10_vm1 = vcmask 1048320   ;;  %vm16_vm2 = vcmask 785920   ;;  %vm22_vm3 = vcmask 523520  }
   0x6   :  { %14 = vrot.lane.b32.xlu0 %v60_v1, %s92_s15  ;;  %s93_s16 = smov [#allocation0]  }
   0x7   :  { %s51_s17 = sshll.u32 %s93_s16, 4  ;;  %s52_s17 = int_to_ptr.vmem [resolvable:$true] %s51_s17 }
   0x8   :  { %s66_s18 = scalar_lea.vmem %s52_s17, 64  ;;  %p71_p1 = scmp.lt.s32.totalorder %s52_s17, %s52_s17 }
   0x9   :  { %p67_p0 = scmp.ne.s32.totalorder %s52_s17, %s66_s18  ;;  %p72_p2 = scmp.lt.s32.totalorder %s66_s18, %s66_s18 }
   0xb   :  { %p73_p3 = por %p72_p2, %p71_p1 }
   0xd   :  { %p74_p4 = pnand %p73_p3, %p67_p0 }
  0x74   :  { %v9_v4 = vpop.permute.xlu0 %8  }
  0x75   :  { %11 = vst.msk [vmem:[#allocation2] ss:$8 sm:$0xf] %vm10_vm1, %v9_v4  }
  0x76   :  { %v21_v5 = vpop.permute.xlu1 %20  }
  0x78   :  { %v15_v6 = vpop.permute.xlu0 %14  }
  0x79   :  { %17 = vst.msk [vmem:[#allocation2] ss:$8 sm:$0xf] %vm16_vm2, %v15_v6  }
  0x7a   :  { %23 = vst.msk [vmem:[#allocation2] ss:$8 sm:$0xf] %vm22_vm3, %v21_v5  }
  0x81   :  { %v27_v7 = vld [vmem:[#allocation2] sm:$0x1]  ;;  %v31_v8 = vld [vmem:[#allocation2 + $0x8] sm:$0x1]  ;;  %v36_v9 = vld [vmem:[#allocation2 + $0x10] sm:$0x1] }
  0x82   :  { %29 = vst [vmem:[#allocation0] sm:$0x1] %v27_v7  ;;  %34 = vst [vmem:[#allocation0 + $0x1] sm:$0x1] %v31_v8  ;;  %v42_v10 = vld [vmem:[#allocation2 + $0x18] sm:$0x1] }
  0x83   :  { %40 = vst [vmem:[#allocation0 + $0x2] sm:$0x1] %v36_v9  ;;  %46 = vst [vmem:[#allocation0 + $0x3] sm:$0x1] %v42_v10 }
  0x84   :  { %77 = shalt.err (!%p74_p4)
}
  0x85   :  { %s78_s21 = scalar_lea.hbm %s129_s1, 64 }
  0x86   :  { %p79_p5 = scmp.ne.s32.totalorder %s129_s1, %s78_s21  ;;  %p82_p6 = scmp.lt.u32.totalorder %s78_s21, %s129_s1 }
  0x88   :  { %p84_p7 = pnand %p82_p6, %p79_p5 }
  0x8a   :  { %87 = shalt.err (!%p84_p7)
}
  0x8b   :  { %54 = dma.vmem_to_hbm [thread:$0]  %s52_s17, 64, %s129_s1, [#allocation1]  }
  0x8c   :  { %88 = dma.done.wait [#allocation1], 64  }
  0x8d   :  { %89 = vsyncadd [#allocation1], 4294967232 }
  0x8e   :  { %56 = vsyncpa [#allocation1], 1 }

// kernel: pe_model3d_forward.1
= control target key start
LH: loop header
LB: loop body
LE: loop exit
PB: predicated region body
PF: predicated region fallthrough
CT: control target
= control target key end

     0   :  { %s9270_s0 = inlined_call_operand.hbm [shape: bf16[2,1,10,18,72], index: 0, kind: input, shape index: {}]   ;;  %s9271_s1 = inlined_call_operand.hbm [shape: bf16[9,72,512], index: 1, kind: input, shape index: {}]   ;;  %s9272_s2 = inlined_call_operand.hbm [shape: f32[1,512], index: 2, kind: input, shape index: {}]   ;;  %s9273_s3 = inlined_call_operand.hbm [shape: f32[512,128], index: 3, kind: input, shape index: {}]   ;;  %s9274_s4 = inlined_call_operand.hbm [shape: f32[1,128], index: 4, kind: input, shape index: {}]   ;;  %s9275_s5 = inlined_call_operand.hbm [shape: f32[1,256], index: 5, kind: output, shape index: {}]  }
   0x1   :  { %9281 = sst [smem:[#allocation18_spill]] %s9271_s1 }
   0x2   :  { %10 = vsyncpa [#allocation4], 0 }
   0x3   :  { %12 = vsyncpa [#allocation4 + $0x1], 0 }
   0x4   :  { %13 = vsyncpa [#allocation7], 0 }
   0x5   :  { %14 = vsyncpa [#allocation10], 0 }
   0x6   :  { %15 = vsyncpa [#allocation5], 0 }
   0x7   :  { %17 = vsyncpa [#allocation5 + $0x1], 0  ;;  %s7906_s18 = smov 0   ;;  %s7908_s19 = smov 0  }
   0x8   :  { %s7910_s20 = smov 0   ;;  %s7912_s21 = smov 0  }
   0x9   :  { %s7914_s22 = smov 0   ;;  %s7916_s23 = smov 0  }
   0xa LB: > { %s6043_s24 = sadd.s32 4294967295, %s7861_s23   ;;  %s6044_s25 = sadd.s32 4294967294, %s7861_s23   ;;  %s7861_s23 = sphi %s7916_s23, %s23_s23   ;;  %s7857_s22 = sphi %s7914_s22, %s9308_s22   ;;  %s7853_s21 = sphi %s7912_s21, %s9307_s21   ;;  %s7849_s20 = sphi %s7910_s20, %s9306_s20   ;;  %s7845_s19 = sphi %s7908_s19, %s9305_s19   ;;  %s7841_s18 = sphi %s7906_s18, %s9304_s18  }
   0xb   : > { %p57_p0 = scmp.ne.s32.totalorder %s7845_s19, %s7841_s18  ;;  %p7940_p1 = scmp.eq.s32.totalorder %s6043_s24, 0 }
   0xc   : > { %p7944_p2 = scmp.eq.s32.totalorder %s6043_s24, 1  ;;  %p171_p3 = scmp.eq.s32.totalorder %s6044_s25, 1 }
   0xd   : > { %s9282_s26 = scalar_select %p7940_p1, 1, 0 }
   0xe   : > { %s9283_s27 = scalar_select %p7944_p2, 1, 0 }
   0xf   : > { %p7950_p4 = por %p7940_p1, %p57_p0  ;;  %p6045_p5 = scmp.ge.s32.totalorder %s7861_s23, 1 }
  0x10   : > { %p7955_p6 = por %p171_p3, %p57_p0  ;;  %p178_p7 = scmp.lt.s32.totalorder %s7861_s23, 3 }
  0x11   : > { %s9284_s28 = scalar_select %p7950_p4, 1, 0 }
  0x12   : > { %s9285_s29 = scalar_select %p7955_p6, 1, 0 }
  0x13   : > { %p7960_p8 = pnand %p6045_p5, %p178_p7  ;;  %s7863_s6 = smov [#allocation6]  }
  0x14   : > { %9286 = sst [smem:[#allocation17_spill]] %s9285_s29  ;;  %s190_s7 = sshll.u32 %s7863_s6, 4  ;;  %s7964_s7 = int_to_ptr.vmem [resolvable:$true] %s190_s7 }
  0x15   : > { %s9287_s30 = scalar_select %p7960_p8, 1, 0 }
  0x16   : > { %p7263_p9 = pneg %p7960_p8  ;;  %s7864_s9 = smov [#allocation9]  }
  0x17   : > { %s214_s10 = sshll.u32 %s7864_s9, 4  ;;  %s9289_s1 = sld [smem:[#allocation18_spill]]  ;;  %s7975_s10 = int_to_ptr.vmem [resolvable:$true] %s214_s10 }
  0x18   : > { %p7971_p11 = pnand %p7263_p9, %p7940_p1 }
  0x1a   : > { %p7985_p13 = pneg %p7971_p11 }
  0x1d   : > { %s7629_s13 = scalar_lea.hbm %s9289_s1, 20736 }
  0x1e   : > { %p7630_p12 = scmp.ne.s32.totalorder %s9289_s1, %s7629_s13  ;;  %p7636_p5 = scmp.lt.u32.totalorder %s7629_s13, %s9289_s1 }
  0x20   : > { %p7632_p0 = pnand %p7985_p13, %p7630_p12 }
  0x22   : > { %p7633_p3 = pneg %p7632_p0 }
  0x24   : > { %p7638_p7 = pnand %p7636_p5, %p7633_p3 }
  0x26   : > { %7641 = shalt.err (!%p7638_p7)
}
  0x27   : > { %s7642_s25 = scalar_lea.vmem %s7964_s7, 20736  ;;  %p7650_p1 = scmp.lt.s32.totalorder %s7964_s7, %s7964_s7 }
  0x28   : > { %p7643_p9 = scmp.ne.s32.totalorder %s7964_s7, %s7642_s25  ;;  %p7651_p4 = scmp.lt.s32.totalorder %s7642_s25, %s7642_s25 }
  0x2a   : > { %p7645_p10 = pnand %p7643_p9, %p7985_p13  ;;  %p7652_p12 = por %p7651_p4, %p7650_p1 }
  0x2c   : > { %p7646_p6 = pneg %p7645_p10 }
  0x2e   : > { %p7653_p0 = pnand %p7652_p12, %p7646_p6 }
  0x30   : > { %7656 = shalt.err (!%p7653_p0)
}
  0x31   : > { %s7865_s6 = smov 256   ;;  %s7866_s9 = smov 16  }
  0x32   : > { %7266 = dma.hbm_to_vmem [thread:$0]  (!%p7971_p11), %s9289_s1, 20736, %s7964_s7, [#allocation7], %s7865_s6, %s7865_s6, %s7866_s9  }
  0x33   : > { %s7657_s15 = scalar_lea.hbm %s9273_s3, 8192 }
  0x34   : > { %p7658_p1 = scmp.ne.s32.totalorder %s9273_s3, %s7657_s15  ;;  %p7664_p10 = scmp.lt.u32.totalorder %s7657_s15, %s9273_s3 }
  0x36   : > { %p7660_p4 = pnand %p7658_p1, %p7985_p13 }
  0x38   : > { %p7661_p6 = pneg %p7660_p4 }
  0x3a   : > { %p7666_p3 = pnand %p7664_p10, %p7661_p6 }
  0x3c   : > { %7669 = shalt.err (!%p7666_p3)
}
  0x3d   : > { %s7670_s7 = scalar_lea.vmem %s7975_s10, 8192  ;;  %p7678_p12 = scmp.lt.s32.totalorder %s7975_s10, %s7975_s10 }
  0x3e   : > { %p7671_p5 = scmp.ne.s32.totalorder %s7975_s10, %s7670_s7  ;;  %p7679_p0 = scmp.lt.s32.totalorder %s7670_s7, %s7670_s7 }
  0x40   : > { %p7673_p7 = pnand %p7671_p5, %p7985_p13  ;;  %p7680_p1 = por %p7679_p0, %p7678_p12 }
  0x42   : > { %p7674_p9 = pneg %p7673_p7 }
  0x44   : > { %p7681_p4 = pnand %p7680_p1, %p7674_p9 }
  0x46   : > { %7684 = shalt.err (!%p7681_p4)
}
  0x47   : > { %s7867_s6 = smov 128   ;;  %s7868_s29 = smov 8  }
  0x48   : > { %7272 = dma.hbm_to_vmem [thread:$0]  (!%p7971_p11), %s9273_s3, 8192, %s7975_s10, [#allocation10], %s7867_s6, %s7867_s6, %s7868_s29  }
  0x49   : > { %s7869_s12 = smov [#allocation8]   ;;  %s7870_s14 = smov [#allocation11]  }
  0x4a   : > { %s204_s13 = sshll.u32 %s7869_s12, 4  ;;  %s228_s15 = sshll.u32 %s7870_s14, 4  ;;  %s205_s13 = int_to_ptr.vmem [resolvable:$true] %s204_s13  ;;  %s8029_s15 = int_to_ptr.vmem [resolvable:$true] %s228_s15 }
  0x4b   : > { %s7685_s25 = scalar_lea.hbm %s9272_s2, 64 }
  0x4c   : > { %p7686_p6 = scmp.ne.s32.totalorder %s9272_s2, %s7685_s25  ;;  %p7692_p5 = scmp.lt.u32.totalorder %s7685_s25, %s9272_s2 }
  0x4e   : > { %p7688_p10 = pnand %p7686_p6, %p7985_p13 }
  0x50   : > { %p7689_p3 = pneg %p7688_p10 }
  0x52   : > { %p7694_p7 = pnand %p7692_p5, %p7689_p3 }
  0x54   : > { %7697 = shalt.err (!%p7694_p7)
}
  0x55   : > { %s7698_s6 = scalar_lea.vmem %s205_s13, 64  ;;  %p7706_p1 = scmp.lt.s32.totalorder %s205_s13, %s205_s13 }
  0x56   : > { %p7699_p9 = scmp.ne.s32.totalorder %s205_s13, %s7698_s6  ;;  %p7707_p4 = scmp.lt.s32.totalorder %s7698_s6, %s7698_s6 }
  0x58   : > { %p7701_p12 = pnand %p7699_p9, %p7985_p13  ;;  %p7708_p8 = por %p7707_p4, %p7706_p1 }
  0x5a   : > { %p7702_p0 = pneg %p7701_p12 }
  0x5c   : > { %p7709_p2 = pnand %p7708_p8, %p7702_p0 }
  0x5e   : > { %7712 = shalt.err (!%p7709_p2)
}
  0x5f   : > { %7269 = dma.hbm_to_vmem [thread:$0]  (!%p7971_p11), %s9272_s2, 64, %s205_s13, [#allocation7]  }
  0x60   : > { %s7713_s14 = scalar_lea.hbm %s9274_s4, 16 }
  0x61   : > { %p7714_p6 = scmp.ne.s32.totalorder %s9274_s4, %s7713_s14  ;;  %p7720_p2 = scmp.lt.u32.totalorder %s7713_s14, %s9274_s4 }
  0x63   : > { %p7716_p10 = pnand %p7714_p6, %p7985_p13 }
  0x65   : > { %p7717_p3 = pneg %p7716_p10 }
  0x67   : > { %p7722_p8 = pnand %p7720_p2, %p7717_p3 }
  0x69   : > { %7725 = shalt.err (!%p7722_p8)
}
  0x6a   : > { %s7726_s13 = scalar_lea.vmem %s8029_s15, 16  ;;  %s7733_s9 = scalar_lea.vmem %s8029_s15, 32 }
  0x6b   : > { %p7727_p5 = scmp.ne.s32.totalorder %s8029_s15, %s7726_s13  ;;  %p7734_p12 = scmp.lt.s32.totalorder %s8029_s15, %s8029_s15 }
  0x6c   : > { %p7735_p0 = scmp.lt.s32.totalorder %s7733_s9, %s7726_s13 }
  0x6d   : > { %p7729_p7 = pnand %p7727_p5, %p7985_p13 }
  0x6e   : > { %p7736_p1 = por %p7735_p0, %p7734_p12 }
  0x6f   : > { %p7730_p9 = pneg %p7729_p7 }
  0x71   : > { %p7737_p4 = pnand %p7736_p1, %p7730_p9 }
  0x73   : > { %7740 = shalt.err (!%p7737_p4)
}
  0x74   : > { %7275 = dma.hbm_to_vmem [thread:$0]  (!%p7971_p11), %s9274_s4, 16, %s8029_s15, [#allocation10]  }
  0x75   : > { %s35_s16 = sadd.s32 1, %s7857_s22  ;;  %s44_s1 = sadd.s32 1, %s7849_s20 }
  0x76   : > { %p37_p13 = scmp.ge.s32.totalorder %s35_s16, 2  ;;  %p51_p6 = scmp.ne.s32.totalorder %s7849_s20, %s7845_s19 }
  0x77   : > { %p52_p10 = scmp.eq.s32.totalorder %s7861_s23, 0  ;;  %p7288_p3 = scmp.lt.s32.totalorder %s7861_s23, 2 }
  0x78   : > { %s9310_s16 = smov (%p37_p13, %s35_s16), 0  ;;  %p9291_p8 = scmp.ne.s32.totalorder %s9283_s27, 0 }
  0x79   : > { %p53_p2 = por %p52_p10, %p51_p6  ;;  %s39_s29 = ssub.s32 %s7857_s22, %s9310_s16 }
  0x7a   : > { %p8083_p5 = por %p9291_p8, %p51_p6  ;;  %s239_s11 = sand.u32 1, %s7849_s20  }
  0x7b   : > { %p42_p7 = scmp.eq.s32.totalorder %s39_s29, 0  ;;  %s7240_s15 = smul.u32 120, %s239_s11 }
  0x7c   : > { %p8090_p11 = pnand %p7288_p3, %p53_p2  ;;  %s7241_s17 = smul.u32 1920, %s7857_s22 }
  0x7d   : > { %s8095_s14 = scalar_select %p42_p7, %s7849_s20, %s44_s1  }
  0x7e   : > { %s243_s24 = scalar_lea.vmem [#allocation3], %s7240_s15  ;;  %s8101_s13 = scalar_lea.hbm %s9270_s0, %s7241_s17 }
  0x7f   : > { %s252_s25 = sshll.u32 %s243_s24, 4  ;;  %s8105_s9 = scalar_lea.sflag [#allocation4], %s239_s11  ;;  %s8103_s25 = int_to_ptr.vmem [resolvable:$true] %s252_s25 }
  0x80   : > { %s7741_s10 = scalar_lea.hbm %s8101_s13, 1920  ;;  %p7743_p12 = pneg %p8090_p11 }
  0x81   : > { %p7742_p9 = scmp.ne.s32.totalorder %s8101_s13, %s7741_s10  ;;  %s7746_s29 = scalar_lea.hbm %s9270_s0, 3840 }
  0x82   : > { %p7747_p4 = scmp.lt.u32.totalorder %s8101_s13, %s9270_s0  ;;  %p7748_p13 = scmp.lt.u32.totalorder %s7746_s29, %s7741_s10 }
  0x83   : > { %p7744_p0 = pnand %p7743_p12, %p7742_p9  ;;  %p7750_p10 = scmp.lt.u32.totalorder %s7741_s10, %s8101_s13 }
  0x84   : > { %p7749_p6 = por %p7748_p13, %p7747_p4 }
  0x85   : > { %p7745_p1 = pneg %p7744_p0 }
  0x86   : > { %p7751_p3 = por %p7750_p10, %p7749_p6 }
  0x88   : > { %p7752_p2 = pnand %p7751_p3, %p7745_p1 }
  0x8a   : > { %7755 = shalt.err (!%p7752_p2)
}
  0x8b   : > { %s7756_s11 = scalar_lea.vmem %s8103_s25, 1920  ;;  %s7871_s24 = smov [#allocation3]  }
  0x8c   : > { %p7757_p8 = scmp.ne.s32.totalorder %s8103_s25, %s7756_s11  ;;  %s7761_s27 = sshll.u32 %s7871_s24, 4  ;;  %s7762_s27 = int_to_ptr.vmem [resolvable:$false] %s7761_s27 }
  0x8d   : > { %s7763_s7 = scalar_lea.vmem %s7762_s27, 3840  ;;  %p7764_p0 = scmp.lt.s32.totalorder %s8103_s25, %s7762_s27 }
  0x8e   : > { %p7759_p7 = pnand %p7757_p8, %p7743_p12  ;;  %p7765_p4 = scmp.lt.s32.totalorder %s7763_s7, %s7756_s11 }
  0x90   : > { %p7760_p9 = pneg %p7759_p7  ;;  %p7766_p13 = por %p7765_p4, %p7764_p0 }
  0x92   : > { %p7767_p6 = pnand %p7766_p13, %p7760_p9 }
  0x94   : > { %7770 = shalt.err (!%p7767_p6)
}
  0x95   : > { %s7872_s10 = smov 64   ;;  %s7873_s6 = smov 4  }
  0x96   : > { %7279 = dma.hbm_to_vmem [thread:$0]  (!%p8090_p11), %s8101_s13, 1920, %s8103_s25, %s8105_s9, %s7872_s10, %s7872_s10, %s7873_s6  }
  0x97   : > { %p9294_p12 = scmp.ne.s32.totalorder %s9287_s30, 0 }
  0x98   : > { %s8136_s1 = sand.u32 (!%p9294_p12), 1, %s7845_s19   ;;  %p9295_p1 = scmp.ne.s32.totalorder (!%p9294_p12), %s9284_s28, 0 }
  0x99   : > { %264 = sbr.rel (%p9294_p12) target bundleno = 1225 (0x4c9), region = 40  ;;  %s267_s15 = scalar_lea.sflag (!%p9294_p12), [#allocation4], %s8136_s1 }
  0x9a   : > { %s7242_s29 = smul.u32 (!%p9294_p12), 120, %s8136_s1 }
  0x9c   : > { %s8140_s17 = scalar_lea.vmem (!%p9294_p12), [#allocation3], %s7242_s29 }
  0xa0   : > { %7824 = dma.done.wait (%p9295_p1), %s267_s15, 1920  }
  0xa1   : > { %7826 = vsyncadd (%p9295_p1), %s267_s15, 4294965376  ;;  %p9296_p11 = scmp.ne.s32.totalorder %s9282_s26, 0 }
  0xa3   : > { %7828 = dma.done.wait (%p9296_p11), [#allocation7], 20800  }
  0xa4   : > { %7830 = vsyncadd (%p9296_p11), [#allocation7], 4294946496 }
  0xa5   : > { %7832 = dma.done.wait (%p9296_p11), [#allocation10], 8208  }
  0xa6   : > { %7834 = vsyncadd (%p9296_p11), [#allocation10], 4294959088  ;;  %v7874_v0 = vmov 0   ;;  %v7353_v1 = vld [vmem:[#allocation6 + $0x94] ss:$16 sps:$4 sm:$0xff]   ;;  %vm716_vm2 = vcmask 1043456  }
  0xa7   : > { %761 = vmatprep.mubr.bf16.mxu0 %v7874_v0  ;;  %874 = vmatprep.mubr.bf16.mxu1 %v7874_v0  ;;  %v7355_v2 = vld [vmem:[#allocation6 + $0x9c] ss:$16 sps:$4 sm:$0xff]   ;;  %v7357_v3 = vld [vmem:[#allocation6 + $0x90] ss:$16 sps:$4 sm:$0xff]   ;;  %v7358_v4 = vld [vmem:[#allocation6 + $0x98] ss:$16 sps:$4 sm:$0xff]  }
  0xa8   : > { %729 = vmatprep.subr.bf16.mxu0 %v7353_v1  ;;  %842 = vmatprep.subr.bf16.mxu1 %v7355_v2  ;;  %v7359_v5 = vld [vmem:[#allocation6 + $0xb4] ss:$16 sps:$4 sm:$0xff]   ;;  %v7361_v6 = vld [vmem:[#allocation6 + $0xbc] ss:$16 sps:$4 sm:$0xff]   ;;  %v7363_v7 = vld [vmem:[#allocation6 + $0xb0] ss:$16 sps:$4 sm:$0xff]  }
  0xa9   : > { %730 = vmatpush1.bf16.msra.mxu0 %v7357_v3  ;;  %843 = vmatpush1.bf16.msra.mxu1 %v7358_v4  ;;  %v7364_v8 = vld [vmem:[#allocation6 + $0xb8] ss:$16 sps:$4 sm:$0xff]   ;;  %v7365_v9 = vld [vmem:[#allocation6 + $0xd4] ss:$16 sps:$4 sm:$0xff]   ;;  %v7367_v10 = vld [vmem:[#allocation6 + $0xdc] ss:$16 sps:$4 sm:$0xff]  }
  0xaa   : > { %731 = vmatprep.subr.bf16.mxu0 %v7359_v5  ;;  %844 = vmatprep.subr.bf16.mxu1 %v7361_v6  ;;  %v7369_v11 = vld [vmem:[#allocation6 + $0xd0] ss:$16 sps:$4 sm:$0xff]   ;;  %v7370_v12 = vld [vmem:[#allocation6 + $0xd8] ss:$16 sps:$4 sm:$0xff]   ;;  %v7371_v13 = vld [vmem:[#allocation6 + $0xf4] ss:$16 sps:$4 sm:$0xff]  }
  0xab   : > { %vm363_vm0 = vsmask.f32 3328  ;;  %v7373_v14 = vld [vmem:[#allocation6 + $0xfc] ss:$16 sps:$4 sm:$0xff]   ;;  %vm364_vm1 = vsmask.f32 7440 }
  0xac   : > { %v7375_v15 = vld [vmem:[#allocation6 + $0xf0] ss:$16 sps:$4 sm:$0xff]   ;;  %v7376_v16 = vld [vmem:[#allocation6 + $0xf8] ss:$16 sps:$4 sm:$0xff]   ;;  %v8158_v21 = vld [vmem:[%s8140_s17 + $0x4] sm:$0xf] }
  0xad   : > { %732 = vmatpush1.bf16.msra.mxu0 %v7363_v7  ;;  %845 = vmatpush1.bf16.msra.mxu1 %v7364_v8  ;;  %v575_v17 = vld [vmem:[#allocation6 + $0x110] sm:$0xff]  ;;  %v576_v18 = vld [vmem:[#allocation6 + $0x118] sm:$0xff]  ;;  %v376_v28 = vshll.u32 %v8158_v21, 16  ;;  %v380_v29 = vshrl.u32 %v8158_v21, 16  ;;  %vm691_vm3 = vcmask 588800   ;;  %vm8176_vm4 = vmor %vm363_vm0, %vm364_vm1  ;;  %vm1371_vm5 = vcmask 1042432  }
  0xae   : > { %733 = vmatprep.subr.bf16.mxu0 %v7365_v9  ;;  %846 = vmatprep.subr.bf16.mxu1 %v7367_v10  ;;  %v6081_v19 = vcombine.low %v575_v17, %v575_v17  ;;  %v321_v20 = vld [vmem:[%s8140_s17] sm:$0xf]  ;;  %v6082_v22 = vcombine.high %v575_v17, %v575_v17  ;;  %v6083_v23 = vcombine.low %v576_v18, %v576_v18  ;;  %v8161_v24 = vld [vmem:[%s8140_s17 + $0x8] sm:$0x1]  ;;  %v7383_v36 = vld [vmem:[#allocation6 + $0x4] ss:$16 sps:$4 sm:$0xff]  }
  0xaf   : > { %v367_v25 = vshrl.u32 %v321_v20, 16  ;;  %v370_v26 = vshll.u32 %v321_v20, 16  ;;  %v6084_v27 = vcombine.high %v576_v18, %v576_v18  ;;  %v386_v30 = vshll.u32 %v8161_v24, 16  ;;  %v7386_v40 = vld [vmem:[#allocation6 + $0xc] ss:$16 sps:$4 sm:$0xff]   ;;  %s6591_s26 = sshll.u32 %s7853_s21, 4 }
  0xb0   : > { %v718_v31 = vsel %vm716_vm2, %v6081_v19, 0  ;;  %v378_v34 = vrot.slane %v376_v28, 5  ;;  %v382_v35 = vrot.slane %v380_v29, 4  ;;  %v724_v37 = vsel %vm716_vm2, %v6083_v23, 0  ;;  %v323_v41 = vld [vmem:[%s8140_s17 + $0xc] sm:$0xf]  ;;  %s9221_s13 = scalar_lea.hbm %s9275_s5, %s6591_s26 }
  0xb1   : > { %734 = vmatpush1.bf16.msra.mxu0 %v7369_v11  ;;  %847 = vmatpush1.bf16.msra.mxu1 %v7370_v12  ;;  %v369_v32 = vrot.slane %v367_v25, 4  ;;  %v372_v33 = vrot.slane %v370_v26, 5  ;;  %v388_v39 = vrot.slane %v386_v30, 5  ;;  %v8170_v42 = vcombine.low %v321_v20, %v8158_v21  ;;  %v8181_v45 = vld [vmem:[%s8140_s17 + $0x10] sm:$0xf]  ;;  %s311_s28 = scalar_lea.vmem [#allocation12], %s8136_s1 }
  0xb2   : > { %735 = vmatprep.subr.bf16.mxu0 %v7371_v13  ;;  %848 = vmatprep.subr.bf16.mxu1 %v7373_v14  ;;  %v383_v44 = vor.u32 %v382_v35, %v378_v34  ;;  %v8184_v46 = vld [vmem:[%s8140_s17 + $0x14] sm:$0x1]  ;;  %v391_v47 = vshrl.u32 %v323_v41, 16  ;;  %v394_v48 = vshll.u32 %v323_v41, 16  ;;  %v400_v50 = vshll.u32 %v8181_v45, 16  ;;  %s5928_s30 = sshll.u32 %s311_s28, 4  ;;  %s9223_s30 = int_to_ptr.vmem [resolvable:$true] %s5928_s30 }
  0xb3   : > { %v373_v38 = vor.u32 %v372_v33, %v369_v32  ;;  %v404_v51 = vshrl.u32 %v8181_v45, 16  ;;  %v410_v52 = vshll.u32 %v8184_v46, 16  ;;  %v7381_v54 = vld [vmem:[#allocation6] ss:$16 sps:$4 sm:$0xff]   ;;  %v8190_v57 = vcombine.low %v323_v41, %v8181_v45  ;;  %v7384_v59 = vld [vmem:[#allocation6 + $0x8] ss:$16 sps:$4 sm:$0xff]  }
  0xb4   : > { %v384_v53 = vrot.slane %v383_v44, 4  ;;  %v393_v55 = vrot.slane %v391_v47, 4  ;;  %v396_v56 = vrot.slane %v394_v48, 5  ;;  %v402_v60 = vrot.slane %v400_v50, 5  ;;  %v7389_v2 = vld [vmem:[#allocation6 + $0x24] ss:$16 sps:$4 sm:$0xff]  }
  0xb5   : > { %736 = vmatpush1.bf16.msra.mxu0 %v7375_v15  ;;  %849 = vmatpush1.bf16.msra.mxu1 %v7376_v16  ;;  %v374_v49 = vrot.slane %v373_v38, 4  ;;  %v406_v61 = vrot.slane %v404_v51, 4  ;;  %v412_v62 = vrot.slane %v410_v52, 5  ;;  %v7392_v3 = vld [vmem:[#allocation6 + $0x2c] ss:$16 sps:$4 sm:$0xff]   ;;  %vm1372_vm6 = vcmask 1046532  }
  0xb6   : > { %6085 = vmatprep.subr.msk.bf16.mxu0 %vm716_vm2, %v6082_v22  ;;  %6094 = vmatprep.subr.msk.bf16.mxu1 %vm716_vm2, %v6084_v27  ;;  %v389_v63 = vsel %vm8176_vm4, %v384_v53, %v388_v39  ;;  %v397_v1 = vor.u32 %v396_v56, %v393_v55  ;;  %v325_v4 = vld [vmem:[%s8140_s17 + $0x18] sm:$0xf]  ;;  %v8198_v7 = vld [vmem:[%s8140_s17 + $0x1c] sm:$0xf]  ;;  %v8201_v8 = vld [vmem:[%s8140_s17 + $0x20] sm:$0x1] }
  0xb7   : > { %v379_v58 = vsel %vm8176_vm4, %v374_v49, %v378_v34  ;;  %v407_v6 = vor.u32 %v406_v61, %v402_v60  ;;  %v415_v9 = vshrl.u32 %v325_v4, 16  ;;  %v418_v10 = vshll.u32 %v325_v4, 16  ;;  %v7387_v12 = vld [vmem:[#allocation6 + $0x20] ss:$16 sps:$4 sm:$0xff]   ;;  %v7390_v13 = vld [vmem:[#allocation6 + $0x28] ss:$16 sps:$4 sm:$0xff]   ;;  %vm8341_vm7 = vmor %vm1371_vm5, %vm1372_vm6 }
  0xb8   : > { %v6057_v5 = vcombine.low %v379_v58, %v389_v63  ;;  %v398_v11 = vrot.slane %v397_v1, 4  ;;  %v424_v14 = vshll.u32 %v8198_v7, 16  ;;  %v428_v15 = vshrl.u32 %v8198_v7, 16  ;;  %v327_v17 = vld [vmem:[%s8140_s17 + $0x24] sm:$0xf]  ;;  %v353_v1 = vld [vmem:[#allocation6 + $0x80] sm:$0xff] }
  0xb9   : > { %738 = vmatpush1.bf16.msra.mxu0 %v718_v31  ;;  %851 = vmatpush1.bf16.msra.mxu1 %v724_v37  ;;  %v434_v16 = vshll.u32 %v8201_v8, 16  ;;  %v408_v18 = vrot.slane %v407_v6, 4  ;;  %v417_v19 = vrot.slane %v415_v9, 4  ;;  %v420_v20 = vrot.slane %v418_v10, 5  ;;  %v8210_v22 = vld [vmem:[%s8140_s17 + $0x28] sm:$0xf] }
  0xba   : > { %1121 = vmatprep.subr.bf16.mxu0 %v7383_v36  ;;  %1234 = vmatprep.subr.bf16.mxu1 %v7386_v40  ;;  %v439_v23 = vshrl.u32 %v327_v17, 16  ;;  %v403_v25 = vsel %vm8176_vm4, %v398_v11, %v402_v60  ;;  %v8214_v26 = vrot.slane %v424_v14, 5  ;;  %v430_v27 = vrot.slane %v428_v15, 4  ;;  %v8219_v29 = vld [vmem:[%s8140_s17 + $0x2c] sm:$0x1]  ;;  %s5916_s9 = scalar_lea.sflag [#allocation5], %s8136_s1 }
  0xbb   : > { %v8216_v28 = vrot.slane %v434_v16, 5  ;;  %v413_v30 = vsel %vm8176_vm4, %v408_v18, %v412_v62  ;;  %v421_v31 = vor.u32 %v420_v20, %v417_v19  ;;  %v442_v33 = vshll.u32 %v327_v17, 16  ;;  %v7395_v38 = vld [vmem:[#allocation6 + $0x44] ss:$16 sps:$4 sm:$0xff]   ;;  %v7393_v44 = vld [vmem:[#allocation6 + $0x40] ss:$16 sps:$4 sm:$0xff]  }
  0xbc   : > { %6086 = vmatmul.mubr.msk.bf16.vlgmr.msra.gmra.mrb[0].mxu0 %vm691_vm3, %v6057_v5  ;;  %6095 = vmatmul.mubr.msk.bf16.vlgmr.msra.gmra.mrb[0].mxu1 %vm691_vm3, %v6057_v5  ;;  %v441_v32 = vrot.slane %v439_v23, 4  ;;  %v6058_v34 = vcombine.low %v403_v25, %v413_v30  ;;  %v431_v35 = vor.u32 %v430_v27, %v8214_v26  ;;  %v448_v36 = vshll.u32 %v8210_v22, 16  ;;  %v7396_v47 = vld [vmem:[#allocation6 + $0x48] ss:$16 sps:$4 sm:$0xff]   ;;  %v7398_v52 = vld [vmem:[#allocation6 + $0x4c] ss:$16 sps:$4 sm:$0xff]  }
  0xbd   : > { %1122 = vmatpush1.bf16.msra.mxu0 %v7381_v54  ;;  %1235 = vmatpush1.bf16.msra.mxu1 %v7384_v59  ;;  %v452_v37 = vshrl.u32 %v8210_v22, 16  ;;  %v422_v39 = vrot.slane %v421_v31, 4  ;;  %v444_v40 = vrot.slane %v442_v33, 5  ;;  %v458_v41 = vshll.u32 %v8219_v29, 16  ;;  %v8238_v55 = vld [vmem:[%s8140_s17 + $0x30] sm:$0xf] }
  0xbe   : > { %771 = vmatprep.mubr.bf16.mxu0 %v7874_v0  ;;  %884 = vmatprep.mubr.bf16.mxu1 %v7874_v0  ;;  %v8230_v48 = vcombine.low %v325_v4, %v8198_v7  ;;  %v432_v49 = vrot.slane %v431_v35, 4  ;;  %v8232_v50 = vrot.slane %v448_v36, 5  ;;  %v8235_v53 = vcombine.low %v327_v17, %v8210_v22  ;;  %v8241_v56 = vld [vmem:[%s8140_s17 + $0x34] sm:$0xf]  ;;  %v8259_v5 = vld [vmem:[%s8140_s17 + $0x38] sm:$0x1] }
  0xbf   : > { %1123 = vmatprep.subr.bf16.mxu0 %v7389_v2  ;;  %1236 = vmatprep.subr.bf16.mxu1 %v7392_v3  ;;  %v454_v51 = vrot.slane %v452_v37, 4  ;;  %v445_v54 = vor.u32 %v444_v40, %v441_v32  ;;  %v463_v59 = vshrl.u32 %v8238_v55, 16  ;;  %v466_v60 = vshll.u32 %v8238_v55, 16  ;;  %v7401_v63 = vld [vmem:[#allocation6 + $0x64] ss:$16 sps:$4 sm:$0xff]   ;;  %s7771_s11 = scalar_lea.vmem %s9223_s30, 16 }
  0xc0   : > { %v472_v61 = vshll.u32 %v8241_v56, 16  ;;  %v476_v62 = vshrl.u32 %v8241_v56, 16  ;;  %v427_v2 = vsel %vm8176_vm4, %v422_v39, %v8214_v26  ;;  %v437_v3 = vsel %vm8176_vm4, %v432_v49, %v8216_v28  ;;  %v7399_v6 = vld [vmem:[#allocation6 + $0x60] ss:$16 sps:$4 sm:$0xff]   ;;  %v7402_v16 = vld [vmem:[#allocation6 + $0x68] ss:$16 sps:$4 sm:$0xff]   ;;  %p7772_p10 = scmp.ne.s32.totalorder %s9223_s30, %s7771_s11 }
  0xc1   : > { %1124 = vmatpush1.bf16.msra.mxu0 %v7387_v12  ;;  %1237 = vmatpush1.bf16.msra.mxu1 %v7390_v13  ;;  %v455_v58 = vor.u32 %v454_v51, %v8232_v50  ;;  %v460_v4 = vrot.slane %v458_v41, 5  ;;  %v446_v9 = vrot.slane %v445_v54, 4  ;;  %v465_v11 = vrot.slane %v463_v59, 4  ;;  %v8262_v13 = vld [vmem:[%s8140_s17 + $0x3c] sm:$0xf]  ;;  %s7875_s21 = smov [#allocation12]  }
  0xc2   : > { %1125 = vmatprep.subr.bf16.mxu0 %v7395_v38  ;;  %1238 = vmatprep.subr.bf16.mxu1 %v7398_v52  ;;  %v468_v12 = vrot.slane %v466_v60, 5  ;;  %v8264_v14 = vrot.slane %v472_v61, 5  ;;  %v478_v15 = vrot.slane %v476_v62, 4  ;;  %v7404_v17 = vld [vmem:[#allocation6 + $0x6c] ss:$16 sps:$4 sm:$0xff]   ;;  %v6128_v18 = vcombine.high %v353_v1, %v353_v1  ;;  %p7773_p3 = pnand %p7772_p10, %p8083_p5  ;;  %s7775_s24 = sshll.u32 %s7875_s21, 4  ;;  %s7776_s24 = int_to_ptr.vmem [resolvable:$false] %s7775_s24 }
  0xc3   : > { %v456_v10 = vrot.slane %v455_v58, 4  ;;  %v6059_v19 = vcombine.low %v427_v2, %v437_v3  ;;  %v487_v20 = vshrl.u32 %v8262_v13, 16  ;;  %v490_v23 = vshll.u32 %v8262_v13, 16  ;;  %v8270_v27 = vld [vmem:[%s8140_s17 + $0x40] sm:$0xf]  ;;  %s7777_s27 = scalar_lea.vmem %s7776_s24, 32  ;;  %p7778_p8 = scmp.lt.s32.totalorder %s9223_s30, %s7776_s24 }
  0xc4   : > { %6087 = vmatmul.mubr.msk.bf16.gmra.mrb[4].mxu0 %vm691_vm3, %v6058_v34  ;;  %6096 = vmatmul.mubr.msk.bf16.gmra.mrb[4].mxu1 %vm691_vm3, %v6058_v34  ;;  %v469_v25 = vor.u32 %v468_v12, %v465_v11  ;;  %v482_v26 = vshll.u32 %v8259_v5, 16  ;;  %v451_v28 = vsel %vm8176_vm4, %v446_v9, %v8232_v50  ;;  %v479_v31 = vor.u32 %v478_v15, %v8264_v14  ;;  %v333_v32 = vld [vmem:[%s8140_s17 + $0x48] sm:$0xf]  ;;  %v8283_v33 = vld [vmem:[%s8140_s17 + $0x4c] sm:$0xf]  ;;  %v354_v34 = vld [vmem:[#allocation6 + $0x88] sm:$0xff]  ;;  %p7774_p2 = pneg %p7773_p3  ;;  %p7779_p7 = scmp.lt.s32.totalorder %s7777_s27, %s7771_s11 }
  0xc5   : > { %781 = vmatprep.mubr.bf16.mxu0 %v7874_v0  ;;  %894 = vmatprep.mubr.bf16.mxu1 %v7874_v0  ;;  %v461_v30 = vsel %vm8176_vm4, %v456_v10, %v460_v4  ;;  %v489_v35 = vrot.slane %v487_v20, 4  ;;  %v492_v36 = vrot.slane %v490_v23, 5  ;;  %v496_v37 = vshll.u32 %v8270_v27, 16  ;;  %v7412_v39 = vld [vmem:[#allocation6 + $0x124] ss:$16 sps:$4 sm:$0xff]  }
  0xc6   : > { %1126 = vmatpush1.bf16.msra.mxu0 %v7393_v44  ;;  %1239 = vmatpush1.bf16.msra.mxu1 %v7396_v47  ;;  %v500_v38 = vshrl.u32 %v8270_v27, 16  ;;  %v6060_v40 = vcombine.low %v451_v28, %v461_v30  ;;  %v470_v41 = vrot.slane %v469_v25, 4  ;;  %v484_v44 = vrot.slane %v482_v26, 5  ;;  %v8290_v50 = vld [vmem:[%s8140_s17 + $0x44] sm:$0x1]  ;;  %p7780_p9 = por %p7779_p7, %p7778_p8 }
  0xc7   : > { %1127 = vmatprep.subr.bf16.mxu0 %v7401_v63  ;;  %1240 = vmatprep.subr.bf16.mxu1 %v7404_v17  ;;  %v6127_v47 = vcombine.low %v353_v1, %v353_v1  ;;  %v480_v49 = vrot.slane %v479_v31, 4  ;;  %v511_v51 = vshrl.u32 %v333_v32, 16  ;;  %v514_v52 = vshll.u32 %v333_v32, 16  ;;  %v7415_v4 = vld [vmem:[#allocation6 + $0x12c] ss:$16 sps:$4 sm:$0xff]  }
  0xc8   : > { %v6130_v54 = vcombine.high %v354_v34, %v354_v34  ;;  %v520_v58 = vshll.u32 %v8283_v33, 16  ;;  %v524_v59 = vshrl.u32 %v8283_v33, 16  ;;  %v6129_v61 = vcombine.low %v354_v34, %v354_v34  ;;  %v8322_v20 = vld [vmem:[%s8140_s17 + $0x58] sm:$0xf]  ;;  %p7781_p0 = pnand %p7780_p9, %p7774_p2 }
  0xc9   : > { %v1110_v60 = vsel %vm716_vm2, %v6127_v47, 0  ;;  %v493_v62 = vor.u32 %v492_v36, %v489_v35  ;;  %v8295_v63 = vrot.slane %v496_v37, 5  ;;  %v502_v2 = vrot.slane %v500_v38, 4  ;;  %v1347_v36 = vld [vmem:[%s8140_s17] sm:$0xe] }
  0xca   : > { %1128 = vmatpush1.bf16.msra.mxu0 %v7399_v6  ;;  %1241 = vmatpush1.bf16.msra.mxu1 %v7402_v16  ;;  %v1376_v1 = vrot.slane %v8158_v21, 5  ;;  %v1116_v3 = vsel %vm716_vm2, %v6129_v61, 0  ;;  %v475_v6 = vsel %vm8176_vm4, %v470_v41, %v8264_v14  ;;  %v485_v9 = vsel %vm8176_vm4, %v480_v49, %v484_v44  ;;  %v8309_v21 = vld [vmem:[%s8140_s17 + $0x50] sm:$0x1] }
  0xcb   : > { %6131 = vmatprep.subr.msk.bf16.mxu0 %vm716_vm2, %v6128_v18  ;;  %6140 = vmatprep.subr.msk.bf16.mxu1 %vm716_vm2, %v6130_v54  ;;  %v506_v10 = vshll.u32 %v8290_v50, 16  ;;  %v513_v11 = vrot.slane %v511_v51, 4  ;;  %v516_v12 = vrot.slane %v514_v52, 5  ;;  %v8311_v15 = vrot.slane %v520_v58, 5  ;;  %v8355_v58 = vld [vmem:[%s8140_s17 + $0x5c] sm:$0x1] }
  0xcc   : > { %6088 = vmatmul.mubr.msk.bf16.gmra.mrb[8].mxu0 %vm691_vm3, %v6059_v19  ;;  %6097 = vmatmul.mubr.msk.bf16.gmra.mrb[8].mxu1 %vm691_vm3, %v6059_v19  ;;  %v526_v16 = vrot.slane %v524_v59, 4  ;;  %v8315_v14 = vcombine.low %v8238_v55, %v8241_v56  ;;  %v494_v17 = vrot.slane %v493_v62, 4  ;;  %v503_v18 = vor.u32 %v502_v2, %v8295_v63  ;;  %v335_v19 = vld [vmem:[%s8140_s17 + $0x54] sm:$0xf]  ;;  %v1348_v62 = vld [vmem:[%s8140_s17 + $0xc] sm:$0xe] }
  0xcd   : > { %791 = vmatprep.mubr.bf16.mxu0 %v7874_v0  ;;  %904 = vmatprep.mubr.bf16.mxu1 %v7874_v0  ;;  %v8326_v23 = vcombine.low %v8262_v13, %v8270_v27  ;;  %v8329_v25 = vcombine.low %v333_v32, %v8283_v33  ;;  %v8332_v55 = vcombine.low %v335_v19, %v8322_v20  ;;  %v1379_v26 = vrot.slane %v8161_v24, 5 }
  0xce   : > { %1130 = vmatpush1.bf16.msra.mxu0 %v1110_v60  ;;  %1243 = vmatpush1.bf16.msra.mxu1 %v1116_v3  ;;  %v530_v28 = vshll.u32 %v8309_v21, 16  ;;  %v6061_v30 = vcombine.low %v475_v6, %v485_v9  ;;  %v517_v31 = vor.u32 %v516_v12, %v513_v11  ;;  %v527_v34 = vor.u32 %v526_v16, %v8311_v15 }
  0xcf   : > { %1599 = vmatprep.subr.bf16.mxu0 %v7412_v39  ;;  %1712 = vmatprep.subr.bf16.mxu1 %v7415_v4  ;;  %v499_v13 = vsel %vm8176_vm4, %v494_v17, %v8295_v63  ;;  %v504_v32 = vrot.slane %v503_v18, 4  ;;  %v508_v35 = vrot.slane %v506_v10, 5  ;;  %v1378_v24 = vrot.slane %v1376_v1, 4  ;;  %v1349_v17 = vld [vmem:[%s8140_s17 + $0x18] sm:$0xe] }
  0xd0   : > { %v535_v38 = vshrl.u32 %v335_v19, 16  ;;  %v538_v39 = vshll.u32 %v335_v19, 16  ;;  %v6149_v41 = vrot.slane %v1347_v36, 9  ;;  %v8346_v44 = vrot.slane %v530_v28, 5  ;;  %v1350_v18 = vld [vmem:[%s8140_s17 + $0x24] sm:$0xe] }
  0xd1   : > { %v548_v47 = vshrl.u32 %v8322_v20, 16  ;;  %v1380_v49 = vsel %vm8341_vm7, %v1378_v24, %v1379_v26  ;;  %v1383_v51 = vrot.slane %v8181_v45, 5  ;;  %v518_v52 = vrot.slane %v517_v31, 4  ;;  %v1351_v24 = vld [vmem:[%s8140_s17 + $0x30] sm:$0xe] }
  0xd2   : > { %v528_v54 = vrot.slane %v527_v34, 4  ;;  %v1377_v59 = vsel %vm8341_vm7, %v6149_v41, %v1376_v1  ;;  %v1386_v60 = vrot.slane %v8184_v46, 5  ;;  %v509_v45 = vsel %vm8176_vm4, %v504_v32, %v508_v35 }
  0xd3   : > { %v8364_v61 = vcombine.low %v1377_v59, %v1380_v49  ;;  %v1385_v63 = vrot.slane %v1383_v51, 4  ;;  %v1390_v2 = vrot.slane %v8198_v7, 5  ;;  %v537_v3 = vrot.slane %v535_v38, 4  ;;  %v1352_v49 = vld [vmem:[%s8140_s17 + $0x3c] sm:$0xe] }
  0xd4   : > { %6089 = vmatmul.mubr.msk.bf16.gmra.mrb[12].mxu0 %vm691_vm3, %v6060_v40  ;;  %6098 = vmatmul.mubr.msk.bf16.gmra.mrb[12].mxu1 %vm691_vm3, %v6060_v40  ;;  %v544_v40 = vshll.u32 %v8322_v20, 16  ;;  %v540_v4 = vrot.slane %v538_v39, 5  ;;  %v6150_v46 = vrot.slane %v1348_v62, 9  ;;  %v550_v6 = vrot.slane %v548_v47, 4 }
  0xd5   : > { %801 = vmatprep.mubr.bf16.mxu0 %v7874_v0  ;;  %914 = vmatprep.mubr.bf16.mxu1 %v7874_v0  ;;  %v554_v9 = vshll.u32 %v8355_v58, 16  ;;  %v1387_v10 = vsel %vm8341_vm7, %v1385_v63, %v1386_v60  ;;  %v1392_v11 = vrot.slane %v1390_v2, 4  ;;  %v6062_v12 = vcombine.low %v499_v13, %v509_v45 }
  0xd6   : > { %v8368_v1 = vrot.slane %v544_v40, 5  ;;  %v1384_v16 = vsel %vm8341_vm7, %v6150_v46, %v1383_v51  ;;  %v1393_v7 = vrot.slane %v8201_v8, 5  ;;  %v1397_v19 = vrot.slane %v8210_v22, 5 }
  0xd7   : > { %v8379_v26 = vcombine.low %v1384_v16, %v1387_v10  ;;  %v6151_v28 = vrot.slane %v1349_v17, 9  ;;  %v1400_v31 = vrot.slane %v8219_v29, 5  ;;  %v523_v34 = vsel %vm8176_vm4, %v518_v52, %v8311_v15  ;;  %v1354_v17 = vld [vmem:[%s8140_s17 + $0x54] sm:$0xe] }
  0xd8   : > { %v533_v13 = vsel %vm8176_vm4, %v528_v54, %v8346_v44  ;;  %v1394_v8 = vsel %vm8341_vm7, %v1392_v11, %v1393_v7  ;;  %v1399_v32 = vrot.slane %v1397_v19, 4  ;;  %v541_v35 = vor.u32 %v540_v4, %v537_v3 }
  0xd9   : > { %v551_v22 = vor.u32 %v550_v6, %v8368_v1  ;;  %v1391_v36 = vsel %vm8341_vm7, %v6151_v28, %v1390_v2  ;;  %v6153_v39 = vrot.slane %v1351_v24, 9  ;;  %v1404_v40 = vrot.slane %v8241_v56, 5  ;;  %v7428_v24 = vld [vmem:[#allocation6 + $0x168] ss:$16 sps:$4 sm:$0xff]  }
  0xda   : > { %v8398_v15 = vcombine.low %v1391_v36, %v1394_v8  ;;  %v1401_v38 = vsel %vm8341_vm7, %v1399_v32, %v1400_v31  ;;  %v556_v41 = vrot.slane %v554_v9, 5  ;;  %v1407_v47 = vrot.slane %v8259_v5, 5  ;;  %v7422_v8 = vld [vmem:[#allocation6 + $0x14c] ss:$16 sps:$4 sm:$0xff]   ;;  %v7417_v32 = vld [vmem:[#allocation6 + $0x140] ss:$16 sps:$4 sm:$0xff]  }
  0xdb   : > { %v1411_v51 = vrot.slane %v8270_v27, 5  ;;  %v1405_v52 = vsel %vm8341_vm7, %v6153_v39, %v1404_v40  ;;  %v1406_v54 = vrot.slane %v1404_v40, 4  ;;  %v6154_v59 = vrot.slane %v1352_v49, 9  ;;  %v1353_v27 = vld [vmem:[%s8140_s17 + $0x48] sm:$0xe]  ;;  %v1447_v40 = vld [vmem:[#allocation6 + $0x1a0] sm:$0xff] }
  0xdc   : > { %6090 = vmatmul.mubr.msk.bf16.gmra.mrb[16].mxu0 %vm691_vm3, %v6061_v30  ;;  %6099 = vmatmul.mubr.msk.bf16.gmra.mrb[16].mxu1 %vm691_vm3, %v6061_v30  ;;  %v6152_v30 = vrot.slane %v1350_v18, 9  ;;  %v1414_v56 = vrot.slane %v8290_v50, 5  ;;  %v542_v60 = vrot.slane %v541_v35, 4  ;;  %v552_v45 = vrot.slane %v551_v22, 4  ;;  %v7420_v35 = vld [vmem:[#allocation6 + $0x148] ss:$16 sps:$4 sm:$0xff]  }
  0xdd   : > { %811 = vmatprep.mubr.bf16.mxu0 %v7874_v0  ;;  %924 = vmatprep.mubr.bf16.mxu1 %v7874_v0  ;;  %v1413_v62 = vrot.slane %v1411_v51, 4  ;;  %v1418_v63 = vrot.slane %v8283_v33, 5  ;;  %v6063_v2 = vcombine.low %v523_v34, %v533_v13  ;;  %v1408_v3 = vsel %vm8341_vm7, %v1406_v54, %v1407_v47  ;;  %v7427_v22 = vld [vmem:[#allocation6 + $0x164] ss:$16 sps:$4 sm:$0xff]   ;;  %v7430_v36 = vld [vmem:[#allocation6 + $0x16c] ss:$16 sps:$4 sm:$0xff]  }
  0xde   : > { %v1398_v29 = vsel %vm8341_vm7, %v6152_v30, %v1397_v19  ;;  %v1412_v5 = vsel %vm8341_vm7, %v6154_v59, %v1411_v51  ;;  %v1421_v4 = vrot.slane %v8309_v21, 5  ;;  %v8420_v46 = vcombine.low %v1405_v52, %v1408_v3  ;;  %v7438_v39 = vld [vmem:[#allocation6 + $0x18c] ss:$16 sps:$4 sm:$0xff]   ;;  %v7436_v47 = vld [vmem:[#allocation6 + $0x188] ss:$16 sps:$4 sm:$0xff]  }
  0xdf   : > { %v8405_v44 = vcombine.low %v1398_v29, %v1401_v38  ;;  %v1415_v50 = vsel %vm8341_vm7, %v1413_v62, %v1414_v56  ;;  %v6155_v6 = vrot.slane %v1353_v27, 9  ;;  %v1420_v9 = vrot.slane %v1418_v63, 4  ;;  %v7425_v29 = vld [vmem:[#allocation6 + $0x160] ss:$16 sps:$4 sm:$0xff]   ;;  %v7434_v38 = vld [vmem:[#allocation6 + $0x184] ss:$16 sps:$4 sm:$0xff]  }
  0xe0   : > { %v8424_v10 = vcombine.low %v1412_v5, %v1415_v50  ;;  %v557_v16 = vsel %vm8176_vm4, %v552_v45, %v556_v41  ;;  %v1425_v7 = vrot.slane %v8322_v20, 5  ;;  %v6156_v18 = vrot.slane %v1354_v17, 9  ;;  %v7410_v20 = vld [vmem:[#allocation6 + $0x120] ss:$16 sps:$4 sm:$0xff]   ;;  %v7447_v59 = vld [vmem:[#allocation6 + $0x1b4] ss:$16 sps:$4 sm:$0xff]  }
  0xe1   : > { %v1419_v33 = vsel %vm8341_vm7, %v6155_v6, %v1418_v63  ;;  %v1422_v11 = vsel %vm8341_vm7, %v1420_v9, %v1421_v4  ;;  %v1428_v19 = vrot.slane %v8355_v58, 5  ;;  %v7413_v58 = vld [vmem:[#allocation6 + $0x128] ss:$16 sps:$4 sm:$0xff]   ;;  %v7432_v41 = vld [vmem:[#allocation6 + $0x180] ss:$16 sps:$4 sm:$0xff]   ;;  %v6182_v49 = vcombine.high %v1447_v40, %v1447_v40 }
  0xe2   : > { %v8432_v21 = vcombine.low %v1419_v33, %v1422_v11  ;;  %v1427_v28 = vrot.slane %v1425_v7, 4  ;;  %v1426_v31 = vsel %vm8341_vm7, %v6156_v18, %v1425_v7  ;;  %v6181_v51 = vcombine.low %v1447_v40, %v1447_v40  ;;  %v7450_v56 = vld [vmem:[#allocation6 + $0x1bc] ss:$16 sps:$4 sm:$0xff]   ;;  %v7454_v45 = vld [vmem:[#allocation6 + $0x1d8] ss:$16 sps:$4 sm:$0xff]   ;;  %v1923_v5 = vld [vmem:[#allocation6 + $0x230] sm:$0xff] }
  0xe3   : > { %v7462_v62 = vld [vmem:[#allocation6 + $0x1fc] ss:$16 sps:$4 sm:$0xff]   ;;  %v7457_v63 = vld [vmem:[#allocation6 + $0x1f0] ss:$16 sps:$4 sm:$0xff]   ;;  %v7465_v3 = vld [vmem:[#allocation6 + $0x214] ss:$16 sps:$4 sm:$0xff]   ;;  %v6244_v6 = vcombine.high %v1923_v5, %v1923_v5  ;;  %v6243_v9 = vcombine.low %v1923_v5, %v1923_v5 }
  0xe4   : > { %6091 = vmatmul.mubr.msk.bf16.gmra.mrb[20].mxu0 %vm691_vm3, %v6062_v12  ;;  %6100 = vmatmul.mubr.msk.bf16.gmra.mrb[20].mxu1 %vm691_vm3, %v6062_v12  ;;  %v547_v12 = vsel %vm8176_vm4, %v542_v60, %v8368_v1  ;;  %v1429_v34 = vsel %vm8341_vm7, %v1427_v28, %v1428_v19  ;;  %v7419_v1 = vld [vmem:[#allocation6 + $0x144] ss:$16 sps:$4 sm:$0xff]   ;;  %v1924_v27 = vld [vmem:[#allocation6 + $0x238] sm:$0xff]  ;;  %v7463_v4 = vld [vmem:[#allocation6 + $0x210] ss:$16 sps:$4 sm:$0xff]  }
  0xe5   : > { %821 = vmatprep.mubr.bf16.mxu0 %v7874_v0  ;;  %934 = vmatprep.mubr.bf16.mxu1 %v7874_v0  ;;  %v6064_v30 = vcombine.low %v547_v12, %v557_v16  ;;  %v8448_v13 = vcombine.low %v1426_v31, %v1429_v34  ;;  %v7466_v50 = vld [vmem:[#allocation6 + $0x218] ss:$16 sps:$4 sm:$0xff]   ;;  %v6246_v33 = vcombine.high %v1924_v27, %v1924_v27  ;;  %v7476_v16 = vld [vmem:[#allocation6 + $0x244] ss:$16 sps:$4 sm:$0xff]   ;;  %v7479_v17 = vld [vmem:[#allocation6 + $0x24c] ss:$16 sps:$4 sm:$0xff]  }
  0xe6   : > { %v6245_v11 = vcombine.low %v1924_v27, %v1924_v27  ;;  %v7481_v7 = vld [vmem:[#allocation6 + $0x260] ss:$16 sps:$4 sm:$0xff]   ;;  %v7484_v18 = vld [vmem:[#allocation6 + $0x268] ss:$16 sps:$4 sm:$0xff]   ;;  %v7491_v19 = vld [vmem:[#allocation6 + $0x284] ss:$16 sps:$4 sm:$0xff]  }
  0xe7   : > { %v7494_v28 = vld [vmem:[#allocation6 + $0x28c] ss:$16 sps:$4 sm:$0xff]   ;;  %v7489_v31 = vld [vmem:[#allocation6 + $0x280] ss:$16 sps:$4 sm:$0xff]   ;;  %v7492_v34 = vld [vmem:[#allocation6 + $0x288] ss:$16 sps:$4 sm:$0xff]  }
  0xe8   : > { %v2086_v12 = vsel %vm716_vm2, %v6245_v11, 0  ;;  %v7511_v40 = vld [vmem:[#allocation6 + $0x2d4] ss:$16 sps:$4 sm:$0xff]  }
  0xe9   : > { %v7508_v11 = vld [vmem:[%s8140_s17 + $0x60] sm:$0xff]  }
  0xec   : > { %6092 = vmatmul.mubr.msk.bf16.gmra.mrb[24].mxu0 %vm691_vm3, %v6063_v2  ;;  %6101 = vmatmul.mubr.msk.bf16.gmra.mrb[24].mxu1 %vm691_vm3, %v6063_v2  ;;  %v7460_v2 = vld [vmem:[#allocation6 + $0x1f8] ss:$16 sps:$4 sm:$0xff]  }
  0xed   : > { %831 = vmatprep.mubr.bf16.mxu0 %v7874_v0  ;;  %944 = vmatprep.mubr.bf16.mxu1 %v7874_v0 }
  0xf4   : > { %6093 = vmatmul.mubr.msk.bf16.gmra.mrb[28].mxu0 %vm691_vm3, %v6064_v30  ;;  %6102 = vmatmul.mubr.msk.bf16.gmra.mrb[28].mxu1 %vm691_vm3, %v6064_v30  ;;  %v7480_v30 = vld [vmem:[%s8140_s17 + $0x18] sm:$0xff]  }
  0xf5   : > { %1153 = vmatprep.mubr.bf16.mxu0 %v7874_v0  ;;  %1266 = vmatprep.mubr.bf16.mxu1 %v7874_v0 }
  0xfc   : > { %6132 = vmatmul.mubr.msk.bf16.vlgmr.msra.gmra.mrb[0].mxu0 %vm691_vm3, %v8170_v42  ;;  %6141 = vmatmul.mubr.msk.bf16.vlgmr.msra.gmra.mrb[0].mxu1 %vm691_vm3, %v8170_v42  ;;  %v1448_v42 = vld [vmem:[#allocation6 + $0x1a8] sm:$0xff] }
  0xfd   : > { %1600 = vmatpush1.bf16.msra.mxu0 %v7410_v20  ;;  %1713 = vmatpush1.bf16.msra.mxu1 %v7413_v58  ;;  %v6184_v52 = vcombine.high %v1448_v42, %v1448_v42  ;;  %v6183_v54 = vcombine.low %v1448_v42, %v1448_v42  ;;  %v7502_v20 = vld [vmem:[#allocation6 + $0x2ac] ss:$16 sps:$4 sm:$0xff]   ;;  %v2614_v58 = vld [vmem:[#allocation6 + $0x2c0] sm:$0xff] }
  0xfe   : > { %1163 = vmatprep.mubr.bf16.mxu0 %v7874_v0  ;;  %1276 = vmatprep.mubr.bf16.mxu1 %v7874_v0  ;;  %v7514_v42 = vld [vmem:[#allocation6 + $0x2dc] ss:$16 sps:$4 sm:$0xff]  }
  0xff   : > { %1601 = vmatprep.subr.bf16.mxu0 %v7419_v1  ;;  %1714 = vmatprep.subr.bf16.mxu1 %v7422_v8  ;;  %v1594_v60 = vsel %vm716_vm2, %v6183_v54, 0  ;;  %v2615_v1 = vld [vmem:[#allocation6 + $0x2c8] sm:$0xff]  ;;  %v7496_v8 = vld [vmem:[#allocation6 + $0x2a0] ss:$16 sps:$4 sm:$0xff]  }
 0x101   : > { %1602 = vmatpush1.bf16.msra.mxu0 %v7417_v32  ;;  %1715 = vmatpush1.bf16.msra.mxu1 %v7420_v35  ;;  %v7500_v32 = vld [vmem:[#allocation6 + $0x2a8] ss:$16 sps:$4 sm:$0xff]   ;;  %v6314_v35 = vcombine.high %v2614_v58, %v2614_v58 }
 0x102   : > { %1603 = vmatprep.subr.bf16.mxu0 %v7427_v22  ;;  %1716 = vmatprep.subr.bf16.mxu1 %v7430_v36  ;;  %v6313_v22 = vcombine.low %v2614_v58, %v2614_v58  ;;  %v6316_v36 = vcombine.high %v2615_v1, %v2615_v1 }
 0x104   : > { %6133 = vmatmul.mubr.msk.bf16.gmra.mrb[4].mxu0 %vm691_vm3, %v8190_v57  ;;  %6142 = vmatmul.mubr.msk.bf16.gmra.mrb[4].mxu1 %vm691_vm3, %v8190_v57  ;;  %v1588_v57 = vsel %vm716_vm2, %v6181_v51, 0  ;;  %v6265_v51 = vld [vmem:[%s8140_s17 + $0xc] sm:$0xf] }
 0x105   : > { %1173 = vmatprep.mubr.bf16.mxu0 %v7874_v0  ;;  %1286 = vmatprep.mubr.bf16.mxu1 %v7874_v0  ;;  %v2406_v54 = vshrl.u32 %v6265_v51, 16 }
 0x106   : > { %1604 = vmatpush1.bf16.msra.mxu0 %v7425_v29  ;;  %1717 = vmatpush1.bf16.msra.mxu1 %v7428_v24  ;;  %v6315_v29 = vcombine.low %v2615_v1, %v2615_v1  ;;  %v7487_v24 = vld [vmem:[%s8140_s17 + $0x24] sm:$0xff]  }
 0x107   : > { %1605 = vmatprep.subr.bf16.mxu0 %v7434_v38  ;;  %1718 = vmatprep.subr.bf16.mxu1 %v7438_v39  ;;  %v2755_v38 = vsel %vm716_vm2, %v6313_v22, 0  ;;  %v8635_v22 = vld [vmem:[%s8140_s17 + $0x2c] sm:$0x1] }
 0x108   : > { %v2761_v39 = vsel %vm716_vm2, %v6315_v29, 0  ;;  %v6274_v29 = vld [vmem:[%s8140_s17 + $0x30] sm:$0xf] }
 0x10a   : > { %1606 = vmatpush1.bf16.msra.mxu0 %v7432_v41  ;;  %1719 = vmatpush1.bf16.msra.mxu1 %v7436_v47  ;;  %v7488_v41 = vld [vmem:[%s8140_s17 + $0x30] sm:$0xff]   ;;  %v7495_v47 = vld [vmem:[%s8140_s17 + $0x3c] sm:$0xff]  }
 0x10b   : > { %6185 = vmatprep.subr.msk.bf16.mxu0 %vm716_vm2, %v6182_v49  ;;  %6194 = vmatprep.subr.msk.bf16.mxu1 %vm716_vm2, %v6184_v52  ;;  %v7499_v49 = vld [vmem:[%s8140_s17 + $0x48] sm:$0xff]   ;;  %v8590_v52 = vld [vmem:[%s8140_s17 + $0x10] sm:$0xf] }
 0x10c   : > { %6134 = vmatmul.mubr.msk.bf16.gmra.mrb[8].mxu0 %vm691_vm3, %v8230_v48  ;;  %6143 = vmatmul.mubr.msk.bf16.gmra.mrb[8].mxu1 %vm691_vm3, %v8230_v48  ;;  %v7445_v48 = vld [vmem:[#allocation6 + $0x1b0] ss:$16 sps:$4 sm:$0xff]  }
 0x10d   : > { %1183 = vmatprep.mubr.bf16.mxu0 %v7874_v0  ;;  %1296 = vmatprep.mubr.bf16.mxu1 %v7874_v0 }
 0x10e   : > { %1608 = vmatpush1.bf16.msra.mxu0 %v1588_v57  ;;  %1721 = vmatpush1.bf16.msra.mxu1 %v1594_v60  ;;  %v2419_v57 = vshrl.u32 %v8590_v52, 16  ;;  %v6268_v60 = vld [vmem:[%s8140_s17 + $0x18] sm:$0xf] }
 0x10f   : > { %2091 = vmatprep.subr.bf16.mxu0 %v7447_v59  ;;  %2204 = vmatprep.subr.bf16.mxu1 %v7450_v56  ;;  %v2409_v59 = vshll.u32 %v6265_v51, 16  ;;  %v2415_v56 = vshll.u32 %v8590_v52, 16  ;;  %v2478_v51 = vshrl.u32 %v6274_v29, 16 }
 0x114   : > { %6135 = vmatmul.mubr.msk.bf16.gmra.mrb[12].mxu0 %vm691_vm3, %v8235_v53  ;;  %6144 = vmatmul.mubr.msk.bf16.gmra.mrb[12].mxu1 %vm691_vm3, %v8235_v53  ;;  %v7448_v53 = vld [vmem:[#allocation6 + $0x1b8] ss:$16 sps:$4 sm:$0xff]  }
 0x115   : > { %1193 = vmatprep.mubr.bf16.mxu0 %v7874_v0  ;;  %1306 = vmatprep.mubr.bf16.mxu1 %v7874_v0 }
 0x11c   : > { %6136 = vmatmul.mubr.msk.bf16.gmra.mrb[16].mxu0 %vm691_vm3, %v8315_v14  ;;  %6145 = vmatmul.mubr.msk.bf16.gmra.mrb[16].mxu1 %vm691_vm3, %v8315_v14  ;;  %v7453_v14 = vld [vmem:[#allocation6 + $0x1d4] ss:$16 sps:$4 sm:$0xff]  }
 0x11d   : > { %1203 = vmatprep.mubr.bf16.mxu0 %v7874_v0  ;;  %1316 = vmatprep.mubr.bf16.mxu1 %v7874_v0 }
 0x124   : > { %6137 = vmatmul.mubr.msk.bf16.gmra.mrb[20].mxu0 %vm691_vm3, %v8326_v23  ;;  %6146 = vmatmul.mubr.msk.bf16.gmra.mrb[20].mxu1 %vm691_vm3, %v8326_v23  ;;  %v7456_v23 = vld [vmem:[#allocation6 + $0x1dc] ss:$16 sps:$4 sm:$0xff]  }
 0x125   : > { %1213 = vmatprep.mubr.bf16.mxu0 %v7874_v0  ;;  %1326 = vmatprep.mubr.bf16.mxu1 %v7874_v0 }
 0x12c   : > { %6138 = vmatmul.mubr.msk.bf16.gmra.mrb[24].mxu0 %vm691_vm3, %v8329_v25  ;;  %6147 = vmatmul.mubr.msk.bf16.gmra.mrb[24].mxu1 %vm691_vm3, %v8329_v25  ;;  %v7451_v25 = vld [vmem:[#allocation6 + $0x1d0] ss:$16 sps:$4 sm:$0xff]  }
 0x12d   : > { %1223 = vmatprep.mubr.bf16.mxu0 %v7874_v0  ;;  %1336 = vmatprep.mubr.bf16.mxu1 %v7874_v0 }
 0x134   : > { %6139 = vmatmul.mubr.msk.bf16.gmra.mrb[28].mxu0 %vm691_vm3, %v8332_v55  ;;  %6148 = vmatmul.mubr.msk.bf16.gmra.mrb[28].mxu1 %vm691_vm3, %v8332_v55  ;;  %v7459_v55 = vld [vmem:[#allocation6 + $0x1f4] ss:$16 sps:$4 sm:$0xff]  }
 0x135   : > { %1631 = vmatprep.mubr.bf16.mxu0 %v7874_v0  ;;  %1744 = vmatprep.mubr.bf16.mxu1 %v7874_v0 }
 0x13c   : > { %6186 = vmatmul.mubr.msk.bf16.vlgmr.msra.gmra.mrb[0].mxu0 %vm691_vm3, %v8364_v61  ;;  %6195 = vmatmul.mubr.msk.bf16.vlgmr.msra.gmra.mrb[0].mxu1 %vm691_vm3, %v8364_v61  ;;  %v7468_v61 = vld [vmem:[#allocation6 + $0x21c] ss:$16 sps:$4 sm:$0xff]  }
 0x13d   : > { %2092 = vmatpush1.bf16.msra.mxu0 %v7445_v48  ;;  %2205 = vmatpush1.bf16.msra.mxu1 %v7448_v53  ;;  %v8600_v48 = vld [vmem:[%s8140_s17 + $0x1c] sm:$0xf]  ;;  %v7503_v53 = vld [vmem:[%s8140_s17 + $0x54] sm:$0xff]  }
 0x13e   : > { %1641 = vmatprep.mubr.bf16.mxu0 %v7874_v0  ;;  %1754 = vmatprep.mubr.bf16.mxu1 %v7874_v0 }
 0x13f   : > { %2093 = vmatprep.subr.bf16.mxu0 %v7453_v14  ;;  %2206 = vmatprep.subr.bf16.mxu1 %v7456_v23  ;;  %v2408_v14 = vrot.slane %v2406_v54, 4  ;;  %v2411_v23 = vrot.slane %v2409_v59, 5  ;;  %v2481_v54 = vshll.u32 %v6274_v29, 16 }
 0x141   : > { %2094 = vmatpush1.bf16.msra.mxu0 %v7451_v25  ;;  %2207 = vmatpush1.bf16.msra.mxu1 %v7454_v45  ;;  %v2417_v25 = vrot.slane %v2415_v56, 5  ;;  %v2421_v45 = vrot.slane %v2419_v57, 4  ;;  %v7515_v57 = vld [vmem:[#allocation6 + $0x2f0] ss:$16 sps:$4 sm:$0xff]  }
 0x142   : > { %2095 = vmatprep.subr.bf16.mxu0 %v7459_v55  ;;  %2208 = vmatprep.subr.bf16.mxu1 %v7462_v62  ;;  %v8604_v55 = vld [vmem:[%s8140_s17 + $0x14] sm:$0x1]  ;;  %v2430_v62 = vshrl.u32 %v6268_v60, 16 }
 0x143   : > { %v2422_v5 = vor.u32 %v2421_v45, %v2417_v25  ;;  %v2425_v27 = vshll.u32 %v8604_v55, 16 }
 0x144   : > { %6187 = vmatmul.mubr.msk.bf16.gmra.mrb[4].mxu0 %vm691_vm3, %v8379_v26  ;;  %6196 = vmatmul.mubr.msk.bf16.gmra.mrb[4].mxu1 %vm691_vm3, %v8379_v26  ;;  %v2080_v26 = vsel %vm716_vm2, %v6243_v9, 0 }
 0x145   : > { %1651 = vmatprep.mubr.bf16.mxu0 %v7874_v0  ;;  %1764 = vmatprep.mubr.bf16.mxu1 %v7874_v0 }
 0x146   : > { %2096 = vmatpush1.bf16.msra.mxu0 %v7457_v63  ;;  %2209 = vmatpush1.bf16.msra.mxu1 %v7460_v2  ;;  %v2433_v63 = vshll.u32 %v6268_v60, 16  ;;  %v2439_v2 = vshll.u32 %v8600_v48, 16  ;;  %v7518_v60 = vld [vmem:[#allocation6 + $0x2f8] ss:$16 sps:$4 sm:$0xff]  }
 0x147   : > { %2097 = vmatprep.subr.bf16.mxu0 %v7465_v3  ;;  %2210 = vmatprep.subr.bf16.mxu1 %v7468_v61  ;;  %v2443_v3 = vshrl.u32 %v8600_v48, 16  ;;  %v2412_v61 = vor.u32 %v2411_v23, %v2408_v14  ;;  %v7523_v14 = vld [vmem:[#allocation6 + $0x314] ss:$16 sps:$4 sm:$0xff]   ;;  %v7526_v23 = vld [vmem:[#allocation6 + $0x31c] ss:$16 sps:$4 sm:$0xff]  }
 0x149   : > { %v2445_v9 = vrot.slane %v2443_v3, 4  ;;  %v2480_v3 = vrot.slane %v2478_v51, 4 }
 0x14a   : > { %2098 = vmatpush1.bf16.msra.mxu0 %v7463_v4  ;;  %2211 = vmatpush1.bf16.msra.mxu1 %v7466_v50  ;;  %v2432_v4 = vrot.slane %v2430_v62, 4  ;;  %v2435_v50 = vrot.slane %v2433_v63, 5 }
 0x14b   : > { %6247 = vmatprep.subr.msk.bf16.mxu0 %vm716_vm2, %v6244_v6  ;;  %6256 = vmatprep.subr.msk.bf16.mxu1 %vm716_vm2, %v6246_v33  ;;  %v2441_v6 = vrot.slane %v2439_v2, 5  ;;  %v8614_v33 = vld [vmem:[%s8140_s17 + $0x20] sm:$0x1] }
 0x14c   : > { %6188 = vmatmul.mubr.msk.bf16.gmra.mrb[8].mxu0 %vm691_vm3, %v8398_v15  ;;  %6197 = vmatmul.mubr.msk.bf16.gmra.mrb[8].mxu1 %vm691_vm3, %v8398_v15  ;;  %v7473_v15 = vld [vmem:[%s8140_s17 + $0xc] sm:$0xff]  }
 0x14d   : > { %1661 = vmatprep.mubr.bf16.mxu0 %v7874_v0  ;;  %1774 = vmatprep.mubr.bf16.mxu1 %v7874_v0 }
 0x14e   : > { %2100 = vmatpush1.bf16.msra.mxu0 %v2080_v26  ;;  %2213 = vmatpush1.bf16.msra.mxu1 %v2086_v12  ;;  %v6271_v26 = vld [vmem:[%s8140_s17 + $0x24] sm:$0xf]  ;;  %v8619_v12 = vld [vmem:[%s8140_s17 + $0x28] sm:$0xf] }
 0x14f   : > { %2766 = vmatprep.subr.bf16.mxu0 %v7476_v16  ;;  %2879 = vmatprep.subr.bf16.mxu1 %v7479_v17  ;;  %v2413_v16 = vrot.slane %v2412_v61, 4  ;;  %v2423_v17 = vrot.slane %v2422_v5, 4  ;;  %v2483_v61 = vrot.slane %v2481_v54, 5 }
 0x154   : > { %6189 = vmatmul.mubr.msk.bf16.gmra.mrb[12].mxu0 %vm691_vm3, %v8405_v44  ;;  %6198 = vmatmul.mubr.msk.bf16.gmra.mrb[12].mxu1 %vm691_vm3, %v8405_v44  ;;  %v7474_v44 = vld [vmem:[#allocation6 + $0x240] ss:$16 sps:$4 sm:$0xff]  }
 0x155   : > { %1671 = vmatprep.mubr.bf16.mxu0 %v7874_v0  ;;  %1784 = vmatprep.mubr.bf16.mxu1 %v7874_v0 }
 0x15c   : > { %6190 = vmatmul.mubr.msk.bf16.gmra.mrb[16].mxu0 %vm691_vm3, %v8420_v46  ;;  %6199 = vmatmul.mubr.msk.bf16.gmra.mrb[16].mxu1 %vm691_vm3, %v8420_v46  ;;  %v7477_v46 = vld [vmem:[#allocation6 + $0x248] ss:$16 sps:$4 sm:$0xff]  }
 0x15d   : > { %1681 = vmatprep.mubr.bf16.mxu0 %v7874_v0  ;;  %1794 = vmatprep.mubr.bf16.mxu1 %v7874_v0 }
 0x164   : > { %6191 = vmatmul.mubr.msk.bf16.gmra.mrb[20].mxu0 %vm691_vm3, %v8424_v10  ;;  %6200 = vmatmul.mubr.msk.bf16.gmra.mrb[20].mxu1 %vm691_vm3, %v8424_v10  ;;  %v7483_v10 = vld [vmem:[#allocation6 + $0x264] ss:$16 sps:$4 sm:$0xff]  }
 0x165   : > { %1691 = vmatprep.mubr.bf16.mxu0 %v7874_v0  ;;  %1804 = vmatprep.mubr.bf16.mxu1 %v7874_v0 }
 0x16c   : > { %6192 = vmatmul.mubr.msk.bf16.gmra.mrb[24].mxu0 %vm691_vm3, %v8432_v21  ;;  %6201 = vmatmul.mubr.msk.bf16.gmra.mrb[24].mxu1 %vm691_vm3, %v8432_v21  ;;  %v7486_v21 = vld [vmem:[#allocation6 + $0x26c] ss:$16 sps:$4 sm:$0xff]  }
 0x16d   : > { %1701 = vmatprep.mubr.bf16.mxu0 %v7874_v0  ;;  %1814 = vmatprep.mubr.bf16.mxu1 %v7874_v0 }
 0x174   : > { %6193 = vmatmul.mubr.msk.bf16.gmra.mrb[28].mxu0 %vm691_vm3, %v8448_v13  ;;  %6202 = vmatmul.mubr.msk.bf16.gmra.mrb[28].mxu1 %vm691_vm3, %v8448_v13  ;;  %v7498_v13 = vld [vmem:[#allocation6 + $0x2a4] ss:$16 sps:$4 sm:$0xff]  }
 0x175   : > { %2123 = vmatprep.mubr.bf16.mxu0 %v7874_v0  ;;  %2236 = vmatprep.mubr.bf16.mxu1 %v7874_v0 }
 0x17c   : > { %6248 = vmatmul.mubr.msk.bf16.vlgmr.msra.gmra.mrb[0].mxu0 %vm691_vm3, %v7473_v15  ;;  %6257 = vmatmul.mubr.msk.bf16.vlgmr.msra.gmra.mrb[0].mxu1 %vm691_vm3, %v7473_v15  ;;  %v2427_v15 = vrot.slane %v2425_v27, 5 }
 0x17d   : > { %2767 = vmatpush1.bf16.msra.mxu0 %v7474_v44  ;;  %2880 = vmatpush1.bf16.msra.mxu1 %v7477_v46  ;;  %v2436_v44 = vor.u32 %v2435_v50, %v2432_v4  ;;  %v2446_v46 = vor.u32 %v2445_v9, %v2441_v6  ;;  %v8660_v4 = vld [vmem:[%s8140_s17 + $0x38] sm:$0x1] }
 0x17e   : > { %2133 = vmatprep.mubr.bf16.mxu0 %v7874_v0  ;;  %2246 = vmatprep.mubr.bf16.mxu1 %v7874_v0 }
 0x17f   : > { %2768 = vmatprep.subr.bf16.mxu0 %v7483_v10  ;;  %2881 = vmatprep.subr.bf16.mxu1 %v7486_v21  ;;  %v2449_v10 = vshll.u32 %v8614_v33, 16  ;;  %v2454_v21 = vshrl.u32 %v6271_v26, 16 }
 0x181   : > { %2769 = vmatpush1.bf16.msra.mxu0 %v7481_v7  ;;  %2882 = vmatpush1.bf16.msra.mxu1 %v7484_v18  ;;  %v2457_v7 = vshll.u32 %v6271_v26, 16  ;;  %v2463_v18 = vshll.u32 %v8619_v12, 16  ;;  %v7521_v26 = vld [vmem:[#allocation6 + $0x310] ss:$16 sps:$4 sm:$0xff]  }
 0x182   : > { %2770 = vmatprep.subr.bf16.mxu0 %v7491_v19  ;;  %2883 = vmatprep.subr.bf16.mxu1 %v7494_v28  ;;  %v2467_v19 = vshrl.u32 %v8619_v12, 16  ;;  %v2418_v28 = vsel %vm8176_vm4, %v2413_v16, %v2417_v25  ;;  %v8655_v25 = vld [vmem:[%s8140_s17 + $0x40] sm:$0xf] }
 0x183   : > { %v2459_v58 = vrot.slane %v2457_v7, 5  ;;  %v8632_v1 = vrot.slane %v2463_v18, 5  ;;  %v2511_v9 = vshll.u32 %v8655_v25, 16  ;;  %v7524_v16 = vld [vmem:[#allocation6 + $0x318] ss:$16 sps:$4 sm:$0xff]   ;;  %v2497_v18 = vshll.u32 %v8660_v4, 16 }
 0x184   : > { %6249 = vmatmul.mubr.msk.bf16.gmra.mrb[4].mxu0 %vm691_vm3, %v7480_v30  ;;  %6258 = vmatmul.mubr.msk.bf16.gmra.mrb[4].mxu1 %vm691_vm3, %v7480_v30  ;;  %v2428_v30 = vsel %vm8176_vm4, %v2423_v17, %v2427_v15  ;;  %v7529_v15 = vld [vmem:[#allocation6 + $0x334] ss:$16 sps:$4 sm:$0xff]  }
 0x185   : > { %2143 = vmatprep.mubr.bf16.mxu0 %v7874_v0  ;;  %2256 = vmatprep.mubr.bf16.mxu1 %v7874_v0 }
 0x186   : > { %2771 = vmatpush1.bf16.msra.mxu0 %v7489_v31  ;;  %2884 = vmatpush1.bf16.msra.mxu1 %v7492_v34  ;;  %v2437_v31 = vrot.slane %v2436_v44, 4  ;;  %v2447_v34 = vrot.slane %v2446_v46, 4  ;;  %v7532_v44 = vld [vmem:[#allocation6 + $0x33c] ss:$16 sps:$4 sm:$0xff]   ;;  %v3161_v46 = vld [vmem:[#allocation6 + $0x350] sm:$0xff] }
 0x187   : > { %2772 = vmatprep.subr.bf16.mxu0 %v7498_v13  ;;  %2885 = vmatprep.subr.bf16.mxu1 %v7502_v20  ;;  %v2451_v13 = vrot.slane %v2449_v10, 5  ;;  %v2456_v20 = vrot.slane %v2454_v21, 4  ;;  %v2484_v21 = vor.u32 %v2483_v61, %v2480_v3 }
 0x18a   : > { %2773 = vmatpush1.bf16.msra.mxu0 %v7496_v8  ;;  %2886 = vmatpush1.bf16.msra.mxu1 %v7500_v32  ;;  %v2469_v8 = vrot.slane %v2467_v19, 4  ;;  %v6289_v32 = vcombine.low %v2418_v28, %v2428_v30  ;;  %v3162_v19 = vld [vmem:[#allocation6 + $0x358] sm:$0xff] }
 0x18b   : > { %6317 = vmatprep.subr.msk.bf16.mxu0 %vm716_vm2, %v6314_v35  ;;  %6326 = vmatprep.subr.msk.bf16.mxu1 %vm716_vm2, %v6316_v36  ;;  %v7509_v35 = vld [vmem:[#allocation6 + $0x2d0] ss:$16 sps:$4 sm:$0xff]   ;;  %v7512_v36 = vld [vmem:[#allocation6 + $0x2d8] ss:$16 sps:$4 sm:$0xff]   ;;  %v6377_v29 = vcombine.low %v3162_v19, %v3162_v19 }
 0x18c   : > { %6250 = vmatmul.mubr.msk.bf16.gmra.mrb[8].mxu0 %vm691_vm3, %v7487_v24  ;;  %6259 = vmatmul.mubr.msk.bf16.gmra.mrb[8].mxu1 %vm691_vm3, %v7487_v24  ;;  %v8639_v24 = vld [vmem:[%s8140_s17 + $0x34] sm:$0xf] }
 0x18d   : > { %2153 = vmatprep.mubr.bf16.mxu0 %v7874_v0  ;;  %2266 = vmatprep.mubr.bf16.mxu1 %v7874_v0  ;;  %v2487_v59 = vshll.u32 %v8639_v24, 16  ;;  %v2491_v56 = vshrl.u32 %v8639_v24, 16 }
 0x18e   : > { %2775 = vmatpush1.bf16.msra.mxu0 %v2755_v38  ;;  %2888 = vmatpush1.bf16.msra.mxu1 %v2761_v39  ;;  %v2442_v38 = vsel %vm8176_vm4, %v2437_v31, %v2441_v6  ;;  %v2452_v39 = vsel %vm8176_vm4, %v2447_v34, %v2451_v13  ;;  %v8675_v31 = vrot.slane %v2511_v9, 5  ;;  %v8678_v13 = vld [vmem:[%s8140_s17 + $0x44] sm:$0x1]  ;;  %v8702_v9 = vld [vmem:[%s8140_s17 + $0x50] sm:$0x1] }
 0x18f   : > { %3313 = vmatprep.subr.bf16.mxu0 %v7511_v40  ;;  %3426 = vmatprep.subr.bf16.mxu1 %v7514_v42  ;;  %v7517_v40 = vld [vmem:[#allocation6 + $0x2f4] ss:$16 sps:$4 sm:$0xff]   ;;  %v7520_v42 = vld [vmem:[#allocation6 + $0x2fc] ss:$16 sps:$4 sm:$0xff]   ;;  %v6290_v45 = vcombine.low %v2442_v38, %v2452_v39  ;;  %v8657_v5 = vrot.slane %v2487_v59, 5  ;;  %v2493_v27 = vrot.slane %v2491_v56, 4 }
 0x190   : > { %v2485_v39 = vrot.slane %v2484_v21, 4 }
 0x191   : > { %v2494_v7 = vor.u32 %v2493_v27, %v8657_v5 }
 0x194   : > { %6251 = vmatmul.mubr.msk.bf16.gmra.mrb[12].mxu0 %vm691_vm3, %v7488_v41  ;;  %6260 = vmatmul.mubr.msk.bf16.gmra.mrb[12].mxu1 %vm691_vm3, %v7488_v41  ;;  %v2460_v41 = vor.u32 %v2459_v58, %v2456_v20  ;;  %v7527_v20 = vld [vmem:[#allocation6 + $0x330] ss:$16 sps:$4 sm:$0xff]   ;;  %v7530_v58 = vld [vmem:[#allocation6 + $0x338] ss:$16 sps:$4 sm:$0xff]  }
 0x195   : > { %2163 = vmatprep.mubr.bf16.mxu0 %v7874_v0  ;;  %2276 = vmatprep.mubr.bf16.mxu1 %v7874_v0 }
 0x196   : > { %v2461_v62 = vrot.slane %v2460_v41, 4 }
 0x198   : > { %v2466_v17 = vsel %vm8176_vm4, %v2461_v62, %v8632_v1 }
 0x19c   : > { %6252 = vmatmul.mubr.msk.bf16.gmra.mrb[16].mxu0 %vm691_vm3, %v7495_v47  ;;  %6261 = vmatmul.mubr.msk.bf16.gmra.mrb[16].mxu1 %vm691_vm3, %v7495_v47  ;;  %v2470_v47 = vor.u32 %v2469_v8, %v8632_v1  ;;  %v6376_v1 = vcombine.high %v3161_v46, %v3161_v46  ;;  %v6280_v8 = vld [vmem:[%s8140_s17 + $0x48] sm:$0xf] }
 0x19d   : > { %2173 = vmatprep.mubr.bf16.mxu0 %v7874_v0  ;;  %2286 = vmatprep.mubr.bf16.mxu1 %v7874_v0  ;;  %v2526_v51 = vshrl.u32 %v6280_v8, 16  ;;  %v2529_v54 = vshll.u32 %v6280_v8, 16  ;;  %v6286_v8 = vld [vmem:[%s8140_s17 + $0x60] sm:$0xf] }
 0x19e   : > { %v2471_v63 = vrot.slane %v2470_v47, 4 }
 0x19f   : > { %v2528_v3 = vrot.slane %v2526_v51, 4  ;;  %v2531_v61 = vrot.slane %v2529_v54, 5 }
 0x1a4   : > { %6253 = vmatmul.mubr.msk.bf16.gmra.mrb[20].mxu0 %vm691_vm3, %v7499_v49  ;;  %6262 = vmatmul.mubr.msk.bf16.gmra.mrb[20].mxu1 %vm691_vm3, %v7499_v49  ;;  %v2473_v49 = vshll.u32 %v8635_v22, 16 }
 0x1a5   : > { %2183 = vmatprep.mubr.bf16.mxu0 %v7874_v0  ;;  %2296 = vmatprep.mubr.bf16.mxu1 %v7874_v0 }
 0x1a6   : > { %v2475_v2 = vrot.slane %v2473_v49, 5  ;;  %v2521_v49 = vshll.u32 %v8678_v13, 16 }
 0x1a8   : > { %v2476_v10 = vsel %vm8176_vm4, %v2471_v63, %v2475_v2  ;;  %v2523_v2 = vrot.slane %v2521_v49, 5 }
 0x1a9   : > { %v6291_v38 = vcombine.low %v2466_v17, %v2476_v10  ;;  %v2532_v17 = vor.u32 %v2531_v61, %v2528_v3 }
 0x1ac   : > { %6254 = vmatmul.mubr.msk.bf16.gmra.mrb[24].mxu0 %vm691_vm3, %v7503_v53  ;;  %6263 = vmatmul.mubr.msk.bf16.gmra.mrb[24].mxu1 %vm691_vm3, %v7503_v53  ;;  %v6277_v53 = vld [vmem:[%s8140_s17 + $0x3c] sm:$0xf] }
 0x1ad   : > { %2193 = vmatprep.mubr.bf16.mxu0 %v7874_v0  ;;  %2306 = vmatprep.mubr.bf16.mxu1 %v7874_v0  ;;  %v2502_v50 = vshrl.u32 %v6277_v53, 16  ;;  %v2505_v6 = vshll.u32 %v6277_v53, 16  ;;  %v7539_v53 = vld [vmem:[#allocation6 + $0x364] ss:$16 sps:$4 sm:$0xff]  }
 0x1af   : > { %v2504_v28 = vrot.slane %v2502_v50, 4  ;;  %v2507_v30 = vrot.slane %v2505_v6, 5 }
 0x1b1   : > { %v2508_v41 = vor.u32 %v2507_v30, %v2504_v28 }
 0x1b3   : > { %v2509_v62 = vrot.slane %v2508_v41, 4  ;;  %v2577_v41 = vshll.u32 %v6286_v8, 16 }
 0x1b4   : > { %6255 = vmatmul.mubr.msk.bf16.gmra.mrb[28].mxu0 %vm691_vm3, %v7508_v11  ;;  %6264 = vmatmul.mubr.msk.bf16.gmra.mrb[28].mxu1 %vm691_vm3, %v7508_v11  ;;  %v2515_v11 = vshrl.u32 %v8655_v25, 16 }
 0x1b5   : > { %2798 = vmatprep.mubr.bf16.mxu0 %v7874_v0  ;;  %2911 = vmatprep.mubr.bf16.mxu1 %v7874_v0 }
 0x1b6   : > { %v2517_v34 = vrot.slane %v2515_v11, 4  ;;  %v6283_v11 = vld [vmem:[%s8140_s17 + $0x54] sm:$0xf] }
 0x1b7   : > { %v2553_v10 = vshll.u32 %v6283_v11, 16 }
 0x1b8   : > { %v2518_v47 = vor.u32 %v2517_v34, %v8675_v31 }
 0x1b9   : > { %v2555_v34 = vrot.slane %v2553_v10, 5  ;;  %v3093_v10 = vrot.slane %v8604_v55, 5  ;;  %v7540_v55 = vld [vmem:[#allocation6 + $0x368] ss:$16 sps:$4 sm:$0xff]  }
 0x1ba   : > { %v2519_v63 = vrot.slane %v2518_v47, 4 }
 0x1bc   : > { %6318 = vmatmul.mubr.msk.bf16.vlgmr.msra.gmra.mrb[0].mxu0 %vm691_vm3, %v6289_v32  ;;  %6327 = vmatmul.mubr.msk.bf16.vlgmr.msra.gmra.mrb[0].mxu1 %vm691_vm3, %v6289_v32  ;;  %v8682_v32 = vld [vmem:[%s8140_s17 + $0x4c] sm:$0xf] }
 0x1bd   : > { %3314 = vmatpush1.bf16.msra.mxu0 %v7509_v35  ;;  %3427 = vmatpush1.bf16.msra.mxu1 %v7512_v36  ;;  %v6375_v35 = vcombine.low %v3161_v46, %v3161_v46  ;;  %v6378_v36 = vcombine.high %v3162_v19, %v3162_v19  ;;  %v2535_v59 = vshll.u32 %v8682_v32, 16  ;;  %v2539_v56 = vshrl.u32 %v8682_v32, 16 }
 0x1be   : > { %2808 = vmatprep.mubr.bf16.mxu0 %v7874_v0  ;;  %2921 = vmatprep.mubr.bf16.mxu1 %v7874_v0  ;;  %v2550_v46 = vshrl.u32 %v6283_v11, 16  ;;  %v2533_v19 = vrot.slane %v2532_v17, 4  ;;  %v6335_v17 = vld [vmem:[%s8140_s17 + $0xc] sm:$0xe] }
 0x1bf   : > { %3315 = vmatprep.subr.bf16.mxu0 %v7517_v40  ;;  %3428 = vmatprep.subr.bf16.mxu1 %v7520_v42  ;;  %v2499_v40 = vrot.slane %v2497_v18, 5  ;;  %v2495_v42 = vrot.slane %v2494_v7, 4  ;;  %v2537_v27 = vrot.slane %v2535_v59, 5  ;;  %v2541_v50 = vrot.slane %v2539_v56, 4 }
 0x1c1   : > { %3316 = vmatpush1.bf16.msra.mxu0 %v7515_v57  ;;  %3429 = vmatpush1.bf16.msra.mxu1 %v7518_v60  ;;  %v3302_v57 = vsel %vm716_vm2, %v6375_v35, 0  ;;  %v3308_v60 = vsel %vm716_vm2, %v6377_v29, 0  ;;  %v8725_v35 = vld [vmem:[%s8140_s17 + $0x64] sm:$0xf] }
 0x1c2   : > { %3317 = vmatprep.subr.bf16.mxu0 %v7523_v14  ;;  %3430 = vmatprep.subr.bf16.mxu1 %v7526_v23  ;;  %v7542_v14 = vld [vmem:[#allocation6 + $0x36c] ss:$16 sps:$4 sm:$0xff]   ;;  %v2490_v23 = vsel %vm8176_vm4, %v2485_v39, %v8657_v5  ;;  %v8706_v5 = vld [vmem:[%s8140_s17 + $0x58] sm:$0xf]  ;;  %v2583_v47 = vshll.u32 %v8725_v35, 16  ;;  %v2587_v49 = vshrl.u32 %v8725_v35, 16 }
 0x1c3   : > { %v2559_v21 = vshll.u32 %v8706_v5, 16  ;;  %v2563_v7 = vshrl.u32 %v8706_v5, 16 }
 0x1c4   : > { %6319 = vmatmul.mubr.msk.bf16.gmra.mrb[4].mxu0 %vm691_vm3, %v6290_v45  ;;  %6328 = vmatmul.mubr.msk.bf16.gmra.mrb[4].mxu1 %vm691_vm3, %v6290_v45  ;;  %v2500_v45 = vsel %vm8176_vm4, %v2495_v42, %v2499_v40  ;;  %v2574_v42 = vshrl.u32 %v6286_v8, 16 }
 0x1c5   : > { %2818 = vmatprep.mubr.bf16.mxu0 %v7874_v0  ;;  %2931 = vmatprep.mubr.bf16.mxu1 %v7874_v0  ;;  %v6292_v6 = vcombine.low %v2490_v23, %v2500_v45  ;;  %v8739_v23 = vld [vmem:[%s8140_s17 + $0x68] sm:$0x1] }
 0x1c6   : > { %3318 = vmatpush1.bf16.msra.mxu0 %v7521_v26  ;;  %3431 = vmatpush1.bf16.msra.mxu1 %v7524_v16  ;;  %v2514_v26 = vsel %vm8176_vm4, %v2509_v62, %v8675_v31  ;;  %v2524_v16 = vsel %vm8176_vm4, %v2519_v63, %v2523_v2  ;;  %v2552_v31 = vrot.slane %v2550_v46, 4  ;;  %v2593_v3 = vshll.u32 %v8739_v23, 16 }
 0x1c7   : > { %3319 = vmatprep.subr.bf16.mxu0 %v7529_v15  ;;  %3432 = vmatprep.subr.bf16.mxu1 %v7532_v44  ;;  %v2542_v15 = vor.u32 %v2541_v50, %v2537_v27  ;;  %v2545_v44 = vshll.u32 %v8702_v9, 16  ;;  %v6293_v18 = vcombine.low %v2514_v26, %v2524_v16  ;;  %v3090_v16 = vrot.slane %v8590_v52, 5 }
 0x1c9   : > { %v2543_v28 = vrot.slane %v2542_v15, 4  ;;  %v2547_v30 = vrot.slane %v2545_v44, 5  ;;  %v6343_v44 = vrot.slane %v6335_v17, 9  ;;  %v3092_v46 = vrot.slane %v3090_v16, 4  ;;  %v7571_v17 = vld [vmem:[#allocation6 + $0x3fc] ss:$16 sps:$4 sm:$0xff]  }
 0x1ca   : > { %3320 = vmatpush1.bf16.msra.mxu0 %v7527_v20  ;;  %3433 = vmatpush1.bf16.msra.mxu1 %v7530_v58  ;;  %v2561_v20 = vrot.slane %v2559_v21, 5  ;;  %v2565_v58 = vrot.slane %v2563_v7, 4  ;;  %v3097_v7 = vrot.slane %v8600_v48, 5 }
 0x1cb   : > { %6379 = vmatprep.subr.msk.bf16.mxu0 %vm716_vm2, %v6376_v1  ;;  %6388 = vmatprep.subr.msk.bf16.mxu1 %vm716_vm2, %v6378_v36  ;;  %v8721_v1 = vld [vmem:[%s8140_s17 + $0x5c] sm:$0x1]  ;;  %v2538_v36 = vsel %vm8176_vm4, %v2533_v19, %v2537_v27  ;;  %v2548_v29 = vsel %vm8176_vm4, %v2543_v28, %v2547_v30  ;;  %v3091_v21 = vsel %vm8341_vm7, %v6343_v44, %v3090_v16  ;;  %v7537_v28 = vld [vmem:[#allocation6 + $0x360] ss:$16 sps:$4 sm:$0xff]   ;;  %v3118_v44 = vrot.slane %v8655_v25, 5 }
 0x1cc   : > { %6320 = vmatmul.mubr.msk.bf16.gmra.mrb[8].mxu0 %vm691_vm3, %v6291_v38  ;;  %6329 = vmatmul.mubr.msk.bf16.gmra.mrb[8].mxu1 %vm691_vm3, %v6291_v38  ;;  %v2556_v38 = vor.u32 %v2555_v34, %v2552_v31  ;;  %v2566_v39 = vor.u32 %v2565_v58, %v2561_v20  ;;  %v2569_v40 = vshll.u32 %v8721_v1, 16  ;;  %v6294_v51 = vcombine.low %v2538_v36, %v2548_v29  ;;  %v7548_v58 = vld [vmem:[#allocation6 + $0x38c] ss:$16 sps:$4 sm:$0xff]   ;;  %v7543_v36 = vld [vmem:[#allocation6 + $0x380] ss:$16 sps:$4 sm:$0xff]  }
 0x1cd   : > { %2828 = vmatprep.mubr.bf16.mxu0 %v7874_v0  ;;  %2941 = vmatprep.mubr.bf16.mxu1 %v7874_v0  ;;  %v3094_v52 = vsel %vm8341_vm7, %v3092_v46, %v3093_v10  ;;  %v3099_v31 = vrot.slane %v3097_v7, 4  ;;  %v3100_v34 = vrot.slane %v8614_v33, 5  ;;  %v7546_v29 = vld [vmem:[#allocation6 + $0x388] ss:$16 sps:$4 sm:$0xff]   ;;  %v6337_v33 = vld [vmem:[%s8140_s17 + $0x24] sm:$0xe] }
 0x1ce   : > { %3322 = vmatpush1.bf16.msra.mxu0 %v3302_v57  ;;  %3435 = vmatpush1.bf16.msra.mxu1 %v3308_v60  ;;  %v2557_v54 = vrot.slane %v2556_v38, 4  ;;  %v2567_v59 = vrot.slane %v2566_v39, 4  ;;  %v2571_v56 = vrot.slane %v2569_v40, 5  ;;  %v2576_v57 = vrot.slane %v2574_v42, 4  ;;  %v7551_v39 = vld [vmem:[#allocation6 + $0x3a4] ss:$16 sps:$4 sm:$0xff]  }
 0x1cf   : > { %3805 = vmatprep.subr.bf16.mxu0 %v7539_v53  ;;  %3918 = vmatprep.subr.bf16.mxu1 %v7542_v14  ;;  %v2579_v60 = vrot.slane %v2577_v41, 5  ;;  %v2585_v53 = vrot.slane %v2583_v47, 5  ;;  %v2589_v14 = vrot.slane %v2587_v49, 4  ;;  %v6351_v19 = vcombine.low %v3091_v21, %v3094_v52  ;;  %v7554_v40 = vld [vmem:[#allocation6 + $0x3ac] ss:$16 sps:$4 sm:$0xff]  }
 0x1d0   : > { %v2562_v45 = vsel %vm8176_vm4, %v2557_v54, %v2561_v20  ;;  %v2572_v62 = vsel %vm8176_vm4, %v2567_v59, %v2571_v56  ;;  %v7545_v20 = vld [vmem:[#allocation6 + $0x384] ss:$16 sps:$4 sm:$0xff]   ;;  %v3101_v8 = vsel %vm8341_vm7, %v3099_v31, %v3100_v34  ;;  %v3104_v38 = vrot.slane %v8619_v12, 5  ;;  %v7552_v12 = vld [vmem:[#allocation6 + $0x3a8] ss:$16 sps:$4 sm:$0xff]  }
 0x1d1   : > { %v2580_v63 = vor.u32 %v2579_v60, %v2576_v57  ;;  %v2590_v2 = vor.u32 %v2589_v14, %v2585_v53  ;;  %v6295_v61 = vcombine.low %v2562_v45, %v2572_v62  ;;  %v6345_v41 = vrot.slane %v6337_v33, 9  ;;  %v7557_v54 = vld [vmem:[#allocation6 + $0x3c4] ss:$16 sps:$4 sm:$0xff]   ;;  %v7560_v59 = vld [vmem:[#allocation6 + $0x3cc] ss:$16 sps:$4 sm:$0xff]  }
 0x1d2   : > { %v3106_v47 = vrot.slane %v3104_v38, 4  ;;  %v3107_v49 = vrot.slane %v8635_v22, 5  ;;  %v3637_v56 = vld [vmem:[#allocation6 + $0x3e0] sm:$0xff]  ;;  %v3638_v57 = vld [vmem:[#allocation6 + $0x3e8] sm:$0xff]  ;;  %v3120_v52 = vrot.slane %v3118_v44, 4  ;;  %v3128_v31 = vrot.slane %v8702_v9, 5 }
 0x1d3   : > { %v2581_v27 = vrot.slane %v2580_v63, 4  ;;  %v2591_v50 = vrot.slane %v2590_v2, 4  ;;  %v3105_v22 = vsel %vm8341_vm7, %v6345_v41, %v3104_v38  ;;  %v6338_v14 = vld [vmem:[%s8140_s17 + $0x30] sm:$0xe]  ;;  %v6438_v63 = vcombine.high %v3637_v56, %v3637_v56  ;;  %v7568_v16 = vld [vmem:[#allocation6 + $0x3f4] ss:$16 sps:$4 sm:$0xff]  }
 0x1d4   : > { %6321 = vmatmul.mubr.msk.bf16.gmra.mrb[12].mxu0 %vm691_vm3, %v6292_v6  ;;  %6330 = vmatmul.mubr.msk.bf16.gmra.mrb[12].mxu1 %vm691_vm3, %v6292_v6  ;;  %v2595_v6 = vrot.slane %v2593_v3, 5  ;;  %v3108_v60 = vsel %vm8341_vm7, %v3106_v47, %v3107_v49  ;;  %v7555_v45 = vld [vmem:[#allocation6 + $0x3c0] ss:$16 sps:$4 sm:$0xff]   ;;  %v7558_v62 = vld [vmem:[#allocation6 + $0x3c8] ss:$16 sps:$4 sm:$0xff]   ;;  %v6437_v2 = vcombine.low %v3637_v56, %v3637_v56  ;;  %v6440_v3 = vcombine.high %v3638_v57, %v3638_v57 }
 0x1d5   : > { %2838 = vmatprep.mubr.bf16.mxu0 %v7874_v0  ;;  %2951 = vmatprep.mubr.bf16.mxu1 %v7874_v0  ;;  %v2586_v11 = vsel %vm8176_vm4, %v2581_v27, %v2585_v53  ;;  %v3111_v53 = vrot.slane %v8639_v24, 5  ;;  %v6353_v27 = vcombine.low %v3105_v22, %v3108_v60  ;;  %v6339_v46 = vld [vmem:[%s8140_s17 + $0x3c] sm:$0xe]  ;;  %v3139_v38 = vrot.slane %v8725_v35, 5  ;;  %v6342_v33 = vld [vmem:[%s8140_s17 + $0x60] sm:$0xe] }
 0x1d6   : > { %v2596_v26 = vsel %vm8176_vm4, %v2591_v50, %v2595_v6  ;;  %v6346_v50 = vrot.slane %v6338_v14, 9  ;;  %v3794_v24 = vsel %vm716_vm2, %v6437_v2, 0  ;;  %v6347_v21 = vrot.slane %v6339_v46, 9  ;;  %v7566_v49 = vld [vmem:[#allocation6 + $0x3f0] ss:$16 sps:$4 sm:$0xff]   ;;  %v4329_v2 = vld [vmem:[#allocation6 + $0x478] sm:$0xff] }
 0x1d7   : > { %v6296_v15 = vcombine.low %v2586_v11, %v2596_v26  ;;  %v3113_v6 = vrot.slane %v3111_v53, 4  ;;  %v3114_v11 = vrot.slane %v8660_v4, 5  ;;  %v7576_v56 = vld [vmem:[#allocation6 + $0x418] ss:$16 sps:$4 sm:$0xff]   ;;  %v7586_v22 = vld [vmem:[#allocation6 + $0x43c] ss:$16 sps:$4 sm:$0xff]  }
 0x1d8   : > { %v3112_v4 = vsel %vm8341_vm7, %v6346_v50, %v3111_v53  ;;  %v3119_v25 = vsel %vm8341_vm7, %v6347_v21, %v3118_v44  ;;  %v7572_v60 = vld [vmem:[%s8140_s17 + $0x24] sm:$0xff]   ;;  %v7591_v46 = vld [vmem:[%s8140_s17 + $0x54] sm:$0xff]   ;;  %v8886_v21 = vld [vmem:[%s8140_s17 + $0x1c] sm:$0xf] }
 0x1d9   : > { %v7581_v53 = vld [vmem:[#allocation6 + $0x430] ss:$16 sps:$4 sm:$0xff]   ;;  %v7584_v14 = vld [vmem:[#allocation6 + $0x438] ss:$16 sps:$4 sm:$0xff]  }
 0x1da   : > { %v7587_v44 = vld [vmem:[%s8140_s17 + $0x48] sm:$0xff]  }
 0x1dc   : > { %6322 = vmatmul.mubr.msk.bf16.gmra.mrb[16].mxu0 %vm691_vm3, %v6293_v18  ;;  %6331 = vmatmul.mubr.msk.bf16.gmra.mrb[16].mxu1 %vm691_vm3, %v6293_v18  ;;  %v6336_v18 = vld [vmem:[%s8140_s17 + $0x18] sm:$0xe] }
 0x1dd   : > { %2848 = vmatprep.mubr.bf16.mxu0 %v7874_v0  ;;  %2961 = vmatprep.mubr.bf16.mxu1 %v7874_v0  ;;  %v6344_v30 = vrot.slane %v6336_v18, 9 }
 0x1df   : > { %v3098_v48 = vsel %vm8341_vm7, %v6344_v30, %v3097_v7  ;;  %v3121_v7 = vrot.slane %v8678_v13, 5 }
 0x1e0   : > { %v6352_v42 = vcombine.low %v3098_v48, %v3101_v8 }
 0x1e1   : > { %v3122_v18 = vsel %vm8341_vm7, %v3120_v52, %v3121_v7 }
 0x1e4   : > { %6323 = vmatmul.mubr.msk.bf16.gmra.mrb[20].mxu0 %vm691_vm3, %v6294_v51  ;;  %6332 = vmatmul.mubr.msk.bf16.gmra.mrb[20].mxu1 %vm691_vm3, %v6294_v51  ;;  %v7549_v51 = vld [vmem:[#allocation6 + $0x3a0] ss:$16 sps:$4 sm:$0xff]  }
 0x1e5   : > { %2858 = vmatprep.mubr.bf16.mxu0 %v7874_v0  ;;  %2971 = vmatprep.mubr.bf16.mxu1 %v7874_v0 }
 0x1ec   : > { %6324 = vmatmul.mubr.msk.bf16.gmra.mrb[24].mxu0 %vm691_vm3, %v6295_v61  ;;  %6333 = vmatmul.mubr.msk.bf16.gmra.mrb[24].mxu1 %vm691_vm3, %v6295_v61  ;;  %v6439_v61 = vcombine.low %v3638_v57, %v3638_v57  ;;  %v7583_v57 = vld [vmem:[#allocation6 + $0x434] ss:$16 sps:$4 sm:$0xff]  }
 0x1ed   : > { %2868 = vmatprep.mubr.bf16.mxu0 %v7874_v0  ;;  %2981 = vmatprep.mubr.bf16.mxu1 %v7874_v0 }
 0x1ee   : > { %v3800_v26 = vsel %vm716_vm2, %v6439_v61, 0  ;;  %v7592_v61 = vld [vmem:[#allocation6 + $0x458] ss:$16 sps:$4 sm:$0xff]  }
 0x1f4   : > { %6325 = vmatmul.mubr.msk.bf16.gmra.mrb[28].mxu0 %vm691_vm3, %v6296_v15  ;;  %6334 = vmatmul.mubr.msk.bf16.gmra.mrb[28].mxu1 %vm691_vm3, %v6296_v15  ;;  %v3115_v15 = vsel %vm8341_vm7, %v3113_v6, %v3114_v11  ;;  %v6510_v6 = vcombine.high %v4329_v2, %v4329_v2  ;;  %v6509_v11 = vcombine.low %v4329_v2, %v4329_v2 }
 0x1f5   : > { %3345 = vmatprep.mubr.bf16.mxu0 %v7874_v0  ;;  %3458 = vmatprep.mubr.bf16.mxu1 %v7874_v0  ;;  %v6354_v10 = vcombine.low %v3112_v4, %v3115_v15  ;;  %v7606_v4 = vld [vmem:[#allocation6 + $0x48c] ss:$16 sps:$4 sm:$0xff]  }
 0x1f6   : > { %v7580_v15 = vld [vmem:[%s8140_s17 + $0x3c] sm:$0xff]  }
 0x1fc   : > { %6380 = vmatmul.mubr.msk.bf16.vlgmr.msra.gmra.mrb[0].mxu0 %vm691_vm3, %v6351_v19  ;;  %6389 = vmatmul.mubr.msk.bf16.vlgmr.msra.gmra.mrb[0].mxu1 %vm691_vm3, %v6351_v19  ;;  %v3125_v19 = vrot.slane %v8682_v32, 5 }
 0x1fd   : > { %3806 = vmatpush1.bf16.msra.mxu0 %v7537_v28  ;;  %3919 = vmatpush1.bf16.msra.mxu1 %v7540_v55  ;;  %v6340_v28 = vld [vmem:[%s8140_s17 + $0x48] sm:$0xe]  ;;  %v6355_v55 = vcombine.low %v3119_v25, %v3122_v18  ;;  %v4129_v25 = vshll.u32 %v8886_v21, 16  ;;  %v4133_v18 = vshrl.u32 %v8886_v21, 16 }
 0x1fe   : > { %3355 = vmatprep.mubr.bf16.mxu0 %v7874_v0  ;;  %3468 = vmatprep.mubr.bf16.mxu1 %v7874_v0  ;;  %v6348_v13 = vrot.slane %v6340_v28, 9  ;;  %v3127_v30 = vrot.slane %v3125_v19, 4  ;;  %v7595_v28 = vld [vmem:[%s8140_s17 + $0x60] sm:$0xff]  }
 0x1ff   : > { %3807 = vmatprep.subr.bf16.mxu0 %v7545_v20  ;;  %3920 = vmatprep.subr.bf16.mxu1 %v7548_v58  ;;  %v3132_v20 = vrot.slane %v8706_v5, 5  ;;  %v6341_v58 = vld [vmem:[%s8140_s17 + $0x54] sm:$0xe] }
 0x200   : > { %v3126_v34 = vsel %vm8341_vm7, %v6348_v13, %v3125_v19  ;;  %v3129_v32 = vsel %vm8341_vm7, %v3127_v30, %v3128_v31  ;;  %v6349_v9 = vrot.slane %v6341_v58, 9  ;;  %v6462_v19 = vld [vmem:[%s8140_s17 + $0x24] sm:$0xf]  ;;  %v4131_v31 = vrot.slane %v4129_v25, 5  ;;  %v7610_v25 = vld [vmem:[#allocation6 + $0x4a8] ss:$16 sps:$4 sm:$0xff]  }
 0x201   : > { %3808 = vmatpush1.bf16.msra.mxu0 %v7543_v36  ;;  %3921 = vmatpush1.bf16.msra.mxu1 %v7546_v29  ;;  %v6356_v48 = vcombine.low %v3126_v34, %v3129_v32  ;;  %v3134_v8 = vrot.slane %v3132_v20, 4  ;;  %v3135_v36 = vrot.slane %v8721_v1, 5  ;;  %v6350_v1 = vrot.slane %v6342_v33, 9  ;;  %v8900_v32 = vld [vmem:[%s8140_s17 + $0x20] sm:$0x1] }
 0x202   : > { %3809 = vmatprep.subr.bf16.mxu0 %v7551_v39  ;;  %3922 = vmatprep.subr.bf16.mxu1 %v7554_v40  ;;  %v3133_v29 = vsel %vm8341_vm7, %v6349_v9, %v3132_v20  ;;  %v3141_v40 = vrot.slane %v3139_v38, 4  ;;  %v4135_v34 = vrot.slane %v4133_v18, 4  ;;  %v4144_v20 = vshrl.u32 %v6462_v19, 16 }
 0x203   : > { %v3136_v5 = vsel %vm8341_vm7, %v3134_v8, %v3135_v36  ;;  %v3140_v41 = vsel %vm8341_vm7, %v6350_v1, %v3139_v38  ;;  %v4147_v58 = vshll.u32 %v6462_v19, 16  ;;  %v7600_v1 = vld [vmem:[%s8140_s17 + $0x6c] sm:$0xff]  }
 0x204   : > { %6381 = vmatmul.mubr.msk.bf16.gmra.mrb[4].mxu0 %vm691_vm3, %v6352_v42  ;;  %6390 = vmatmul.mubr.msk.bf16.gmra.mrb[4].mxu1 %vm691_vm3, %v6352_v42  ;;  %v6357_v39 = vcombine.low %v3133_v29, %v3136_v5  ;;  %v3142_v42 = vrot.slane %v8739_v23, 5  ;;  %v7565_v23 = vld [vmem:[%s8140_s17 + $0x18] sm:$0xff]   ;;  %v4136_v36 = vor.u32 %v4135_v34, %v4131_v31  ;;  %v4139_v29 = vshll.u32 %v8900_v32, 16 }
 0x205   : > { %3365 = vmatprep.mubr.bf16.mxu0 %v7874_v0  ;;  %3478 = vmatprep.mubr.bf16.mxu1 %v7874_v0  ;;  %v4146_v5 = vrot.slane %v4144_v20, 4  ;;  %v4149_v38 = vrot.slane %v4147_v58, 5  ;;  %v8951_v20 = vld [vmem:[%s8140_s17 + $0x4c] sm:$0xf] }
 0x206   : > { %3810 = vmatpush1.bf16.msra.mxu0 %v7549_v51  ;;  %3923 = vmatpush1.bf16.msra.mxu1 %v7552_v12  ;;  %v3143_v35 = vsel %vm8341_vm7, %v3141_v40, %v3142_v42  ;;  %v7569_v51 = vld [vmem:[#allocation6 + $0x3f8] ss:$16 sps:$4 sm:$0xff]   ;;  %v7575_v12 = vld [vmem:[#allocation6 + $0x414] ss:$16 sps:$4 sm:$0xff]  }
 0x207   : > { %3811 = vmatprep.subr.bf16.mxu0 %v7557_v54  ;;  %3924 = vmatprep.subr.bf16.mxu1 %v7560_v59  ;;  %v6358_v47 = vcombine.low %v3140_v41, %v3143_v35  ;;  %v7578_v54 = vld [vmem:[#allocation6 + $0x41c] ss:$16 sps:$4 sm:$0xff]   ;;  %v7573_v59 = vld [vmem:[#allocation6 + $0x410] ss:$16 sps:$4 sm:$0xff]   ;;  %v4137_v35 = vrot.slane %v4136_v36, 4 }
 0x208   : > { %v8911_v40 = vld [vmem:[%s8140_s17 + $0x2c] sm:$0x1]  ;;  %v6465_v42 = vld [vmem:[%s8140_s17 + $0x30] sm:$0xf]  ;;  %v8954_v36 = vld [vmem:[%s8140_s17 + $0x44] sm:$0x1] }
 0x20a   : > { %3812 = vmatpush1.bf16.msra.mxu0 %v7555_v45  ;;  %3925 = vmatpush1.bf16.msra.mxu1 %v7558_v62  ;;  %v7590_v45 = vld [vmem:[#allocation6 + $0x454] ss:$16 sps:$4 sm:$0xff]   ;;  %v7594_v62 = vld [vmem:[#allocation6 + $0x45c] ss:$16 sps:$4 sm:$0xff]  }
 0x20b   : > { %6441 = vmatprep.subr.msk.bf16.mxu0 %vm716_vm2, %v6438_v63  ;;  %6450 = vmatprep.subr.msk.bf16.mxu1 %vm716_vm2, %v6440_v3  ;;  %v4328_v63 = vld [vmem:[#allocation6 + $0x470] sm:$0xff] }
 0x20c   : > { %6382 = vmatmul.mubr.msk.bf16.gmra.mrb[8].mxu0 %vm691_vm3, %v6353_v27  ;;  %6391 = vmatmul.mubr.msk.bf16.gmra.mrb[8].mxu1 %vm691_vm3, %v6353_v27  ;;  %v7588_v3 = vld [vmem:[#allocation6 + $0x450] ss:$16 sps:$4 sm:$0xff]   ;;  %v6508_v27 = vcombine.high %v4328_v63, %v4328_v63  ;;  %v6507_v50 = vcombine.low %v4328_v63, %v4328_v63 }
 0x20d   : > { %3375 = vmatprep.mubr.bf16.mxu0 %v7874_v0  ;;  %3488 = vmatprep.mubr.bf16.mxu1 %v7874_v0 }
 0x20e   : > { %3814 = vmatpush1.bf16.msra.mxu0 %v3794_v24  ;;  %3927 = vmatpush1.bf16.msra.mxu1 %v3800_v26  ;;  %v7579_v24 = vld [vmem:[%s8140_s17 + $0x30] sm:$0xff]   ;;  %v4469_v26 = vsel %vm716_vm2, %v6507_v50, 0 }
 0x20f   : > { %4480 = vmatprep.subr.bf16.mxu0 %v7568_v16  ;;  %4593 = vmatprep.subr.bf16.mxu1 %v7571_v17  ;;  %v4475_v16 = vsel %vm716_vm2, %v6509_v11, 0  ;;  %v7603_v17 = vld [vmem:[#allocation6 + $0x484] ss:$16 sps:$4 sm:$0xff]   ;;  %v7604_v50 = vld [vmem:[#allocation6 + $0x488] ss:$16 sps:$4 sm:$0xff]  }
 0x210   : > { %v6468_v11 = vld [vmem:[%s8140_s17 + $0x3c] sm:$0xf] }
 0x214   : > { %6383 = vmatmul.mubr.msk.bf16.gmra.mrb[12].mxu0 %vm691_vm3, %v6354_v10  ;;  %6392 = vmatmul.mubr.msk.bf16.gmra.mrb[12].mxu1 %vm691_vm3, %v6354_v10  ;;  %v6459_v10 = vld [vmem:[%s8140_s17 + $0x18] sm:$0xf] }
 0x215   : > { %3385 = vmatprep.mubr.bf16.mxu0 %v7874_v0  ;;  %3498 = vmatprep.mubr.bf16.mxu1 %v7874_v0  ;;  %v4120_v52 = vshrl.u32 %v6459_v10, 16  ;;  %v4123_v7 = vshll.u32 %v6459_v10, 16  ;;  %v4192_v10 = vshrl.u32 %v6468_v11, 16 }
 0x217   : > { %v4122_v13 = vrot.slane %v4120_v52, 4  ;;  %v4125_v30 = vrot.slane %v4123_v7, 5  ;;  %v4195_v52 = vshll.u32 %v6468_v11, 16  ;;  %v7607_v7 = vld [vmem:[#allocation6 + $0x4a0] ss:$16 sps:$4 sm:$0xff]  }
 0x219   : > { %v4126_v8 = vor.u32 %v4125_v30, %v4122_v13  ;;  %v7618_v13 = vld [vmem:[#allocation6 + $0x4cc] ss:$16 sps:$4 sm:$0xff]   ;;  %v6471_v30 = vld [vmem:[%s8140_s17 + $0x48] sm:$0xf] }
 0x21b   : > { %v4127_v41 = vrot.slane %v4126_v8, 4  ;;  %v4197_v8 = vrot.slane %v4195_v52, 5 }
 0x21c   : > { %6384 = vmatmul.mubr.msk.bf16.gmra.mrb[16].mxu0 %vm691_vm3, %v6355_v55  ;;  %6393 = vmatmul.mubr.msk.bf16.gmra.mrb[16].mxu1 %vm691_vm3, %v6355_v55  ;;  %v8897_v55 = vld [vmem:[%s8140_s17 + $0x28] sm:$0xf] }
 0x21d   : > { %3395 = vmatprep.mubr.bf16.mxu0 %v7874_v0  ;;  %3508 = vmatprep.mubr.bf16.mxu1 %v7874_v0  ;;  %v4157_v9 = vshrl.u32 %v8897_v55, 16 }
 0x224   : > { %6385 = vmatmul.mubr.msk.bf16.gmra.mrb[20].mxu0 %vm691_vm3, %v6356_v48  ;;  %6394 = vmatmul.mubr.msk.bf16.gmra.mrb[20].mxu1 %vm691_vm3, %v6356_v48  ;;  %v4153_v48 = vshll.u32 %v8897_v55, 16 }
 0x225   : > { %3405 = vmatprep.mubr.bf16.mxu0 %v7874_v0  ;;  %3518 = vmatprep.mubr.bf16.mxu1 %v7874_v0 }
 0x226   : > { %v4155_v33 = vrot.slane %v4153_v48, 5 }
 0x22c   : > { %6386 = vmatmul.mubr.msk.bf16.gmra.mrb[24].mxu0 %vm691_vm3, %v6357_v39  ;;  %6395 = vmatmul.mubr.msk.bf16.gmra.mrb[24].mxu1 %vm691_vm3, %v6357_v39  ;;  %v4159_v39 = vrot.slane %v4157_v9, 4  ;;  %v4194_v9 = vrot.slane %v4192_v10, 4 }
 0x22d   : > { %3415 = vmatprep.mubr.bf16.mxu0 %v7874_v0  ;;  %3528 = vmatprep.mubr.bf16.mxu1 %v7874_v0 }
 0x234   : > { %6387 = vmatmul.mubr.msk.bf16.gmra.mrb[28].mxu0 %vm691_vm3, %v6358_v47  ;;  %6396 = vmatmul.mubr.msk.bf16.gmra.mrb[28].mxu1 %vm691_vm3, %v6358_v47  ;;  %v4141_v47 = vrot.slane %v4139_v29, 5 }
 0x235   : > { %3837 = vmatprep.mubr.bf16.mxu0 %v7874_v0  ;;  %3950 = vmatprep.mubr.bf16.mxu1 %v7874_v0 }
 0x23c   : > { %6442 = vmatmul.mubr.msk.bf16.vlgmr.msra.gmra.mrb[0].mxu0 %vm691_vm3, %v7565_v23  ;;  %6451 = vmatmul.mubr.msk.bf16.vlgmr.msra.gmra.mrb[0].mxu1 %vm691_vm3, %v7565_v23  ;;  %v8915_v23 = vld [vmem:[%s8140_s17 + $0x34] sm:$0xf] }
 0x23d   : > { %4481 = vmatpush1.bf16.msra.mxu0 %v7566_v49  ;;  %4594 = vmatpush1.bf16.msra.mxu1 %v7569_v51  ;;  %v4150_v49 = vor.u32 %v4149_v38, %v4146_v5  ;;  %v4160_v51 = vor.u32 %v4159_v39, %v4155_v33  ;;  %v4216_v38 = vshrl.u32 %v6471_v30, 16  ;;  %v7613_v39 = vld [vmem:[#allocation6 + $0x4c0] ss:$16 sps:$4 sm:$0xff]  }
 0x23e   : > { %3847 = vmatprep.mubr.bf16.mxu0 %v7874_v0  ;;  %3960 = vmatprep.mubr.bf16.mxu1 %v7874_v0 }
 0x23f   : > { %4482 = vmatprep.subr.bf16.mxu0 %v7575_v12  ;;  %4595 = vmatprep.subr.bf16.mxu1 %v7578_v54  ;;  %v4163_v12 = vshll.u32 %v8911_v40, 16  ;;  %v4168_v54 = vshrl.u32 %v6465_v42, 16 }
 0x241   : > { %4483 = vmatpush1.bf16.msra.mxu0 %v7573_v59  ;;  %4596 = vmatpush1.bf16.msra.mxu1 %v7576_v56  ;;  %v4171_v59 = vshll.u32 %v6465_v42, 16  ;;  %v4177_v56 = vshll.u32 %v8915_v23, 16  ;;  %v4225_v42 = vshll.u32 %v8951_v20, 16 }
 0x242   : > { %4484 = vmatprep.subr.bf16.mxu0 %v7583_v57  ;;  %4597 = vmatprep.subr.bf16.mxu1 %v7586_v22  ;;  %v4181_v57 = vshrl.u32 %v8915_v23, 16  ;;  %v4132_v22 = vsel %vm8176_vm4, %v4127_v41, %v4131_v31  ;;  %v4229_v41 = vshrl.u32 %v8951_v20, 16 }
 0x243   : > { %v4173_v63 = vrot.slane %v4171_v59, 5  ;;  %v4876_v59 = vld [vmem:[#allocation6 + $0x508] sm:$0xff] }
 0x244   : > { %6443 = vmatmul.mubr.msk.bf16.gmra.mrb[4].mxu0 %vm691_vm3, %v7572_v60  ;;  %6452 = vmatmul.mubr.msk.bf16.gmra.mrb[4].mxu1 %vm691_vm3, %v7572_v60  ;;  %v4142_v60 = vsel %vm8176_vm4, %v4137_v35, %v4141_v47  ;;  %v7621_v35 = vld [vmem:[#allocation6 + $0x4e4] ss:$16 sps:$4 sm:$0xff]   ;;  %v7624_v47 = vld [vmem:[#allocation6 + $0x4ec] ss:$16 sps:$4 sm:$0xff]  }
 0x245   : > { %3857 = vmatprep.mubr.bf16.mxu0 %v7874_v0  ;;  %3970 = vmatprep.mubr.bf16.mxu1 %v7874_v0  ;;  %v6483_v2 = vcombine.low %v4132_v22, %v4142_v60  ;;  %v4218_v22 = vrot.slane %v4216_v38, 4  ;;  %v8998_v38 = vld [vmem:[%s8140_s17 + $0x5c] sm:$0x1] }
 0x246   : > { %4485 = vmatpush1.bf16.msra.mxu0 %v7581_v53  ;;  %4598 = vmatpush1.bf16.msra.mxu1 %v7584_v14  ;;  %v4151_v53 = vrot.slane %v4150_v49, 4  ;;  %v4161_v14 = vrot.slane %v4160_v51, 4  ;;  %v4875_v49 = vld [vmem:[#allocation6 + $0x500] sm:$0xff] }
 0x247   : > { %4486 = vmatprep.subr.bf16.mxu0 %v7590_v45  ;;  %4599 = vmatprep.subr.bf16.mxu1 %v7594_v62  ;;  %v4165_v45 = vrot.slane %v4163_v12, 5  ;;  %v4170_v62 = vrot.slane %v4168_v54, 4  ;;  %v4198_v54 = vor.u32 %v4197_v8, %v4194_v9 }
 0x24a   : > { %4487 = vmatpush1.bf16.msra.mxu0 %v7588_v3  ;;  %4600 = vmatpush1.bf16.msra.mxu1 %v7592_v61  ;;  %v7601_v3 = vld [vmem:[#allocation6 + $0x480] ss:$16 sps:$4 sm:$0xff]   ;;  %v8928_v61 = vrot.slane %v4177_v56, 5 }
 0x24b   : > { %6511 = vmatprep.subr.msk.bf16.mxu0 %vm716_vm2, %v6508_v27  ;;  %6520 = vmatprep.subr.msk.bf16.mxu1 %vm716_vm2, %v6510_v6  ;;  %v4183_v27 = vrot.slane %v4181_v57, 4  ;;  %v8931_v6 = vld [vmem:[%s8140_s17 + $0x38] sm:$0x1]  ;;  %v4211_v57 = vshll.u32 %v8954_v36, 16 }
 0x24c   : > { %6444 = vmatmul.mubr.msk.bf16.gmra.mrb[8].mxu0 %vm691_vm3, %v7579_v24  ;;  %6453 = vmatmul.mubr.msk.bf16.gmra.mrb[8].mxu1 %vm691_vm3, %v7579_v24  ;;  %v8935_v24 = vld [vmem:[%s8140_s17 + $0x40] sm:$0xf] }
 0x24d   : > { %3867 = vmatprep.mubr.bf16.mxu0 %v7874_v0  ;;  %3980 = vmatprep.mubr.bf16.mxu1 %v7874_v0  ;;  %v4201_v18 = vshll.u32 %v8935_v24, 16  ;;  %v4205_v19 = vshrl.u32 %v8935_v24, 16 }
 0x24e   : > { %4489 = vmatpush1.bf16.msra.mxu0 %v4469_v26  ;;  %4602 = vmatpush1.bf16.msra.mxu1 %v4475_v16  ;;  %v4156_v26 = vsel %vm8176_vm4, %v4151_v53, %v4155_v33  ;;  %v4166_v16 = vsel %vm8176_vm4, %v4161_v14, %v4165_v45  ;;  %v4219_v33 = vshll.u32 %v6471_v30, 16  ;;  %v8971_v53 = vrot.slane %v4225_v42, 5  ;;  %v7619_v45 = vld [vmem:[#allocation6 + $0x4e0] ss:$16 sps:$4 sm:$0xff]  }
 0x24f   : > { %5027 = vmatprep.subr.bf16.mxu0 %v7603_v17  ;;  %5140 = vmatprep.subr.bf16.mxu1 %v7606_v4  ;;  %v7609_v17 = vld [vmem:[#allocation6 + $0x4a4] ss:$16 sps:$4 sm:$0xff]   ;;  %v7612_v4 = vld [vmem:[#allocation6 + $0x4ac] ss:$16 sps:$4 sm:$0xff]   ;;  %v6484_v31 = vcombine.low %v4156_v26, %v4166_v16  ;;  %v8956_v29 = vrot.slane %v4201_v18, 5  ;;  %v4207_v5 = vrot.slane %v4205_v19, 4 }
 0x250   : > { %v4221_v60 = vrot.slane %v4219_v33, 5  ;;  %v4231_v14 = vrot.slane %v4229_v41, 4  ;;  %v8978_v26 = vld [vmem:[%s8140_s17 + $0x58] sm:$0xf]  ;;  %v4199_v16 = vrot.slane %v4198_v54, 4 }
 0x251   : > { %v4208_v56 = vor.u32 %v4207_v5, %v8956_v29  ;;  %v6477_v33 = vld [vmem:[%s8140_s17 + $0x60] sm:$0xf] }
 0x254   : > { %6445 = vmatmul.mubr.msk.bf16.gmra.mrb[12].mxu0 %vm691_vm3, %v7580_v15  ;;  %6454 = vmatmul.mubr.msk.bf16.gmra.mrb[12].mxu1 %vm691_vm3, %v7580_v15  ;;  %v4174_v15 = vor.u32 %v4173_v63, %v4170_v62  ;;  %v7622_v62 = vld [vmem:[#allocation6 + $0x4e8] ss:$16 sps:$4 sm:$0xff]   ;;  %v6570_v63 = vcombine.high %v4875_v49, %v4875_v49 }
 0x255   : > { %3877 = vmatprep.mubr.bf16.mxu0 %v7874_v0  ;;  %3990 = vmatprep.mubr.bf16.mxu1 %v7874_v0 }
 0x256   : > { %v4175_v34 = vrot.slane %v4174_v15, 4  ;;  %v4222_v15 = vor.u32 %v4221_v60, %v4218_v22 }
 0x258   : > { %v4180_v51 = vsel %vm8176_vm4, %v4175_v34, %v8928_v61  ;;  %v4223_v30 = vrot.slane %v4222_v15, 4 }
 0x25c   : > { %6446 = vmatmul.mubr.msk.bf16.gmra.mrb[16].mxu0 %vm691_vm3, %v7587_v44  ;;  %6455 = vmatmul.mubr.msk.bf16.gmra.mrb[16].mxu1 %vm691_vm3, %v7587_v44  ;;  %v4184_v44 = vor.u32 %v4183_v27, %v8928_v61  ;;  %v6569_v61 = vcombine.low %v4875_v49, %v4875_v49  ;;  %v6572_v27 = vcombine.high %v4876_v59, %v4876_v59  ;;  %v4267_v49 = vshll.u32 %v6477_v33, 16 }
 0x25d   : > { %3887 = vmatprep.mubr.bf16.mxu0 %v7874_v0  ;;  %4000 = vmatprep.mubr.bf16.mxu1 %v7874_v0 }
 0x25e   : > { %v4185_v58 = vrot.slane %v4184_v44, 4  ;;  %v4232_v44 = vor.u32 %v4231_v14, %v8971_v53  ;;  %v5016_v18 = vsel %vm716_vm2, %v6569_v61, 0  ;;  %v4269_v60 = vrot.slane %v4267_v49, 5 }
 0x25f   : > { %v4807_v49 = vrot.slane %v8900_v32, 5 }
 0x264   : > { %6447 = vmatmul.mubr.msk.bf16.gmra.mrb[20].mxu0 %vm691_vm3, %v7591_v46  ;;  %6456 = vmatmul.mubr.msk.bf16.gmra.mrb[20].mxu1 %vm691_vm3, %v7591_v46  ;;  %v4187_v46 = vshll.u32 %v8931_v6, 16 }
 0x265   : > { %3897 = vmatprep.mubr.bf16.mxu0 %v7874_v0  ;;  %4010 = vmatprep.mubr.bf16.mxu1 %v7874_v0 }
 0x266   : > { %v4189_v48 = vrot.slane %v4187_v46, 5 }
 0x268   : > { %v4190_v12 = vsel %vm8176_vm4, %v4185_v58, %v4189_v48 }
 0x269   : > { %v6485_v11 = vcombine.low %v4180_v51, %v4190_v12 }
 0x26c   : > { %6448 = vmatmul.mubr.msk.bf16.gmra.mrb[24].mxu0 %vm691_vm3, %v7595_v28  ;;  %6457 = vmatmul.mubr.msk.bf16.gmra.mrb[24].mxu1 %vm691_vm3, %v7595_v28  ;;  %v7615_v28 = vld [vmem:[#allocation6 + $0x4c4] ss:$16 sps:$4 sm:$0xff]  }
 0x26d   : > { %3907 = vmatprep.mubr.bf16.mxu0 %v7874_v0  ;;  %4020 = vmatprep.mubr.bf16.mxu1 %v7874_v0 }
 0x274   : > { %6449 = vmatmul.mubr.msk.bf16.gmra.mrb[28].mxu0 %vm691_vm3, %v7600_v1  ;;  %6458 = vmatmul.mubr.msk.bf16.gmra.mrb[28].mxu1 %vm691_vm3, %v7600_v1  ;;  %v7616_v1 = vld [vmem:[#allocation6 + $0x4c8] ss:$16 sps:$4 sm:$0xff]  }
 0x275   : > { %4512 = vmatprep.mubr.bf16.mxu0 %v7874_v0  ;;  %4625 = vmatprep.mubr.bf16.mxu1 %v7874_v0 }
 0x27c   : > { %6512 = vmatmul.mubr.msk.bf16.vlgmr.msra.gmra.mrb[0].mxu0 %vm691_vm3, %v6483_v2  ;;  %6521 = vmatmul.mubr.msk.bf16.vlgmr.msra.gmra.mrb[0].mxu1 %vm691_vm3, %v6483_v2  ;;  %v8974_v2 = vld [vmem:[%s8140_s17 + $0x50] sm:$0x1] }
 0x27d   : > { %5028 = vmatpush1.bf16.msra.mxu0 %v7601_v3  ;;  %5141 = vmatpush1.bf16.msra.mxu1 %v7604_v50  ;;  %v6474_v3 = vld [vmem:[%s8140_s17 + $0x54] sm:$0xf]  ;;  %v6571_v50 = vcombine.low %v4876_v59, %v4876_v59  ;;  %v4235_v46 = vshll.u32 %v8974_v2, 16 }
 0x27e   : > { %4522 = vmatprep.mubr.bf16.mxu0 %v7874_v0  ;;  %4635 = vmatprep.mubr.bf16.mxu1 %v7874_v0  ;;  %v4240_v10 = vshrl.u32 %v6474_v3, 16  ;;  %v4243_v52 = vshll.u32 %v6474_v3, 16 }
 0x27f   : > { %5029 = vmatprep.subr.bf16.mxu0 %v7609_v17  ;;  %5142 = vmatprep.subr.bf16.mxu1 %v7612_v4  ;;  %v4209_v17 = vrot.slane %v4208_v56, 4  ;;  %v4213_v4 = vrot.slane %v4211_v57, 5  ;;  %v5022_v19 = vsel %vm716_vm2, %v6571_v50, 0  ;;  %v4237_v34 = vrot.slane %v4235_v46, 5 }
 0x280   : > { %v4242_v58 = vrot.slane %v4240_v10, 4  ;;  %v4245_v48 = vrot.slane %v4243_v52, 5 }
 0x281   : > { %5030 = vmatpush1.bf16.msra.mxu0 %v7607_v7  ;;  %5143 = vmatpush1.bf16.msra.mxu1 %v7610_v25  ;;  %v4249_v7 = vshll.u32 %v8978_v26, 16  ;;  %v4253_v25 = vshrl.u32 %v8978_v26, 16 }
 0x282   : > { %5031 = vmatprep.subr.bf16.mxu0 %v7615_v28  ;;  %5144 = vmatprep.subr.bf16.mxu1 %v7618_v13  ;;  %v4204_v28 = vsel %vm8176_vm4, %v4199_v16, %v8956_v29  ;;  %v4214_v13 = vsel %vm8176_vm4, %v4209_v17, %v4213_v4  ;;  %v4228_v29 = vsel %vm8176_vm4, %v4223_v30, %v8971_v53 }
 0x283   : > { %v4251_v9 = vrot.slane %v4249_v7, 5  ;;  %v4255_v8 = vrot.slane %v4253_v25, 4  ;;  %v6486_v5 = vcombine.low %v4204_v28, %v4214_v13  ;;  %v4246_v42 = vor.u32 %v4245_v48, %v4242_v58  ;;  %v9035_v28 = vld [vmem:[%s8140_s17 + $0x74] sm:$0x1] }
 0x284   : > { %6513 = vmatmul.mubr.msk.bf16.gmra.mrb[4].mxu0 %vm691_vm3, %v6484_v31  ;;  %6522 = vmatmul.mubr.msk.bf16.gmra.mrb[4].mxu1 %vm691_vm3, %v6484_v31  ;;  %v4233_v31 = vrot.slane %v4232_v44, 4  ;;  %v4307_v58 = vshll.u32 %v9035_v28, 16 }
 0x285   : > { %4532 = vmatprep.mubr.bf16.mxu0 %v7874_v0  ;;  %4645 = vmatprep.mubr.bf16.mxu1 %v7874_v0  ;;  %v4256_v41 = vor.u32 %v4255_v8, %v4251_v9  ;;  %v4247_v59 = vrot.slane %v4246_v42, 4  ;;  %v6529_v42 = vld [vmem:[%s8140_s17 + $0x18] sm:$0xe] }
 0x286   : > { %5032 = vmatpush1.bf16.msra.mxu0 %v7613_v39  ;;  %5145 = vmatpush1.bf16.msra.mxu1 %v7616_v1  ;;  %v9002_v39 = vld [vmem:[%s8140_s17 + $0x64] sm:$0xf]  ;;  %v4238_v1 = vsel %vm8176_vm4, %v4233_v31, %v4237_v34 }
 0x287   : > { %5033 = vmatprep.subr.bf16.mxu0 %v7621_v35  ;;  %5146 = vmatprep.subr.bf16.mxu1 %v7624_v47  ;;  %v4259_v35 = vshll.u32 %v8998_v38, 16  ;;  %v4264_v47 = vshrl.u32 %v6477_v33, 16  ;;  %v4273_v51 = vshll.u32 %v9002_v39, 16  ;;  %v4277_v12 = vshrl.u32 %v9002_v39, 16 }
 0x288   : > { %v6487_v54 = vcombine.low %v4228_v29, %v4238_v1  ;;  %v4257_v56 = vrot.slane %v4256_v41, 4  ;;  %v4252_v3 = vsel %vm8176_vm4, %v4247_v59, %v4251_v9  ;;  %v4804_v1 = vrot.slane %v8886_v21, 5 }
 0x289   : > { %v4261_v57 = vrot.slane %v4259_v35, 5  ;;  %v4266_v22 = vrot.slane %v4264_v47, 4  ;;  %v4275_v53 = vrot.slane %v4273_v51, 5  ;;  %v4279_v14 = vrot.slane %v4277_v12, 4  ;;  %v6530_v12 = vld [vmem:[%s8140_s17 + $0x24] sm:$0xe] }
 0x28a   : > { %5034 = vmatpush1.bf16.msra.mxu0 %v7619_v45  ;;  %5147 = vmatpush1.bf16.msra.mxu1 %v7622_v62  ;;  %v9017_v45 = vld [vmem:[%s8140_s17 + $0x68] sm:$0x1]  ;;  %v6480_v62 = vld [vmem:[%s8140_s17 + $0x6c] sm:$0xf]  ;;  %v6537_v35 = vrot.slane %v6529_v42, 9  ;;  %v4806_v47 = vrot.slane %v4804_v1, 4 }
 0x28b   : > { %6573 = vmatprep.subr.msk.bf16.mxu0 %vm716_vm2, %v6570_v63  ;;  %6582 = vmatprep.subr.msk.bf16.mxu1 %vm716_vm2, %v6572_v27  ;;  %v9021_v63 = vld [vmem:[%s8140_s17 + $0x70] sm:$0xf]  ;;  %v4262_v61 = vsel %vm8176_vm4, %v4257_v56, %v4261_v57  ;;  %v4270_v27 = vor.u32 %v4269_v60, %v4266_v22  ;;  %v4280_v50 = vor.u32 %v4279_v14, %v4275_v53  ;;  %v4288_v16 = vshrl.u32 %v6480_v62, 16 }
 0x28c   : > { %6514 = vmatmul.mubr.msk.bf16.gmra.mrb[8].mxu0 %vm691_vm3, %v6485_v11  ;;  %6523 = vmatmul.mubr.msk.bf16.gmra.mrb[8].mxu1 %vm691_vm3, %v6485_v11  ;;  %v4283_v11 = vshll.u32 %v9017_v45, 16  ;;  %v4291_v17 = vshll.u32 %v6480_v62, 16  ;;  %v4297_v4 = vshll.u32 %v9021_v63, 16  ;;  %v4301_v15 = vshrl.u32 %v9021_v63, 16  ;;  %v6531_v60 = vld [vmem:[%s8140_s17 + $0x30] sm:$0xe] }
 0x28d   : > { %4542 = vmatprep.mubr.bf16.mxu0 %v7874_v0  ;;  %4655 = vmatprep.mubr.bf16.mxu1 %v7874_v0  ;;  %v6488_v44 = vcombine.low %v4252_v3, %v4262_v61  ;;  %v4271_v46 = vrot.slane %v4270_v27, 4  ;;  %v4281_v10 = vrot.slane %v4280_v50, 4  ;;  %v4290_v7 = vrot.slane %v4288_v16, 4  ;;  %v6532_v27 = vld [vmem:[%s8140_s17 + $0x3c] sm:$0xe] }
 0x28e   : > { %5036 = vmatpush1.bf16.msra.mxu0 %v5016_v18  ;;  %5149 = vmatpush1.bf16.msra.mxu1 %v5022_v19  ;;  %v4285_v52 = vrot.slane %v4283_v11, 5  ;;  %v4293_v25 = vrot.slane %v4291_v17, 5  ;;  %v4299_v18 = vrot.slane %v4297_v4, 5  ;;  %v4303_v19 = vrot.slane %v4301_v15, 4  ;;  %v6533_v15 = vld [vmem:[%s8140_s17 + $0x48] sm:$0xe] }
 0x28f   : > { %v4276_v13 = vsel %vm8176_vm4, %v4271_v46, %v4275_v53  ;;  %v4805_v43 = vsel %vm8341_vm7, %v6537_v35, %v4804_v1  ;;  %v4808_v21 = vsel %vm8341_vm7, %v4806_v47, %v4807_v49  ;;  %v4811_v51 = vrot.slane %v8897_v55, 5  ;;  %v5726_v47 = vld [vmem:[#allocation9 + $0x88] sm:$0xff] }
 0x290   : > { %v4286_v30 = vsel %vm8176_vm4, %v4281_v10, %v4285_v52  ;;  %v4294_v31 = vor.u32 %v4293_v25, %v4290_v7  ;;  %v4304_v34 = vor.u32 %v4303_v19, %v4299_v18  ;;  %v6538_v32 = vrot.slane %v6530_v12, 9  ;;  %v6534_v25 = vld [vmem:[%s8140_s17 + $0x54] sm:$0xe]  ;;  %v5757_v12 = vld [vmem:[#allocation9 + $0x180] sm:$0xff] }
 0x291   : > { %v6489_v48 = vcombine.low %v4276_v13, %v4286_v30  ;;  %v4813_v59 = vrot.slane %v4811_v51, 4  ;;  %v4814_v56 = vrot.slane %v8911_v40, 5  ;;  %v4818_v22 = vrot.slane %v8915_v23, 5 }
 0x292   : > { %v4295_v9 = vrot.slane %v4294_v31, 4  ;;  %v4305_v8 = vrot.slane %v4304_v34, 4  ;;  %v4812_v57 = vsel %vm8341_vm7, %v6538_v32, %v4811_v51  ;;  %v6539_v40 = vrot.slane %v6531_v60, 9  ;;  %v6535_v34 = vld [vmem:[%s8140_s17 + $0x60] sm:$0xe] }
 0x293   : > { %v4815_v55 = vsel %vm8341_vm7, %v4813_v59, %v4814_v56  ;;  %v4820_v14 = vrot.slane %v4818_v22, 4  ;;  %v4821_v62 = vrot.slane %v8931_v6, 5  ;;  %v4825_v61 = vrot.slane %v8935_v24, 5  ;;  %v5742_v59 = vld [vmem:[#allocation9 + $0x108] sm:$0xff]  ;;  %v5727_v56 = vld [vmem:[#allocation9 + $0x90] sm:$0xff]  ;;  %v5712_v60 = vld [vmem:[#allocation9 + $0x18] sm:$0xff] }
 0x294   : > { %6515 = vmatmul.mubr.msk.bf16.gmra.mrb[12].mxu0 %vm691_vm3, %v6486_v5  ;;  %6524 = vmatmul.mubr.msk.bf16.gmra.mrb[12].mxu1 %vm691_vm3, %v6486_v5  ;;  %v4309_v5 = vrot.slane %v4307_v58, 5  ;;  %v4300_v33 = vsel %vm8176_vm4, %v4295_v9, %v4299_v18  ;;  %v6546_v53 = vcombine.low %v4812_v57, %v4815_v55  ;;  %v4819_v3 = vsel %vm8341_vm7, %v6539_v40, %v4818_v22  ;;  %v5728_v57 = vld [vmem:[#allocation9 + $0x98] sm:$0xff]  ;;  %v5711_v22 = vld [vmem:[#allocation9 + $0x10] sm:$0xff] }
 0x295   : > { %4552 = vmatprep.mubr.bf16.mxu0 %v7874_v0  ;;  %4665 = vmatprep.mubr.bf16.mxu1 %v7874_v0  ;;  %v4822_v23 = vsel %vm8341_vm7, %v4820_v14, %v4821_v62  ;;  %v6540_v6 = vrot.slane %v6532_v27, 9  ;;  %v4827_v11 = vrot.slane %v4825_v61, 4  ;;  %v4828_v16 = vrot.slane %v8954_v36, 5  ;;  %v5759_v40 = vld [vmem:[#allocation9 + $0x190] sm:$0xff]  ;;  %v5760_v14 = vld [vmem:[#allocation9 + $0x198] sm:$0xff]  ;;  %v5729_v27 = vld [vmem:[#allocation9 + $0xa0] sm:$0xff] }
 0x296   : > { %v4310_v29 = vsel %vm8176_vm4, %v4305_v8, %v4309_v5  ;;  %v6547_v50 = vcombine.low %v4819_v3, %v4822_v23  ;;  %v4832_v4 = vrot.slane %v8951_v20, 5  ;;  %v6541_v36 = vrot.slane %v6533_v15, 9  ;;  %v5743_v62 = vld [vmem:[#allocation9 + $0x110] sm:$0xff]  ;;  %v5744_v23 = vld [vmem:[#allocation9 + $0x118] sm:$0xff]  ;;  %v5745_v15 = vld [vmem:[#allocation9 + $0x120] sm:$0xff] }
 0x297   : > { %v6490_v41 = vcombine.low %v4300_v33, %v4310_v29  ;;  %v4826_v17 = vsel %vm8341_vm7, %v6540_v6, %v4825_v61  ;;  %v4829_v24 = vsel %vm8341_vm7, %v4827_v11, %v4828_v16  ;;  %v4835_v10 = vrot.slane %v8974_v2, 5  ;;  %v6536_v33 = vld [vmem:[%s8140_s17 + $0x6c] sm:$0xe] }
 0x298   : > { %v4834_v46 = vrot.slane %v4832_v4, 4  ;;  %v4833_v52 = vsel %vm8341_vm7, %v6541_v36, %v4832_v4  ;;  %v4839_v7 = vrot.slane %v8978_v26, 5  ;;  %v6542_v2 = vrot.slane %v6534_v25, 9  ;;  %v5713_v11 = vld [vmem:[#allocation9 + $0x20] sm:$0xff]  ;;  %v5714_v16 = vld [vmem:[#allocation9 + $0x28] sm:$0xff]  ;;  %v5716_v25 = vld [vmem:[#allocation9 + $0x38] sm:$0xff] }
 0x299   : > { %v4842_v13 = vrot.slane %v8998_v38, 5  ;;  %v4846_v31 = vrot.slane %v9002_v39, 5  ;;  %v6543_v38 = vrot.slane %v6535_v34, 9  ;;  %v4849_v9 = vrot.slane %v9017_v45, 5  ;;  %v5762_v4 = vld [vmem:[#allocation9 + $0x1a8] sm:$0xff]  ;;  %v5733_v34 = vld [vmem:[#allocation9 + $0xc0] sm:$0xff] }
 0x29a   : > { %v4836_v20 = vsel %vm8341_vm7, %v4834_v46, %v4835_v10  ;;  %v4841_v19 = vrot.slane %v4839_v7, 4  ;;  %v4840_v30 = vsel %vm8341_vm7, %v6542_v2, %v4839_v7  ;;  %v4853_v5 = vrot.slane %v9021_v63, 5  ;;  %v5746_v36 = vld [vmem:[#allocation9 + $0x128] sm:$0xff]  ;;  %v5731_v10 = vld [vmem:[#allocation9 + $0xb0] sm:$0xff] }
 0x29b   : > { %v6549_v18 = vcombine.low %v4833_v52, %v4836_v20  ;;  %v4847_v8 = vsel %vm8341_vm7, %v6543_v38, %v4846_v31  ;;  %v6544_v1 = vrot.slane %v6536_v33, 9  ;;  %v4856_v42 = vrot.slane %v9035_v28, 5  ;;  %v5725_v28 = vld [vmem:[#allocation9 + $0x80] sm:$0xff]  ;;  %v5732_v52 = vld [vmem:[#allocation9 + $0xb8] sm:$0xff]  ;;  %v5715_v7 = vld [vmem:[#allocation9 + $0x30] sm:$0xff] }
 0x29c   : > { %6516 = vmatmul.mubr.msk.bf16.gmra.mrb[16].mxu0 %vm691_vm3, %v6487_v54  ;;  %6525 = vmatmul.mubr.msk.bf16.gmra.mrb[16].mxu1 %vm691_vm3, %v6487_v54  ;;  %v6545_v54 = vcombine.low %v4805_v43, %v4808_v21  ;;  %v4843_v26 = vsel %vm8341_vm7, %v4841_v19, %v4842_v13  ;;  %v4855_v45 = vrot.slane %v4853_v5, 4  ;;  %v6664_v49 = vpack.c.bf16 %v5726_v47, %v5725_v28  ;;  %v5709_v43 = vld [vmem:[#allocation9] sm:$0xff]  ;;  %v5710_v21 = vld [vmem:[#allocation9 + $0x8] sm:$0xff]  ;;  %v5763_v2 = vld [vmem:[#allocation9 + $0x1b0] sm:$0xff] }
 0x29d   : > { %4562 = vmatprep.mubr.bf16.mxu0 %v7874_v0  ;;  %4675 = vmatprep.mubr.bf16.mxu1 %v7874_v0  ;;  %v6550_v58 = vcombine.low %v4840_v30, %v4843_v26  ;;  %v6666_v51 = vpack.c.bf16 %v5710_v21, %v5709_v43  ;;  %v6668_v55 = vpack.c.bf16 %v5728_v57, %v5727_v56  ;;  %v5764_v19 = vld [vmem:[#allocation9 + $0x1b8] sm:$0xff]  ;;  %v5747_v13 = vld [vmem:[#allocation9 + $0x130] sm:$0xff]  ;;  %v5749_v33 = vld [vmem:[#allocation9 + $0x140] sm:$0xff] }
 0x29e   : > { %v4857_v63 = vsel %vm8341_vm7, %v4855_v45, %v4856_v42  ;;  %6665 = vmatprep.subr.bf16.mxu0 %v6664_v49  ;;  %v6700_v3 = vpack.c.bf16 %v5760_v14, %v5759_v40  ;;  %v6702_v61 = vpack.c.bf16 %v5744_v23, %v5743_v62  ;;  %v6706_v46 = vpack.c.bf16 %v5746_v36, %v5745_v15  ;;  %v5748_v26 = vld [vmem:[#allocation9 + $0x138] sm:$0xff]  ;;  %v5735_v42 = vld [vmem:[#allocation9 + $0xd0] sm:$0xff]  ;;  %v5721_v56 = vld [vmem:[#allocation9 + $0x60] sm:$0xff] }
 0x29f   : > { %v6676_v20 = vpack.c.bf16 %v5732_v52, %v5731_v10  ;;  %v6708_v30 = vpack.c.bf16 %v5764_v19, %v5763_v2  ;;  %v5768_v28 = vld [vmem:[#allocation9 + $0x1d8] sm:$0xff]  ;;  %v5719_v47 = vld [vmem:[#allocation9 + $0x50] sm:$0xff]  ;;  %v5722_v57 = vld [vmem:[#allocation9 + $0x68] sm:$0xff]  ;;  %v5319_v15 = vlaneseq }
 0x2a0   : > { %v5720_v49 = vld [vmem:[#allocation9 + $0x58] sm:$0xff]  ;;  %v5751_v21 = vld [vmem:[#allocation9 + $0x150] sm:$0xff]  ;;  %v5754_v40 = vld [vmem:[#allocation9 + $0x168] sm:$0xff] }
 0x2a1   : > { %v5739_v62 = vld [vmem:[#allocation9 + $0xf0] sm:$0xff]  ;;  %v5317_v10 = vld [vmem:[#allocation8] sm:$0xf] }
 0x2a2   : > { %v5771_v23 = vld [vmem:[#allocation9 + $0x1f0] sm:$0xff] }
 0x2a4   : > { %6517 = vmatmul.mubr.msk.bf16.gmra.mrb[20].mxu0 %vm691_vm3, %v6488_v44  ;;  %6526 = vmatmul.mubr.msk.bf16.gmra.mrb[20].mxu1 %vm691_vm3, %v6488_v44  ;;  %v6548_v44 = vcombine.low %v4826_v17, %v4829_v24  ;;  %v6674_v17 = vpack.c.bf16 %v5714_v16, %v5713_v11  ;;  %v5761_v24 = vld [vmem:[#allocation9 + $0x1a0] sm:$0xff] }
 0x2a5   : > { %4572 = vmatprep.mubr.bf16.mxu0 %v7874_v0  ;;  %4685 = vmatprep.mubr.bf16.mxu1 %v7874_v0 }
 0x2ac   : > { %6518 = vmatmul.mubr.msk.bf16.gmra.mrb[24].mxu0 %vm691_vm3, %v6489_v48  ;;  %6527 = vmatmul.mubr.msk.bf16.gmra.mrb[24].mxu1 %vm691_vm3, %v6489_v48  ;;  %v4848_v48 = vrot.slane %v4846_v31, 4  ;;  %v6710_v31 = vpack.c.bf16 %v5748_v26, %v5747_v13 }
 0x2ad   : > { %4582 = vmatprep.mubr.bf16.mxu0 %v7874_v0  ;;  %4695 = vmatprep.mubr.bf16.mxu1 %v7874_v0 }
 0x2ae   : > { %v4850_v39 = vsel %vm8341_vm7, %v4848_v48, %v4849_v9  ;;  %v5717_v48 = vld [vmem:[#allocation9 + $0x40] sm:$0xff]  ;;  %v5718_v9 = vld [vmem:[#allocation9 + $0x48] sm:$0xff] }
 0x2af   : > { %v6551_v29 = vcombine.low %v4847_v8, %v4850_v39  ;;  %v6682_v8 = vpack.c.bf16 %v5718_v9, %v5717_v48  ;;  %v5765_v39 = vld [vmem:[#allocation9 + $0x1c0] sm:$0xff] }
 0x2b4   : > { %6519 = vmatmul.mubr.msk.bf16.gmra.mrb[28].mxu0 %vm691_vm3, %v6490_v41  ;;  %6528 = vmatmul.mubr.msk.bf16.gmra.mrb[28].mxu1 %vm691_vm3, %v6490_v41  ;;  %v4854_v41 = vsel %vm8341_vm7, %v6544_v1, %v4853_v5  ;;  %v5766_v5 = vld [vmem:[#allocation9 + $0x1c8] sm:$0xff] }
 0x2b5   : > { %5059 = vmatprep.mubr.bf16.mxu0 %v7874_v0  ;;  %5172 = vmatprep.mubr.bf16.mxu1 %v7874_v0  ;;  %v6552_v35 = vcombine.low %v4854_v41, %v4857_v63  ;;  %v5750_v1 = vld [vmem:[#allocation9 + $0x148] sm:$0xff]  ;;  %v5736_v41 = vld [vmem:[#allocation9 + $0xd8] sm:$0xff] }
 0x2b6   : > { %v6714_v45 = vpack.c.bf16 %v5750_v1, %v5749_v33  ;;  %v6684_v63 = vpack.c.bf16 %v5736_v41, %v5735_v42 }
 0x2bc   : > { %6574 = vmatmul.mubr.msk.bf16.vlgmr.msra.gmra.mrb[0].mxu0 %vm691_vm3, %v6545_v54  ;;  %6583 = vmatmul.mubr.msk.bf16.vlgmr.msra.gmra.mrb[0].mxu1 %vm691_vm3, %v6545_v54  ;;  %v5758_v54 = vld [vmem:[#allocation9 + $0x188] sm:$0xff] }
 0x2bd   : > { %5069 = vmatprep.mubr.bf16.mxu0 %v7874_v0  ;;  %5182 = vmatprep.mubr.bf16.mxu1 %v7874_v0  ;;  %v6696_v32 = vpack.c.bf16 %v5758_v54, %v5757_v12  ;;  %v5752_v12 = vld [vmem:[#allocation9 + $0x158] sm:$0xff] }
 0x2be   : > { %6667 = vmatpush3.bf16.msra.mxu0 %v6666_v51  ;;  %v6686_v51 = vpack.c.bf16 %v5720_v49, %v5719_v47  ;;  %v6718_v54 = vpack.c.bf16 %v5752_v12, %v5751_v21 }
 0x2bf   : > { %6697 = vmatprep.subr.bf16.mxu1 %v6696_v32  ;;  %6669 = vmatprep.subr.bf16.mxu0 %v6668_v55  ;;  %v5738_v32 = vld [vmem:[#allocation9 + $0xe8] sm:$0xff] }
 0x2c0   : > { %v5770_v55 = vld [vmem:[#allocation9 + $0x1e8] sm:$0xff] }
 0x2c4   : > { %6575 = vmatmul.mubr.msk.bf16.gmra.mrb[4].mxu0 %vm691_vm3, %v6546_v53  ;;  %6584 = vmatmul.mubr.msk.bf16.gmra.mrb[4].mxu1 %vm691_vm3, %v6546_v53  ;;  %v6670_v53 = vpack.c.bf16 %v5712_v60, %v5711_v22  ;;  %v6690_v22 = vpack.c.bf16 %v5722_v57, %v5721_v56 }
 0x2c5   : > { %5079 = vmatprep.mubr.bf16.mxu0 %v7874_v0  ;;  %5192 = vmatprep.mubr.bf16.mxu1 %v7874_v0 }
 0x2c6   : > { %6671 = vmatpush3.bf16.msra.mxu0 %v6670_v53  ;;  %v5753_v53 = vld [vmem:[#allocation9 + $0x160] sm:$0xff] }
 0x2c7   : > { %v6722_v14 = vpack.c.bf16 %v5754_v40, %v5753_v53 }
 0x2cc   : > { %6576 = vmatmul.mubr.msk.bf16.gmra.mrb[8].mxu0 %vm691_vm3, %v6547_v50  ;;  %6585 = vmatmul.mubr.msk.bf16.gmra.mrb[8].mxu1 %vm691_vm3, %v6547_v50  ;;  %v5730_v50 = vld [vmem:[#allocation9 + $0xa8] sm:$0xff] }
 0x2cd   : > { %5089 = vmatprep.mubr.bf16.mxu0 %v7874_v0  ;;  %5202 = vmatprep.mubr.bf16.mxu1 %v7874_v0  ;;  %v6672_v6 = vpack.c.bf16 %v5730_v50, %v5729_v27  ;;  %v5723_v27 = vld [vmem:[#allocation9 + $0x70] sm:$0xff]  ;;  %v5724_v50 = vld [vmem:[#allocation9 + $0x78] sm:$0xff] }
 0x2ce   : > { %v6694_v11 = vpack.c.bf16 %v5724_v50, %v5723_v27 }
 0x2cf   : > { %6673 = vmatprep.subr.bf16.mxu0 %v6672_v6  ;;  %v5772_v6 = vld [vmem:[#allocation9 + $0x1f8] sm:$0xff] }
 0x2d0   : > { %6675 = vmatpush3.bf16.msra.mxu0 %v6674_v17  ;;  %v6724_v16 = vpack.c.bf16 %v5772_v6, %v5771_v23  ;;  %v5755_v17 = vld [vmem:[#allocation9 + $0x170] sm:$0xff] }
 0x2d1   : > { %6677 = vmatprep.subr.bf16.mxu0 %v6676_v20 }
 0x2d4   : > { %6577 = vmatmul.mubr.msk.bf16.gmra.mrb[12].mxu0 %vm691_vm3, %v6548_v44  ;;  %6586 = vmatmul.mubr.msk.bf16.gmra.mrb[12].mxu1 %vm691_vm3, %v6548_v44  ;;  %v6704_v44 = vpack.c.bf16 %v5762_v4, %v5761_v24  ;;  %v5756_v24 = vld [vmem:[#allocation9 + $0x178] sm:$0xff] }
 0x2d5   : > { %5099 = vmatprep.mubr.bf16.mxu0 %v7874_v0  ;;  %5212 = vmatprep.mubr.bf16.mxu1 %v7874_v0  ;;  %v6726_v4 = vpack.c.bf16 %v5756_v24, %v5755_v17 }
 0x2dc   : > { %6578 = vmatmul.mubr.msk.bf16.gmra.mrb[16].mxu0 %vm691_vm3, %v6549_v18  ;;  %6587 = vmatmul.mubr.msk.bf16.gmra.mrb[16].mxu1 %vm691_vm3, %v6549_v18  ;;  %v6678_v18 = vpack.c.bf16 %v5716_v25, %v5715_v7 }
 0x2dd   : > { %5109 = vmatprep.mubr.bf16.mxu0 %v7874_v0  ;;  %5222 = vmatprep.mubr.bf16.mxu1 %v7874_v0 }
 0x2de   : > { %6679 = vmatpush3.bf16.msra.mxu0 %v6678_v18 }
 0x2e4   : > { %6579 = vmatmul.mubr.msk.bf16.gmra.mrb[20].mxu0 %vm691_vm3, %v6550_v58  ;;  %6588 = vmatmul.mubr.msk.bf16.gmra.mrb[20].mxu1 %vm691_vm3, %v6550_v58  ;;  %v5734_v58 = vld [vmem:[#allocation9 + $0xc8] sm:$0xff] }
 0x2e5   : > { %5119 = vmatprep.mubr.bf16.mxu0 %v7874_v0  ;;  %5232 = vmatprep.mubr.bf16.mxu1 %v7874_v0  ;;  %v6680_v38 = vpack.c.bf16 %v5734_v58, %v5733_v34 }
 0x2e7   : > { %6681 = vmatprep.subr.bf16.mxu0 %v6680_v38 }
 0x2e8   : > { %6683 = vmatpush3.bf16.msra.mxu0 %v6682_v8 }
 0x2e9   : > { %6685 = vmatprep.subr.bf16.mxu0 %v6684_v63 }
 0x2ec   : > { %6580 = vmatmul.mubr.msk.bf16.gmra.mrb[24].mxu0 %vm691_vm3, %v6551_v29  ;;  %6589 = vmatmul.mubr.msk.bf16.gmra.mrb[24].mxu1 %vm691_vm3, %v6551_v29  ;;  %v6712_v29 = vpack.c.bf16 %v5766_v5, %v5765_v39 }
 0x2ed   : > { %5129 = vmatprep.mubr.bf16.mxu0 %v7874_v0  ;;  %5242 = vmatprep.mubr.bf16.mxu1 %v7874_v0  ;;  %v5741_v0 = vld [vmem:[#allocation9 + $0x100] sm:$0xff] }
 0x2ee   : > { %v6698_v37 = vpack.c.bf16 %v5742_v59, %v5741_v0  ;;  %6687 = vmatpush3.bf16.msra.mxu0 %v6686_v51  ;;  %v5737_v0 = vld [vmem:[#allocation9 + $0xe0] sm:$0xff] }
 0x2ef   : > { %v5769_v59 = vld [vmem:[#allocation9 + $0x1e0] sm:$0xff] }
 0x2f0   : > { %6699 = vmatpush3.bf16.msra.mxu1 %v6698_v37  ;;  %v6688_v37 = vpack.c.bf16 %v5738_v32, %v5737_v0  ;;  %v6720_v60 = vpack.c.bf16 %v5770_v55, %v5769_v59 }
 0x2f1   : > { %6701 = vmatprep.subr.bf16.mxu1 %v6700_v3  ;;  %v5740_v3 = vld [vmem:[#allocation9 + $0xf8] sm:$0xff] }
 0x2f2   : > { %6689 = vmatprep.subr.bf16.mxu0 %v6688_v37 }
 0x2f3   : > { %6691 = vmatpush3.bf16.msra.mxu0 %v6690_v22 }
 0x2f4   : > { %6581 = vmatmul.mubr.msk.bf16.gmra.mrb[28].mxu0 %vm691_vm3, %v6552_v35  ;;  %6590 = vmatmul.mubr.msk.bf16.gmra.mrb[28].mxu1 %vm691_vm3, %v6552_v35  ;;  %v5767_v35 = vld [vmem:[#allocation9 + $0x1d0] sm:$0xff] }
 0x2f5   : > { %6703 = vmatpush3.bf16.msra.mxu1 %v6702_v61  ;;  %v6716_v43 = vpack.c.bf16 %v5768_v28, %v5767_v35  ;;  %v6692_v61 = vpack.c.bf16 %v5740_v3, %v5739_v62 }
 0x2f6   : > { %6705 = vmatprep.subr.bf16.mxu1 %v6704_v44  ;;  %v5320_v44 = vshrl.u32 %v5319_v15, 7 }
 0x2f7   : > { %6693 = vmatprep.subr.bf16.mxu0 %v6692_v61 }
 0x2f8   : > { %6695 = vmatpush3.bf16.msra.mxu0 %v6694_v11  ;;  %v5321_v36 = vsub.s32 0, %v5320_v44  ;;  %v5325_v52 = vsub.s32 1, %v5320_v44  ;;  %v5333_v20 = vsub.s32 3, %v5320_v44 }
 0x2f9   : > { %6707 = vmatpush3.bf16.msra.mxu1 %v6706_v46  ;;  %v5329_v46 = vsub.s32 2, %v5320_v44 }
 0x2fa   : > { %6709 = vmatprep.subr.bf16.mxu1 %v6708_v30  ;;  %v9144_v7 = vrot.slane %v5317_v10, %v5321_v36  ;;  %v9148_v18 = vrot.slane %v5317_v10, %v5325_v52  ;;  %v9150_v2 = vrot.slane %v5317_v10, %v5333_v20 }
 0x2fb   : > { %v9146_v25 = vrot.slane %v5317_v10, %v5329_v46 }
 0x2fd   : > { %6711 = vmatpush3.bf16.msra.mxu1 %v6710_v31 }
 0x2fe   : > { %6713 = vmatprep.subr.bf16.mxu1 %v6712_v29 }
 0x301   : > { %6715 = vmatpush3.bf16.msra.mxu1 %v6714_v45 }
 0x302   : > { %6717 = vmatprep.subr.bf16.mxu1 %v6716_v43 }
 0x305   : > { %6719 = vmatpush3.bf16.msra.mxu1 %v6718_v54 }
 0x306   : > { %6721 = vmatprep.subr.bf16.mxu1 %v6720_v60 }
 0x309   : > { %6723 = vmatpush3.bf16.msra.mxu1 %v6722_v14 }
 0x30a   : > { %6725 = vmatprep.subr.bf16.mxu1 %v6724_v16 }
 0x30d   : > { %6727 = vmatpush3.bf16.msra.mxu1 %v6726_v4 }
 0x38f   : > { %v5061_v19 = vpop.f32.mrb[0].mxu0  ;;  %v5174_v13 = vpop.f32.mrb[0].mxu1 }
 0x390   : > { %v5339_v30 = vadd.f32 %v9144_v7, %v5061_v19  ;;  %v5341_v26 = vadd.f32 %v9146_v25, %v5174_v13  ;;  %v5063_v31 = vpop.f32.mrb[1].mxu0  ;;  %v5176_v34 = vpop.f32.mrb[1].mxu1 }
 0x391   : > { %v5340_v58 = vadd.f32 %v9148_v18, %v5063_v31  ;;  %v5342_v38 = vadd.f32 %v9150_v2, %v5176_v34  ;;  %v5065_v48 = vpop.f32.mrb[2].mxu0  ;;  %v5178_v9 = vpop.f32.mrb[2].mxu1 }
 0x392   : > { %v5343_v8 = vadd.f32 %v9144_v7, %v5065_v48  ;;  %v5345_v39 = vadd.f32 %v9146_v25, %v5178_v9  ;;  %v5067_v5 = vpop.f32.mrb[3].mxu0  ;;  %v5180_v33 = vpop.f32.mrb[3].mxu1  ;;  %v5403_v45 = vmax.f32 %v5339_v30, 0.0  ;;  %v5405_v42 = vmax.f32 %v5341_v26, 0.0 }
 0x393   : > { %v5344_v29 = vadd.f32 %v9148_v18, %v5067_v5  ;;  %v5346_v1 = vadd.f32 %v9150_v2, %v5180_v33  ;;  %v5404_v35 = vmax.f32 %v5340_v58, 0.0  ;;  %v5406_v28 = vmax.f32 %v5342_v38, 0.0 }
 0x394   : > { %v5407_v41 = vmax.f32 %v5343_v8, 0.0  ;;  %v5409_v63 = vmax.f32 %v5345_v39, 0.0 }
 0x395   : > { %v5408_v47 = vmax.f32 %v5344_v29, 0.0  ;;  %v5410_v49 = vmax.f32 %v5346_v1, 0.0 }
 0x396   : > { %v5606_v43 = vadd.f32 %v5407_v41, %v5403_v45  ;;  %v5636_v21 = vadd.f32 %v5409_v63, %v5405_v42 }
 0x397   : > { %v5621_v51 = vadd.f32 %v5408_v47, %v5404_v35  ;;  %v5651_v12 = vadd.f32 %v5410_v49, %v5406_v28  ;;  %v5071_v54 = vpop.f32.mrb[4].mxu0  ;;  %v5184_v0 = vpop.f32.mrb[4].mxu1 }
 0x398   : > { %v5347_v32 = vadd.f32 %v9144_v7, %v5071_v54  ;;  %v5349_v59 = vadd.f32 %v9146_v25, %v5184_v0  ;;  %v5073_v37 = vpop.f32.mrb[5].mxu0  ;;  %v5186_v56 = vpop.f32.mrb[5].mxu1 }
 0x399   : > { %v5348_v57 = vadd.f32 %v9148_v18, %v5073_v37  ;;  %v5350_v55 = vadd.f32 %v9150_v2, %v5186_v56  ;;  %v5075_v22 = vpop.f32.mrb[6].mxu0  ;;  %v5188_v60 = vpop.f32.mrb[6].mxu1 }
 0x39a   : > { %v5411_v53 = vmax.f32 %v5347_v32, 0.0  ;;  %v5413_v40 = vmax.f32 %v5349_v59, 0.0  ;;  %v5351_v14 = vadd.f32 %v9144_v7, %v5075_v22  ;;  %v5353_v62 = vadd.f32 %v9146_v25, %v5188_v60  ;;  %v5077_v3 = vpop.f32.mrb[7].mxu0  ;;  %v5190_v23 = vpop.f32.mrb[7].mxu1 }
 0x39b   : > { %v5412_v61 = vmax.f32 %v5348_v57, 0.0  ;;  %v5414_v27 = vmax.f32 %v5350_v55, 0.0  ;;  %v5352_v50 = vadd.f32 %v9148_v18, %v5077_v3  ;;  %v5354_v6 = vadd.f32 %v9150_v2, %v5190_v23 }
 0x39c   : > { %v5607_v11 = vadd.f32 %v5606_v43, %v5411_v53  ;;  %v5637_v16 = vadd.f32 %v5636_v21, %v5413_v40  ;;  %v5415_v17 = vmax.f32 %v5351_v14, 0.0  ;;  %v5417_v24 = vmax.f32 %v5353_v62, 0.0 }
 0x39d   : > { %v5622_v4 = vadd.f32 %v5621_v51, %v5412_v61  ;;  %v5652_v15 = vadd.f32 %v5651_v12, %v5414_v27  ;;  %v5416_v44 = vmax.f32 %v5352_v50, 0.0  ;;  %v5418_v36 = vmax.f32 %v5354_v6, 0.0 }
 0x39e   : > { %v5608_v46 = vadd.f32 %v5607_v11, %v5415_v17  ;;  %v5638_v10 = vadd.f32 %v5637_v16, %v5417_v24 }
 0x39f   : > { %v5623_v52 = vadd.f32 %v5622_v4, %v5416_v44  ;;  %v5653_v20 = vadd.f32 %v5652_v15, %v5418_v36  ;;  %v5081_v19 = vpop.f32.mrb[8].mxu0  ;;  %v5194_v13 = vpop.f32.mrb[8].mxu1 }
 0x3a0   : > { %v5355_v30 = vadd.f32 %v9144_v7, %v5081_v19  ;;  %v5357_v26 = vadd.f32 %v9146_v25, %v5194_v13  ;;  %v5083_v31 = vpop.f32.mrb[9].mxu0  ;;  %v5196_v34 = vpop.f32.mrb[9].mxu1 }
 0x3a1   : > { %v5356_v58 = vadd.f32 %v9148_v18, %v5083_v31  ;;  %v5358_v38 = vadd.f32 %v9150_v2, %v5196_v34  ;;  %v5085_v48 = vpop.f32.mrb[10].mxu0  ;;  %v5198_v9 = vpop.f32.mrb[10].mxu1 }
 0x3a2   : > { %v5419_v8 = vmax.f32 %v5355_v30, 0.0  ;;  %v5421_v39 = vmax.f32 %v5357_v26, 0.0  ;;  %v5359_v5 = vadd.f32 %v9144_v7, %v5085_v48  ;;  %v5361_v33 = vadd.f32 %v9146_v25, %v5198_v9  ;;  %v5087_v29 = vpop.f32.mrb[11].mxu0  ;;  %v5200_v1 = vpop.f32.mrb[11].mxu1 }
 0x3a3   : > { %v5420_v45 = vmax.f32 %v5356_v58, 0.0  ;;  %v5422_v42 = vmax.f32 %v5358_v38, 0.0  ;;  %v5360_v41 = vadd.f32 %v9148_v18, %v5087_v29  ;;  %v5362_v63 = vadd.f32 %v9150_v2, %v5200_v1 }
 0x3a4   : > { %v5609_v35 = vadd.f32 %v5608_v46, %v5419_v8  ;;  %v5639_v28 = vadd.f32 %v5638_v10, %v5421_v39  ;;  %v5423_v47 = vmax.f32 %v5359_v5, 0.0  ;;  %v5425_v49 = vmax.f32 %v5361_v33, 0.0 }
 0x3a5   : > { %v5624_v43 = vadd.f32 %v5623_v52, %v5420_v45  ;;  %v5654_v21 = vadd.f32 %v5653_v20, %v5422_v42  ;;  %v5424_v51 = vmax.f32 %v5360_v41, 0.0  ;;  %v5426_v12 = vmax.f32 %v5362_v63, 0.0 }
 0x3a6   : > { %v5610_v54 = vadd.f32 %v5609_v35, %v5423_v47  ;;  %v5640_v0 = vadd.f32 %v5639_v28, %v5425_v49 }
 0x3a7   : > { %v5625_v32 = vadd.f32 %v5624_v43, %v5424_v51  ;;  %v5655_v59 = vadd.f32 %v5654_v21, %v5426_v12  ;;  %v5091_v37 = vpop.f32.mrb[12].mxu0  ;;  %v5204_v56 = vpop.f32.mrb[12].mxu1 }
 0x3a8   : > { %v5363_v57 = vadd.f32 %v9144_v7, %v5091_v37  ;;  %v5365_v55 = vadd.f32 %v9146_v25, %v5204_v56  ;;  %v5093_v22 = vpop.f32.mrb[13].mxu0  ;;  %v5206_v60 = vpop.f32.mrb[13].mxu1 }
 0x3a9   : > { %v5364_v53 = vadd.f32 %v9148_v18, %v5093_v22  ;;  %v5366_v40 = vadd.f32 %v9150_v2, %v5206_v60  ;;  %v5095_v14 = vpop.f32.mrb[14].mxu0  ;;  %v5208_v62 = vpop.f32.mrb[14].mxu1 }
 0x3aa   : > { %v5427_v3 = vmax.f32 %v5363_v57, 0.0  ;;  %v5429_v23 = vmax.f32 %v5365_v55, 0.0  ;;  %v5367_v61 = vadd.f32 %v9144_v7, %v5095_v14  ;;  %v5369_v27 = vadd.f32 %v9146_v25, %v5208_v62  ;;  %v5097_v50 = vpop.f32.mrb[15].mxu0  ;;  %v5210_v6 = vpop.f32.mrb[15].mxu1 }
 0x3ab   : > { %v5428_v11 = vmax.f32 %v5364_v53, 0.0  ;;  %v5430_v16 = vmax.f32 %v5366_v40, 0.0  ;;  %v5368_v17 = vadd.f32 %v9148_v18, %v5097_v50  ;;  %v5370_v24 = vadd.f32 %v9150_v2, %v5210_v6 }
 0x3ac   : > { %v5611_v4 = vadd.f32 %v5610_v54, %v5427_v3  ;;  %v5641_v15 = vadd.f32 %v5640_v0, %v5429_v23  ;;  %v5431_v44 = vmax.f32 %v5367_v61, 0.0  ;;  %v5433_v36 = vmax.f32 %v5369_v27, 0.0 }
 0x3ad   : > { %v5626_v46 = vadd.f32 %v5625_v32, %v5428_v11  ;;  %v5656_v10 = vadd.f32 %v5655_v59, %v5430_v16  ;;  %v5432_v52 = vmax.f32 %v5368_v17, 0.0  ;;  %v5434_v20 = vmax.f32 %v5370_v24, 0.0 }
 0x3ae   : > { %v5612_v19 = vadd.f32 %v5611_v4, %v5431_v44  ;;  %v5642_v13 = vadd.f32 %v5641_v15, %v5433_v36 }
 0x3af   : > { %v5627_v30 = vadd.f32 %v5626_v46, %v5432_v52  ;;  %v5657_v26 = vadd.f32 %v5656_v10, %v5434_v20  ;;  %v5101_v31 = vpop.f32.mrb[16].mxu0  ;;  %v5214_v34 = vpop.f32.mrb[16].mxu1 }
 0x3b0   : > { %v5371_v58 = vadd.f32 %v9144_v7, %v5101_v31  ;;  %v5373_v38 = vadd.f32 %v9146_v25, %v5214_v34  ;;  %v5103_v48 = vpop.f32.mrb[17].mxu0  ;;  %v5216_v9 = vpop.f32.mrb[17].mxu1 }
 0x3b1   : > { %v5372_v8 = vadd.f32 %v9148_v18, %v5103_v48  ;;  %v5374_v39 = vadd.f32 %v9150_v2, %v5216_v9  ;;  %v5105_v5 = vpop.f32.mrb[18].mxu0  ;;  %v5218_v33 = vpop.f32.mrb[18].mxu1 }
 0x3b2   : > { %v5435_v29 = vmax.f32 %v5371_v58, 0.0  ;;  %v5437_v1 = vmax.f32 %v5373_v38, 0.0  ;;  %v5375_v45 = vadd.f32 %v9144_v7, %v5105_v5  ;;  %v5377_v42 = vadd.f32 %v9146_v25, %v5218_v33  ;;  %v5107_v41 = vpop.f32.mrb[19].mxu0  ;;  %v5220_v63 = vpop.f32.mrb[19].mxu1 }
 0x3b3   : > { %v5436_v35 = vmax.f32 %v5372_v8, 0.0  ;;  %v5438_v28 = vmax.f32 %v5374_v39, 0.0  ;;  %v5376_v47 = vadd.f32 %v9148_v18, %v5107_v41  ;;  %v5378_v49 = vadd.f32 %v9150_v2, %v5220_v63 }
 0x3b4   : > { %v5613_v43 = vadd.f32 %v5612_v19, %v5435_v29  ;;  %v5643_v21 = vadd.f32 %v5642_v13, %v5437_v1  ;;  %v5439_v51 = vmax.f32 %v5375_v45, 0.0  ;;  %v5441_v12 = vmax.f32 %v5377_v42, 0.0 }
 0x3b5   : > { %v5628_v54 = vadd.f32 %v5627_v30, %v5436_v35  ;;  %v5658_v0 = vadd.f32 %v5657_v26, %v5438_v28  ;;  %v5440_v32 = vmax.f32 %v5376_v47, 0.0  ;;  %v5442_v59 = vmax.f32 %v5378_v49, 0.0 }
 0x3b6   : > { %v5614_v37 = vadd.f32 %v5613_v43, %v5439_v51  ;;  %v5644_v56 = vadd.f32 %v5643_v21, %v5441_v12 }
 0x3b7   : > { %v5629_v57 = vadd.f32 %v5628_v54, %v5440_v32  ;;  %v5659_v55 = vadd.f32 %v5658_v0, %v5442_v59  ;;  %v5111_v22 = vpop.f32.mrb[20].mxu0  ;;  %v5224_v60 = vpop.f32.mrb[20].mxu1 }
 0x3b8   : > { %v5379_v53 = vadd.f32 %v9144_v7, %v5111_v22  ;;  %v5381_v40 = vadd.f32 %v9146_v25, %v5224_v60  ;;  %v5113_v14 = vpop.f32.mrb[21].mxu0  ;;  %v5226_v62 = vpop.f32.mrb[21].mxu1 }
 0x3b9   : > { %v5380_v3 = vadd.f32 %v9148_v18, %v5113_v14  ;;  %v5382_v23 = vadd.f32 %v9150_v2, %v5226_v62  ;;  %v5115_v61 = vpop.f32.mrb[22].mxu0  ;;  %v5228_v27 = vpop.f32.mrb[22].mxu1 }
 0x3ba   : > { %v5443_v50 = vmax.f32 %v5379_v53, 0.0  ;;  %v5445_v6 = vmax.f32 %v5381_v40, 0.0  ;;  %v5383_v11 = vadd.f32 %v9144_v7, %v5115_v61  ;;  %v5385_v16 = vadd.f32 %v9146_v25, %v5228_v27  ;;  %v5117_v17 = vpop.f32.mrb[23].mxu0  ;;  %v5230_v24 = vpop.f32.mrb[23].mxu1 }
 0x3bb   : > { %v5444_v4 = vmax.f32 %v5380_v3, 0.0  ;;  %v5446_v15 = vmax.f32 %v5382_v23, 0.0  ;;  %v5384_v44 = vadd.f32 %v9148_v18, %v5117_v17  ;;  %v5386_v36 = vadd.f32 %v9150_v2, %v5230_v24 }
 0x3bc   : > { %v5615_v46 = vadd.f32 %v5614_v37, %v5443_v50  ;;  %v5645_v10 = vadd.f32 %v5644_v56, %v5445_v6  ;;  %v5447_v52 = vmax.f32 %v5383_v11, 0.0  ;;  %v5449_v20 = vmax.f32 %v5385_v16, 0.0 }
 0x3bd   : > { %v5630_v19 = vadd.f32 %v5629_v57, %v5444_v4  ;;  %v5660_v13 = vadd.f32 %v5659_v55, %v5446_v15  ;;  %v5448_v30 = vmax.f32 %v5384_v44, 0.0  ;;  %v5450_v26 = vmax.f32 %v5386_v36, 0.0 }
 0x3be   : > { %v5616_v31 = vadd.f32 %v5615_v46, %v5447_v52  ;;  %v5646_v34 = vadd.f32 %v5645_v10, %v5449_v20 }
 0x3bf   : > { %v5631_v58 = vadd.f32 %v5630_v19, %v5448_v30  ;;  %v5661_v38 = vadd.f32 %v5660_v13, %v5450_v26  ;;  %v5121_v48 = vpop.f32.mrb[24].mxu0  ;;  %v5234_v9 = vpop.f32.mrb[24].mxu1 }
 0x3c0   : > { %v5387_v8 = vadd.f32 %v9144_v7, %v5121_v48  ;;  %v5389_v39 = vadd.f32 %v9146_v25, %v5234_v9  ;;  %v5123_v5 = vpop.f32.mrb[25].mxu0  ;;  %v5236_v33 = vpop.f32.mrb[25].mxu1 }
 0x3c1   : > { %v5388_v29 = vadd.f32 %v9148_v18, %v5123_v5  ;;  %v5390_v1 = vadd.f32 %v9150_v2, %v5236_v33  ;;  %v5125_v45 = vpop.f32.mrb[26].mxu0  ;;  %v5238_v42 = vpop.f32.mrb[26].mxu1 }
 0x3c2   : > { %v5451_v41 = vmax.f32 %v5387_v8, 0.0  ;;  %v5453_v63 = vmax.f32 %v5389_v39, 0.0  ;;  %v5391_v35 = vadd.f32 %v9144_v7, %v5125_v45  ;;  %v5393_v28 = vadd.f32 %v9146_v25, %v5238_v42  ;;  %v5127_v47 = vpop.f32.mrb[27].mxu0  ;;  %v5240_v49 = vpop.f32.mrb[27].mxu1 }
 0x3c3   : > { %v5452_v43 = vmax.f32 %v5388_v29, 0.0  ;;  %v5454_v21 = vmax.f32 %v5390_v1, 0.0  ;;  %v5392_v51 = vadd.f32 %v9148_v18, %v5127_v47  ;;  %v5394_v12 = vadd.f32 %v9150_v2, %v5240_v49 }
 0x3c4   : > { %v5617_v54 = vadd.f32 %v5616_v31, %v5451_v41  ;;  %v5647_v0 = vadd.f32 %v5646_v34, %v5453_v63  ;;  %v5455_v32 = vmax.f32 %v5391_v35, 0.0  ;;  %v5457_v59 = vmax.f32 %v5393_v28, 0.0 }
 0x3c5   : > { %v5632_v37 = vadd.f32 %v5631_v58, %v5452_v43  ;;  %v5662_v56 = vadd.f32 %v5661_v38, %v5454_v21  ;;  %v5456_v57 = vmax.f32 %v5392_v51, 0.0  ;;  %v5458_v55 = vmax.f32 %v5394_v12, 0.0 }
 0x3c6   : > { %v5618_v22 = vadd.f32 %v5617_v54, %v5455_v32  ;;  %v5648_v60 = vadd.f32 %v5647_v0, %v5457_v59 }
 0x3c7   : > { %v5633_v53 = vadd.f32 %v5632_v37, %v5456_v57  ;;  %v5663_v40 = vadd.f32 %v5662_v56, %v5458_v55  ;;  %v5131_v14 = vpop.f32.mrb[28].mxu0  ;;  %v5244_v62 = vpop.f32.mrb[28].mxu1 }
 0x3c8   : > { %v5395_v3 = vadd.f32 %v9144_v7, %v5131_v14  ;;  %v5397_v23 = vadd.f32 %v9146_v25, %v5244_v62  ;;  %v5133_v61 = vpop.f32.mrb[29].mxu0  ;;  %v5246_v27 = vpop.f32.mrb[29].mxu1 }
 0x3c9   : > { %v5396_v50 = vadd.f32 %v9148_v18, %v5133_v61  ;;  %v5398_v6 = vadd.f32 %v9150_v2, %v5246_v27  ;;  %v5135_v11 = vpop.f32.mrb[30].mxu0  ;;  %v5248_v16 = vpop.f32.mrb[30].mxu1 }
 0x3ca   : > { %v5459_v17 = vmax.f32 %v5395_v3, 0.0  ;;  %v5461_v24 = vmax.f32 %v5397_v23, 0.0  ;;  %v5399_v4 = vadd.f32 %v9144_v7, %v5135_v11  ;;  %v5401_v15 = vadd.f32 %v9146_v25, %v5248_v16  ;;  %v5137_v44 = vpop.f32.mrb[31].mxu0  ;;  %v5250_v36 = vpop.f32.mrb[31].mxu1 }
 0x3cb   : > { %v5460_v46 = vmax.f32 %v5396_v50, 0.0  ;;  %v5462_v10 = vmax.f32 %v5398_v6, 0.0  ;;  %v5400_v52 = vadd.f32 %v9148_v18, %v5137_v44  ;;  %v5402_v20 = vadd.f32 %v9150_v2, %v5250_v36 }
 0x3cc   : > { %v5619_v19 = vadd.f32 %v5618_v22, %v5459_v17  ;;  %v5649_v13 = vadd.f32 %v5648_v60, %v5461_v24  ;;  %v5463_v30 = vmax.f32 %v5399_v4, 0.0  ;;  %v5465_v26 = vmax.f32 %v5401_v15, 0.0 }
 0x3cd   : > { %v5634_v31 = vadd.f32 %v5633_v53, %v5460_v46  ;;  %v5664_v34 = vadd.f32 %v5663_v40, %v5462_v10  ;;  %v5464_v58 = vmax.f32 %v5400_v52, 0.0  ;;  %v5466_v38 = vmax.f32 %v5402_v20, 0.0  ;;  %v5773_v53 = vld [vmem:[#allocation11] sm:$0x1] }
 0x3ce   : > { %v5620_v48 = vadd.f32 %v5619_v19, %v5463_v30  ;;  %v5650_v7 = vadd.f32 %v5649_v13, %v5465_v26 }
 0x3cf   : > { %v5635_v9 = vadd.f32 %v5634_v31, %v5464_v58  ;;  %v5665_v25 = vadd.f32 %v5664_v34, %v5466_v38 }
 0x3d0   : > { %v5681_v8 = vrot.slane %v5620_v48, 4  ;;  %v5693_v39 = vrot.slane %v5650_v7, 4 }
 0x3d1   : > { %v5687_v5 = vrot.slane %v5635_v9, 4  ;;  %v5699_v33 = vrot.slane %v5665_v25, 4 }
 0x3d2   : > { %v5682_v29 = vadd.f32 %v5681_v8, %v5620_v48  ;;  %v5694_v18 = vadd.f32 %v5693_v39, %v5650_v7 }
 0x3d3   : > { %v5688_v1 = vadd.f32 %v5687_v5, %v5635_v9  ;;  %v5700_v2 = vadd.f32 %v5699_v33, %v5665_v25 }
 0x3d4   : > { %v5683_v45 = vrot.slane %v5682_v29, 2  ;;  %v5695_v42 = vrot.slane %v5694_v18, 2 }
 0x3d5   : > { %v5689_v41 = vrot.slane %v5688_v1, 2  ;;  %v5701_v63 = vrot.slane %v5700_v2, 2 }
 0x3d6   : > { %v5684_v35 = vadd.f32 %v5683_v45, %v5682_v29  ;;  %v5696_v28 = vadd.f32 %v5695_v42, %v5694_v18 }
 0x3d7   : > { %v5690_v47 = vadd.f32 %v5689_v41, %v5688_v1  ;;  %v5702_v49 = vadd.f32 %v5701_v63, %v5700_v2 }
 0x3d8   : > { %v5685_v43 = vrot.slane %v5684_v35, 1  ;;  %v5697_v21 = vrot.slane %v5696_v28, 1 }
 0x3d9   : > { %v5691_v51 = vrot.slane %v5690_v47, 1  ;;  %v5703_v12 = vrot.slane %v5702_v49, 1 }
 0x3da   : > { %v5686_v54 = vadd.f32 %v5685_v43, %v5684_v35  ;;  %v5698_v0 = vadd.f32 %v5697_v21, %v5696_v28 }
 0x3db   : > { %v5692_v32 = vadd.f32 %v5691_v51, %v5690_v47  ;;  %v5704_v59 = vadd.f32 %v5703_v12, %v5702_v49 }
 0x3dc   : > { %v5705_v57 = vmul.f32 0.00048828125, %v5686_v54  ;;  %v5707_v55 = vmul.f32 0.00048828125, %v5698_v0 }
 0x3dd   : > { %v5706_v37 = vmul.f32 0.00048828125, %v5692_v32  ;;  %v5708_v56 = vmul.f32 0.00048828125, %v5704_v59 }
 0x3df   : > { %5838 = vmatprep.mubr.f32.mxu0 %v5706_v37  ;;  %5908 = vmatprep.mubr.f32.mxu1 %v5708_v56 }
 0x3e0   : > { %5839 = vmatmul.mubr.f32.vlgmr.msra.gmra.mrb[32].mxu0 %v5705_v57  ;;  %5909 = vmatmul.mubr.f32.vlgmr.msra.gmra.mrb[32].mxu1 %v5707_v55 }
 0x4b3   : > { %v6626_v22 = vpop.f32.mrb[32].mxu0  ;;  %v6661_v60 = vpop.f32.mrb[32].mxu1 }
 0x4b4   : > { %v6627_v40 = vpop.f32.mrb[33].mxu0  ;;  %v6662_v14 = vpop.f32.mrb[33].mxu1 }
 0x4b5   : > { %v6628_v62 = vadd.f32 %v6627_v40, %v6626_v22  ;;  %v6663_v3 = vadd.f32 %v6662_v14, %v6661_v60 }
 0x4b7   : > { %v5841_v23 = vadd.f32 %v6628_v62, %v5773_v53 }
 0x4b9   : > { %v5911_v61 = vadd.f32 %v6663_v3, %v5841_v23 }
 0x4bb   : > { %5914 = vst [vmem:[%s311_s28] sm:$0x1] %v5911_v61 }
 0x4bc   : > { %7784 = shalt.err (!%p7781_p0)
}
 0x4bd   : > { %s7785_s7 = scalar_lea.hbm %s9221_s13, 16  ;;  %s7789_s1 = scalar_lea.hbm %s9275_s5, 32 }
 0x4be   : > { %p7786_p4 = scmp.ne.s32.totalorder %s9221_s13, %s7785_s7  ;;  %p7790_p12 = scmp.lt.u32.totalorder %s9221_s13, %s9275_s5 }
 0x4bf   : > { %p7791_p1 = scmp.lt.u32.totalorder %s7789_s1, %s7785_s7  ;;  %p7793_p10 = scmp.lt.u32.totalorder %s7785_s7, %s9221_s13 }
 0x4c0   : > { %p7787_p13 = pnand %p7786_p4, %p8083_p5 }
 0x4c1   : > { %p7792_p11 = por %p7791_p1, %p7790_p12 }
 0x4c2   : > { %p7788_p6 = pneg %p7787_p13 }
 0x4c3   : > { %p7794_p3 = por %p7793_p10, %p7792_p11 }
 0x4c5   : > { %p7795_p2 = pnand %p7794_p3, %p7788_p6 }
 0x4c7   : > { %7798 = shalt.err (!%p7795_p2)
}
 0x4c8   : > { %7261 = dma.vmem_to_hbm [thread:$0]  (%p8083_p5), %s9223_s30, 16, %s9221_s13, %s5916_s9  }
 0x4c9 PF: > { %s9301_s17 = sld [smem:[#allocation17_spill]]  ;;  %s5940_s26 = sand.u32 1, %s7841_s18  }
 0x4ca   : > { %p9303_p7 = scmp.ge.s32.totalorder %s7861_s23, 2  ;;  %s5941_s28 = scalar_lea.sflag [#allocation5], %s5940_s26 }
 0x4cf   : > { %p9302_p8 = scmp.ne.s32.totalorder %s9301_s17, 0 }
 0x4d1   : > { %p7281_p9 = pnand %p9303_p7, %p9302_p8 }
 0x4d3   : > { %7836 = dma.done.wait (!%p7281_p9), %s5941_s28, 16  }
 0x4d4   : > { %7838 = vsyncadd (!%p7281_p9), %s5941_s28, 4294967280  ;;  %s23_s23 = sadd.s32 1, %s7861_s23   ;;  %s9304_s18 = smov %s7845_s19 }
 0x4d5   : > { %p20_p0 = scmp.ge.s32.totalorder %s23_s23, 4   ;;  %s9305_s19 = smov %s7849_s20 }
 0x4d6   : > { %s9306_s20 = smov %s8095_s14  ;;  %s9307_s21 = smov %s7857_s22 }
 0x4d7   : > { %s9308_s22 = smov %s9310_s16  ;;  %22 = sbr.rel (!%p20_p0) target bundleno = 10 (0xa), region = 119 }
 0x4de   :  { %5945 = vsyncpa [#allocation4], 1 }
 0x4df   :  { %5947 = vsyncpa [#allocation4 + $0x1], 1 }
 0x4e0   :  { %5948 = vsyncpa [#allocation7], 1 }
 0x4e1   :  { %5949 = vsyncpa [#allocation10], 1 }
 0x4e2   :  { %5950 = vsyncpa [#allocation5], 1 }
 0x4e3   :  { %5952 = vsyncpa [#allocation5 + $0x1], 1 }

</bundles_post_ra>
